<compile_context>
chip_gen: v7x
topology: tpu7x:2x2x1
jax: 0.10.0
libtpu: 0.0.40
codegen_flags: <defaults>
</compile_context>

<pallas_src>
import jax
import jax.numpy as jnp
import numpy as np
from jax import lax
from jax.experimental import pallas as pl
from jax.experimental.pallas import tpu as pltpu

BN_EPS = 1e-5


# ----------------------------------------------------------------------------
# Pallas kernel
# ----------------------------------------------------------------------------
def _inception2_kernel(x_ref, w12_ref, b12_ref, w3_ref, b3_ref, alpha_ref,
                       o1_ref, o3_ref):
    """One batch-block per grid step.

    x_ref   : (NB, H, W, Cin)      VMEM  bf16
    w12_ref : (Cin, C1 + Cr)       VMEM  bf16  (fused BN-folded 1x1 weights)
    b12_ref : (1, C1 + Cr)         VMEM  f32
    w3_ref  : (9*Cr, C3)           VMEM  bf16  (BN-folded 3x3 im2col weights)
    b3_ref  : (1, C3)              VMEM  f32
    alpha_ref : (1, 3)             SMEM  f32   (PReLU slopes a1, a2, a3)
    o1_ref  : (NB, H, W, C1)       VMEM  f32   (1x1 branch)
    o3_ref  : (NB, H, W, C3)       VMEM  f32   (3x3 branch)
    """
    NB, H, W, Cin = x_ref.shape
    C1 = o1_ref.shape[-1]
    C3 = o3_ref.shape[-1]
    Cr = w12_ref.shape[1] - C1
    M = NB * H * W

    a1 = alpha_ref[0, 0]
    a2 = alpha_ref[0, 1]
    a3 = alpha_ref[0, 2]

    def prelu(v, a):
        return jnp.where(v >= 0, v, a * v)

    x = x_ref[...].reshape(M, Cin)                    # bf16, (M, Cin)

    # ---- fused 1x1 convs (both branches share the input): one MXU matmul ----
    y12 = jnp.dot(x, w12_ref[...], preferred_element_type=jnp.float32)
    y12 = y12 + b12_ref[...]                          # f32, (M, C1+Cr)
    y1 = prelu(y12[:, :C1], a1)                       # f32, (M, C1)
    z = prelu(y12[:, C1:], a2).astype(jnp.bfloat16)   # bf16, (M, Cr)

    # ---- 3x3 conv as ONE im2col matmul (K = 9*Cr) ---------------------------
    # Build the im2col slab: pad W, stack the 3 column taps on channels, pad H,
    # stack the 3 row taps on channels.  Channel layout = (kh*3 + kw)*Cr + ci,
    # which matches the (kh, kw, ci, co)-flattened weight built in the wrapper.
    zi = z.reshape(NB, H, W, Cr)
    zero_w = jnp.zeros((NB, H, 1, Cr), jnp.bfloat16)
    zw = jnp.concatenate([zero_w, zi, zero_w], axis=2)               # (NB,H,W+2,Cr)
    cols = jnp.concatenate([zw[:, :, d:d + W, :] for d in range(3)],
                           axis=-1)                                  # (NB,H,W,3Cr)
    zero_h = jnp.zeros((NB, 1, W, 3 * Cr), jnp.bfloat16)
    ch = jnp.concatenate([zero_h, cols, zero_h], axis=1)             # (NB,H+2,W,3Cr)
    patches = jnp.concatenate([ch[:, d:d + H, :, :] for d in range(3)],
                              axis=-1)                               # (NB,H,W,9Cr)
    patches = patches.reshape(M, 9 * Cr)                             # bf16

    y2 = jnp.dot(patches, w3_ref[...], preferred_element_type=jnp.float32)
    y2 = prelu(y2 + b3_ref[...], a3)                                 # f32, (M, C3)

    # ---- write each branch straight to its own output (no lane concat) ------
    o1_ref[...] = y1.reshape(NB, H, W, C1).astype(o1_ref.dtype)
    o3_ref[...] = y2.reshape(NB, H, W, C3).astype(o3_ref.dtype)


# ----------------------------------------------------------------------------
# Wrapper: BN folding + weight prep + pallas_call (public API is NCHW)
# ----------------------------------------------------------------------------
def _fold_bn(conv_w, conv_b, gamma, beta, mean, var):
    """Fold eval-mode BatchNorm into conv weight (OIHW) and bias."""
    scale = gamma / jnp.sqrt(var + BN_EPS)                # (Cout,)
    w = conv_w * scale[:, None, None, None]
    b = (conv_b - mean) * scale + beta
    return w, b


def _pick_batch_block(n, hw, target_rows=2048):
    """Largest divisor of n such that nb*H*W stays around `target_rows`."""
    max_nb = max(1, target_rows // max(hw, 1))
    for d in range(min(n, max_nb), 0, -1):
        if n % d == 0:
            return d
    return 1


def inception2_forward(x_nchw, params):
    """x_nchw: (N, Cin, H, W) float32 -> (N, C1+C3, H, W) float32."""
    N, Cin, H, W = x_nchw.shape

    # fold BN into conv weights (plain-JAX glue)
    w1, b1 = _fold_bn(params["w1"], params["b1"], params["g1"], params["be1"],
                      params["m1"], params["v1"])
    wr, br = _fold_bn(params["wr"], params["br"], params["gr"], params["ber"],
                      params["mr"], params["vr"])
    w3, b3 = _fold_bn(params["w3"], params["b3"], params["g3"], params["be3"],
                      params["m3"], params["v3"])

    C1 = w1.shape[0]
    Cr = wr.shape[0]
    C3 = w3.shape[0]

    # fused 1x1 weights: (Cin, C1+Cr), bf16
    w1_k = jnp.transpose(w1[:, :, 0, 0], (1, 0))                      # (Cin, C1)
    wr_k = jnp.transpose(wr[:, :, 0, 0], (1, 0))                      # (Cin, Cr)
    w12_k = jnp.concatenate([w1_k, wr_k], axis=1).astype(jnp.bfloat16)
    b12_k = jnp.concatenate([b1, br]).reshape(1, C1 + Cr).astype(jnp.float32)

    # 3x3 weights flattened for the im2col matmul: (kh, kw, ci, co) -> (9*Cr, C3)
    w3_k = jnp.transpose(w3, (2, 3, 1, 0)).reshape(9 * Cr, C3).astype(jnp.bfloat16)
    b3_k = b3.reshape(1, C3).astype(jnp.float32)

    alphas = jnp.stack([params["a1"], params["a2"], params["a3"]]
                       ).reshape(1, 3).astype(jnp.float32)

    # bf16 activations: halves HBM DMA bytes; accumulation stays f32 in-kernel.
    x_nhwc = jnp.transpose(x_nchw, (0, 2, 3, 1)).astype(jnp.bfloat16)  # (N,H,W,Cin)

    nb = _pick_batch_block(N, H * W)
    grid = (N // nb,)

    # cost estimate / VMEM budget
    flops = 2 * N * H * W * (Cin * (C1 + Cr) + 9 * Cr * C3)
    bytes_accessed = (N * H * W * Cin * 2                       # x (bf16)
                      + (Cin * (C1 + Cr) + 9 * Cr * C3) * 2     # weights (bf16)
                      + (C1 + Cr + C3 + 3) * 4                  # biases + alphas
                      + N * H * W * (C1 + C3) * 4)              # outputs (f32)
    blk_in = nb * H * W * Cin * 2
    blk_out = nb * H * W * (C1 + C3) * 4
    blk_w = (Cin * (C1 + Cr) + 9 * Cr * C3) * 2 + (C1 + Cr + C3 + 3) * 4
    blk_tmp = nb * H * W * (4 * (C1 + Cr + C3) + 2 * Cr * 20)   # kernel temporaries
    est = 2 * (blk_in + blk_out + blk_w) + blk_tmp
    vmem_limit = int(min(max(4 * est, 32 * 1024 * 1024), 48 * 1024 * 1024))

    y1_nhwc, y3_nhwc = pl.pallas_call(
        _inception2_kernel,
        out_shape=(jax.ShapeDtypeStruct((N, H, W, C1), jnp.float32),
                   jax.ShapeDtypeStruct((N, H, W, C3), jnp.float32)),
        grid_spec=pltpu.PrefetchScalarGridSpec(
            num_scalar_prefetch=0,
            grid=grid,
            in_specs=[
                pl.BlockSpec((nb, H, W, Cin), lambda n: (n, 0, 0, 0)),
                pl.BlockSpec((Cin, C1 + Cr), lambda n: (0, 0)),
                pl.BlockSpec((1, C1 + Cr), lambda n: (0, 0)),
                pl.BlockSpec((9 * Cr, C3), lambda n: (0, 0)),
                pl.BlockSpec((1, C3), lambda n: (0, 0)),
                pl.BlockSpec(memory_space=pltpu.MemorySpace.SMEM),
            ],
            out_specs=[
                pl.BlockSpec((nb, H, W, C1), lambda n: (n, 0, 0, 0)),
                pl.BlockSpec((nb, H, W, C3), lambda n: (n, 0, 0, 0)),
            ],
        ),
        compiler_params=pltpu.CompilerParams(
            dimension_semantics=("parallel",),
            vmem_limit_bytes=vmem_limit),
        cost_estimate=pl.CostEstimate(
            flops=int(flops), transcendentals=0,
            bytes_accessed=int(bytes_accessed)),
    )(x_nhwc, w12_k, b12_k, w3_k, b3_k, alphas)

    # channel concat (torch.cat along dim=1) done lane-dense in the wrapper
    out = jnp.concatenate([jnp.transpose(y1_nhwc, (0, 3, 1, 2)),
                           jnp.transpose(y3_nhwc, (0, 3, 1, 2))], axis=1)
    return out


# ----------------------------------------------------------------------------
# Pure-JAX (lax.conv) reference for correctness checking (NCHW, eval-mode BN)
# ----------------------------------------------------------------------------
def inception2_reference(x, p):
    def conv(x, w, b, pad):
        y = lax.conv_general_dilated(
            x, w, window_strides=(1, 1), padding=[(pad, pad), (pad, pad)],
            dimension_numbers=("NCHW", "OIHW", "NCHW"))
        return y + b[None, :, None, None]

    def bn(x, g, b, m, v):
        return (g[None, :, None, None] * (x - m[None, :, None, None])
                / jnp.sqrt(v[None, :, None, None] + BN_EPS)
                + b[None, :, None, None])

    def prelu(x, a):
        return jnp.where(x >= 0, x, a * x)

    x1 = prelu(bn(conv(x, p["w1"], p["b1"], 0), p["g1"], p["be1"], p["m1"], p["v1"]), p["a1"])
    z = prelu(bn(conv(x, p["wr"], p["br"], 0), p["gr"], p["ber"], p["mr"], p["vr"]), p["a2"])
    x3 = prelu(bn(conv(z, p["w3"], p["b3"], 1), p["g3"], p["be3"], p["m3"], p["v3"]), p["a3"])
    return jnp.concatenate([x1, x3], axis=1)


# ----------------------------------------------------------------------------
def make_params(key, c_in, c_red, c_out):
    c1, cr, c3 = c_out["1x1"], c_red["3x3"], c_out["3x3"]
    ks = jax.random.split(key, 16)

    def n(k, shape, scale):
        return scale * jax.random.normal(k, shape, jnp.float32)

    return dict(
        # branch 1: 1x1 conv + BN
        w1=n(ks[0], (c1, c_in, 1, 1), 0.5), b1=n(ks[1], (c1,), 0.1),
        g1=1.0 + 0.1 * jax.random.normal(ks[2], (c1,), jnp.float32),
        be1=n(ks[3], (c1,), 0.1),
        m1=n(ks[4], (c1,), 0.1),
        v1=1.0 + 0.3 * jax.random.uniform(ks[5], (c1,), jnp.float32),
        # branch 2a: 1x1 reduction conv + BN
        wr=n(ks[6], (cr, c_in, 1, 1), 0.5), br=n(ks[7], (cr,), 0.1),
        gr=1.0 + 0.1 * jax.random.normal(ks[8], (cr,), jnp.float32),
        ber=n(ks[9], (cr,), 0.1),
        mr=n(ks[10], (cr,), 0.1),
        vr=1.0 + 0.3 * jax.random.uniform(ks[11], (cr,), jnp.float32),
        # branch 2b: 3x3 conv + BN
        w3=n(ks[12], (c3, cr, 3, 3), 0.3), b3=n(ks[13], (c3,), 0.1),
        g3=1.0 + 0.1 * jax.random.normal(ks[14], (c3,), jnp.float32),
        be3=n(ks[15], (c3,), 0.1),
        m3=jnp.zeros((c3,), jnp.float32) + 0.05,
        v3=jnp.ones((c3,), jnp.float32) * 1.2,
        # PReLU slopes (PyTorch default single-parameter init = 0.25)
        a1=jnp.float32(0.25), a2=jnp.float32(0.25), a3=jnp.float32(0.25),
    )


if __name__ == "__main__":
    key = jax.random.PRNGKey(0)
    k_x, k_p = jax.random.split(key)

    N, C_IN, H, W = 2, 4, 16, 16
    c_red = {"3x3": 4}
    c_out = {"1x1": 4, "3x3": 8}

    x = jax.random.normal(k_x, (N, C_IN, H, W), jnp.float32)
    params = make_params(k_p, C_IN, c_red, c_out)

    out = inception2_forward(x, params)
    out = jax.block_until_ready(out)

    ref = jax.block_until_ready(inception2_reference(x, params))

    assert out.shape == (N, c_out["1x1"] + c_out["3x3"], H, W), out.shape
    # bf16 matmul inputs (f32 accumulation) -> relaxed tolerance vs f32 reference
    np.testing.assert_allclose(np.asarray(out), np.asarray(ref), rtol=5e-2, atol=5e-2)

    print("KERNEL_OK")
</pallas_src>

<mosaic_0001>
module attributes {stable_mosaic.version = 11 : i64} {
  func.func @_inception2_kernel(%arg0: i32, %arg1: memref<2x16x16x4xbf16, #tpu.memory_space<vmem>>, %arg2: memref<4x8xbf16, #tpu.memory_space<vmem>>, %arg3: memref<1x8xf32, #tpu.memory_space<vmem>>, %arg4: memref<36x8xbf16, #tpu.memory_space<vmem>>, %arg5: memref<1x8xf32, #tpu.memory_space<vmem>>, %arg6: memref<1x3xf32, #tpu.memory_space<smem>>, %arg7: memref<2x16x16x4xf32, #tpu.memory_space<vmem>>, %arg8: memref<2x16x16x8xf32, #tpu.memory_space<vmem>>) attributes {dimension_semantics = [#tpu.dimension_semantics<parallel>], iteration_bounds = array<i64: 1>, scalar_prefetch = 0 : i64, scratch_operands = 0 : i64, tpu.core_type = #tpu.core_type<tc>, window_params = [{transform_indices = @transform_0, window_bounds = array<i64: 2, 16, 16, 4>}, {pipeline_mode = #tpu.pipeline_mode<synchronous>, transform_indices = @transform_1, window_bounds = array<i64: 4, 8>}, {pipeline_mode = #tpu.pipeline_mode<synchronous>, transform_indices = @transform_2, window_bounds = array<i64: 1, 8>}, {pipeline_mode = #tpu.pipeline_mode<synchronous>, transform_indices = @transform_3, window_bounds = array<i64: 36, 8>}, {pipeline_mode = #tpu.pipeline_mode<synchronous>, transform_indices = @transform_4, window_bounds = array<i64: 1, 8>}, {transform_indices = @transform_5, window_bounds = array<i64: 1, 3>}, {transform_indices = @transform_6, window_bounds = array<i64: 2, 16, 16, 4>}, {transform_indices = @transform_7, window_bounds = array<i64: 2, 16, 16, 8>}]} {
    %c0 = arith.constant 0 : index
    %c0_0 = arith.constant 0 : index
    %0 = memref.load %arg6[%c0, %c0_0] : memref<1x3xf32, #tpu.memory_space<smem>>
    %c0_1 = arith.constant 0 : index
    %c1 = arith.constant 1 : index
    %1 = memref.load %arg6[%c0_1, %c1] : memref<1x3xf32, #tpu.memory_space<smem>>
    %c0_2 = arith.constant 0 : index
    %c2 = arith.constant 2 : index
    %2 = memref.load %arg6[%c0_2, %c2] : memref<1x3xf32, #tpu.memory_space<smem>>
    %c0_3 = arith.constant 0 : index
    %c0_4 = arith.constant 0 : index
    %c0_5 = arith.constant 0 : index
    %c0_6 = arith.constant 0 : index
    %3 = vector.load %arg1[%c0_3, %c0_4, %c0_5, %c0_6] : memref<2x16x16x4xbf16, #tpu.memory_space<vmem>>, vector<2x16x16x4xbf16>
    %4 = vector.shape_cast %3 : vector<2x16x16x4xbf16> to vector<512x4xbf16>
    %c0_7 = arith.constant 0 : index
    %c0_8 = arith.constant 0 : index
    %5 = vector.load %arg2[%c0_7, %c0_8] : memref<4x8xbf16, #tpu.memory_space<vmem>>, vector<4x8xbf16>
    %cst = arith.constant dense<0.000000e+00> : vector<512x8xf32>
    %6 = tpu.matmul %4, %5, %cst {dimension_numbers = #tpu.dot_dimension_numbers<[1], [0], [0], [1], [0, 0, 1, 1], [], []>} : vector<512x4xbf16>, vector<4x8xbf16>, vector<512x8xf32> -> vector<512x8xf32>
    %c0_9 = arith.constant 0 : index
    %c0_10 = arith.constant 0 : index
    %7 = vector.load %arg3[%c0_9, %c0_10] : memref<1x8xf32, #tpu.memory_space<vmem>>, vector<1x8xf32>
    %8 = vector.broadcast %7 : vector<1x8xf32> to vector<512x8xf32>
    %9 = arith.addf %6, %8 : vector<512x8xf32>
    %10 = vector.extract_strided_slice %9 {offsets = [0, 0], sizes = [512, 4], strides = [1, 1]} : vector<512x8xf32> to vector<512x4xf32>
    %cst_11 = arith.constant 0.000000e+00 : f32
    %11 = vector.broadcast %cst_11 : f32 to vector<512x4xf32>
    %12 = arith.cmpf oge, %10, %11 : vector<512x4xf32>
    %13 = vector.broadcast %0 : f32 to vector<512x4xf32>
    %14 = arith.mulf %13, %10 : vector<512x4xf32>
    %15 = arith.select %12, %10, %14 : vector<512x4xi1>, vector<512x4xf32>
    %16 = vector.extract_strided_slice %9 {offsets = [0, 4], sizes = [512, 4], strides = [1, 1]} : vector<512x8xf32> to vector<512x4xf32>
    %cst_12 = arith.constant 0.000000e+00 : f32
    %17 = vector.broadcast %cst_12 : f32 to vector<512x4xf32>
    %18 = arith.cmpf oge, %16, %17 : vector<512x4xf32>
    %19 = vector.broadcast %1 : f32 to vector<512x4xf32>
    %20 = arith.mulf %19, %16 : vector<512x4xf32>
    %21 = arith.select %18, %16, %20 : vector<512x4xi1>, vector<512x4xf32>
    %22 = arith.truncf %21 : vector<512x4xf32> to vector<512x4xbf16>
    %23 = vector.shape_cast %22 : vector<512x4xbf16> to vector<2x16x16x4xbf16>
    %cst_13 = arith.constant 0.000000e+00 : bf16
    %24 = vector.broadcast %cst_13 : bf16 to vector<2x16x1x4xbf16>
    %25 = tpu.concatenate %24, %23, %24 in 2 : vector<2x16x1x4xbf16>, vector<2x16x16x4xbf16>, vector<2x16x1x4xbf16> -> vector<2x16x18x4xbf16>
    %26 = vector.extract_strided_slice %25 {offsets = [0, 0, 0, 0], sizes = [2, 16, 16, 4], strides = [1, 1, 1, 1]} : vector<2x16x18x4xbf16> to vector<2x16x16x4xbf16>
    %27 = vector.extract_strided_slice %25 {offsets = [0, 0, 1, 0], sizes = [2, 16, 16, 4], strides = [1, 1, 1, 1]} : vector<2x16x18x4xbf16> to vector<2x16x16x4xbf16>
    %28 = vector.extract_strided_slice %25 {offsets = [0, 0, 2, 0], sizes = [2, 16, 16, 4], strides = [1, 1, 1, 1]} : vector<2x16x18x4xbf16> to vector<2x16x16x4xbf16>
    %29 = tpu.concatenate %26, %27, %28 in 3 : vector<2x16x16x4xbf16>, vector<2x16x16x4xbf16>, vector<2x16x16x4xbf16> -> vector<2x16x16x12xbf16>
    %cst_14 = arith.constant 0.000000e+00 : bf16
    %30 = vector.broadcast %cst_14 : bf16 to vector<2x1x16x12xbf16>
    %31 = tpu.concatenate %30, %29, %30 in 1 : vector<2x1x16x12xbf16>, vector<2x16x16x12xbf16>, vector<2x1x16x12xbf16> -> vector<2x18x16x12xbf16>
    %32 = vector.extract_strided_slice %31 {offsets = [0, 0, 0, 0], sizes = [2, 16, 16, 12], strides = [1, 1, 1, 1]} : vector<2x18x16x12xbf16> to vector<2x16x16x12xbf16>
    %33 = vector.extract_strided_slice %31 {offsets = [0, 1, 0, 0], sizes = [2, 16, 16, 12], strides = [1, 1, 1, 1]} : vector<2x18x16x12xbf16> to vector<2x16x16x12xbf16>
    %34 = vector.extract_strided_slice %31 {offsets = [0, 2, 0, 0], sizes = [2, 16, 16, 12], strides = [1, 1, 1, 1]} : vector<2x18x16x12xbf16> to vector<2x16x16x12xbf16>
    %35 = tpu.concatenate %32, %33, %34 in 3 : vector<2x16x16x12xbf16>, vector<2x16x16x12xbf16>, vector<2x16x16x12xbf16> -> vector<2x16x16x36xbf16>
    %36 = vector.shape_cast %35 : vector<2x16x16x36xbf16> to vector<512x36xbf16>
    %c0_15 = arith.constant 0 : index
    %c0_16 = arith.constant 0 : index
    %37 = vector.load %arg4[%c0_15, %c0_16] : memref<36x8xbf16, #tpu.memory_space<vmem>>, vector<36x8xbf16>
    %cst_17 = arith.constant dense<0.000000e+00> : vector<512x8xf32>
    %38 = tpu.matmul %36, %37, %cst_17 {dimension_numbers = #tpu.dot_dimension_numbers<[1], [0], [0], [1], [0, 0, 1, 1], [], []>} : vector<512x36xbf16>, vector<36x8xbf16>, vector<512x8xf32> -> vector<512x8xf32>
    %c0_18 = arith.constant 0 : index
    %c0_19 = arith.constant 0 : index
    %39 = vector.load %arg5[%c0_18, %c0_19] : memref<1x8xf32, #tpu.memory_space<vmem>>, vector<1x8xf32>
    %40 = vector.broadcast %39 : vector<1x8xf32> to vector<512x8xf32>
    %41 = arith.addf %38, %40 : vector<512x8xf32>
    %cst_20 = arith.constant 0.000000e+00 : f32
    %42 = vector.broadcast %cst_20 : f32 to vector<512x8xf32>
    %43 = arith.cmpf oge, %41, %42 : vector<512x8xf32>
    %44 = vector.broadcast %2 : f32 to vector<512x8xf32>
    %45 = arith.mulf %44, %41 : vector<512x8xf32>
    %46 = arith.select %43, %41, %45 : vector<512x8xi1>, vector<512x8xf32>
    %47 = vector.shape_cast %15 : vector<512x4xf32> to vector<2x16x16x4xf32>
    %c0_21 = arith.constant 0 : index
    %c0_22 = arith.constant 0 : index
    %c0_23 = arith.constant 0 : index
    %c0_24 = arith.constant 0 : index
    %48 = vector.load %arg7[%c0_21, %c0_22, %c0_23, %c0_24] : memref<2x16x16x4xf32, #tpu.memory_space<vmem>>, vector<2x16x16x4xf32>
    tpu.vector_store %arg7[%c0_21, %c0_22, %c0_23, %c0_24], %47 {strides = array<i32>} : memref<2x16x16x4xf32, #tpu.memory_space<vmem>>, vector<2x16x16x4xf32>,
    %49 = vector.shape_cast %46 : vector<512x8xf32> to vector<2x16x16x8xf32>
    %c0_25 = arith.constant 0 : index
    %c0_26 = arith.constant 0 : index
    %c0_27 = arith.constant 0 : index
    %c0_28 = arith.constant 0 : index
    %50 = vector.load %arg8[%c0_25, %c0_26, %c0_27, %c0_28] : memref<2x16x16x8xf32, #tpu.memory_space<vmem>>, vector<2x16x16x8xf32>
    tpu.vector_store %arg8[%c0_25, %c0_26, %c0_27, %c0_28], %49 {strides = array<i32>} : memref<2x16x16x8xf32, #tpu.memory_space<vmem>>, vector<2x16x16x8xf32>,
    return
  }
  func.func @transform_0(%arg0: i32) -> (i32, i32, i32, i32) {
    %c0_i32 = arith.constant 0 : i32
    %c0_i32_0 = arith.constant 0 : i32
    %c0_i32_1 = arith.constant 0 : i32
    %c0_i32_2 = arith.constant 0 : i32
    return %arg0, %c0_i32, %c0_i32_0, %c0_i32_1 : i32, i32, i32, i32
  }
  func.func @transform_1(%arg0: i32) -> (i32, i32) {
    %c0_i32 = arith.constant 0 : i32
    %c0_i32_0 = arith.constant 0 : i32
    %c0_i32_1 = arith.constant 0 : i32
    return %c0_i32, %c0_i32_0 : i32, i32
  }
  func.func @transform_2(%arg0: i32) -> (i32, i32) {
    %c0_i32 = arith.constant 0 : i32
    %c0_i32_0 = arith.constant 0 : i32
    %c0_i32_1 = arith.constant 0 : i32
    return %c0_i32, %c0_i32_0 : i32, i32
  }
  func.func @transform_3(%arg0: i32) -> (i32, i32) {
    %c0_i32 = arith.constant 0 : i32
    %c0_i32_0 = arith.constant 0 : i32
    %c0_i32_1 = arith.constant 0 : i32
    return %c0_i32, %c0_i32_0 : i32, i32
  }
  func.func @transform_4(%arg0: i32) -> (i32, i32) {
    %c0_i32 = arith.constant 0 : i32
    %c0_i32_0 = arith.constant 0 : i32
    %c0_i32_1 = arith.constant 0 : i32
    return %c0_i32, %c0_i32_0 : i32, i32
  }
  func.func @transform_5(%arg0: i32) -> (i32, i32) {
    %c0_i32 = arith.constant 0 : i32
    %c0_i32_0 = arith.constant 0 : i32
    %c0_i32_1 = arith.constant 0 : i32
    return %c0_i32, %c0_i32_0 : i32, i32
  }
  func.func @transform_6(%arg0: i32) -> (i32, i32, i32, i32) {
    %c0_i32 = arith.constant 0 : i32
    %c0_i32_0 = arith.constant 0 : i32
    %c0_i32_1 = arith.constant 0 : i32
    %c0_i32_2 = arith.constant 0 : i32
    return %arg0, %c0_i32, %c0_i32_0, %c0_i32_1 : i32, i32, i32, i32
  }
  func.func @transform_7(%arg0: i32) -> (i32, i32, i32, i32) {
    %c0_i32 = arith.constant 0 : i32
    %c0_i32_0 = arith.constant 0 : i32
    %c0_i32_1 = arith.constant 0 : i32
    %c0_i32_2 = arith.constant 0 : i32
    return %arg0, %c0_i32, %c0_i32_0, %c0_i32_1 : i32, i32, i32, i32
  }
}

</mosaic_0001>

<bundles_post_ra>
// kernel: tpu_custom_call.1
= control target key start
LH: loop header
LB: loop body
LE: loop exit
PB: predicated region body
PF: predicated region fallthrough
CT: control target
= control target key end

     0   :  { %13 = vsyncpa [#allocation3], 0  ;;  %s5942_s0 = inlined_call_operand.vmem [shape: bf16[2,16,16,4], index: 0, kind: input, shape index: {}]   ;;  %s5943_s1 = inlined_call_operand.vmem [shape: bf16[4,8], index: 1, kind: input, shape index: {}]   ;;  %s5944_s2 = inlined_call_operand.vmem [shape: f32[1,8], index: 2, kind: input, shape index: {}]   ;;  %s5945_s3 = inlined_call_operand.vmem [shape: bf16[36,8], index: 3, kind: input, shape index: {}]   ;;  %s5946_s4 = inlined_call_operand.vmem [shape: f32[1,8], index: 4, kind: input, shape index: {}]   ;;  %s5947_s5 = inlined_call_operand.vmem [shape: f32[1,3], index: 5, kind: input, shape index: {}]   ;;  %s5948_s6 = inlined_call_operand.vmem [shape: f32[2,16,16,4], index: 6, kind: output, shape index: {0}]   ;;  %s5949_s7 = inlined_call_operand.vmem [shape: f32[2,16,16,8], index: 7, kind: output, shape index: {1}]  }
   0x1   :  { %s30_s26 = sshll.u32 %s5947_s5, 4  ;;  %s31_s26 = int_to_ptr.vmem [resolvable:$true] %s30_s26 }
   0x2   :  { %s3659_s27 = scalar_lea.vmem %s31_s26, 16  ;;  %p3664_p1 = scmp.lt.s32.totalorder %s31_s26, %s31_s26 }
   0x3   :  { %p3660_p0 = scmp.ne.s32.totalorder %s31_s26, %s3659_s27  ;;  %p3665_p2 = scmp.lt.s32.totalorder %s3659_s27, %s3659_s27 }
   0x5   :  { %p3666_p3 = por %p3665_p2, %p3664_p1 }
   0x7   :  { %p3667_p4 = pnand %p3666_p3, %p3660_p0 }
   0x9   :  { %3670 = shalt.err (!%p3667_p4)
}
   0xa   :  { %s3673_s28 = smov [#allocation2]  }
   0xb   :  { %33 = dma.vmem_to_smem %s31_s26, 16, %s3673_s28, [#allocation3]  }
   0xc   :  { %3671 = dma.done.wait [#allocation3], 16  }
   0xd   :  { %3672 = vsyncadd [#allocation3], 4294967280 }
   0xe   :  { %37 = sfence }
   0xf   :  { %v106_v0 = vld [vmem:[%s5943_s1] sm:$0x3]  ;;  %vm371_vm0 = vcmask 1041408   ;;  %vm274_vm1 = vcmask 31744   ;;  %v3624_v3 = vld [vmem:[%s5942_s0 + $0x8] sm:$0xff]   ;;  %v3625_v4 = vld [vmem:[%s5942_s0 + $0x10] sm:$0xff]  }
  0x10   :  { %v3623_v1 = vld [vmem:[%s5942_s0] sm:$0xff]   ;;  %3614 = vmatprep.subr.msk.bf16.mxu0 %vm371_vm0, %v106_v0  ;;  %v373_v2 = vsel %vm371_vm0, %v106_v0, 0  ;;  %v3626_v5 = vld [vmem:[%s5942_s0 + $0x18] sm:$0xff]   ;;  %v3628_v7 = vld [vmem:[%s5942_s0 + $0x28] sm:$0xff]   ;;  %s39_s20 = sld [smem:[#allocation2]]  ;;  %s3307_s21 = sld [smem:[#allocation2 + $0x1]] }
  0x11   :  { %3479 = vmatpush3.bf16.msra.mxu0 %v373_v2  ;;  %3480 = vmatprep.mubr.msk.bf16.mxu0 %vm274_vm1, %v3623_v1  ;;  %v3627_v6 = vld [vmem:[%s5942_s0 + $0x20] sm:$0xff]   ;;  %v3629_v8 = vld [vmem:[%s5942_s0 + $0x30] sm:$0xff]   ;;  %v3630_v9 = vld [vmem:[%s5942_s0 + $0x38] sm:$0xff]   ;;  %s3674_s8 = smov 124   ;;  %s3675_s23 = smov 8  }
  0x12   :  { %v3631_v10 = vld [vmem:[%s5942_s0 + $0x40] sm:$0xff]   ;;  %v3632_v11 = vld [vmem:[%s5942_s0 + $0x48] sm:$0xff]   ;;  %v3633_v12 = vld [vmem:[%s5942_s0 + $0x50] sm:$0xff]   ;;  %s3677_s9 = smov 24   ;;  %s3678_s10 = smov 12  }
  0x13   :  { %v3634_v13 = vld [vmem:[%s5942_s0 + $0x58] sm:$0xff]   ;;  %v3635_v14 = vld [vmem:[%s5942_s0 + $0x60] sm:$0xff]   ;;  %v3636_v15 = vld [vmem:[%s5942_s0 + $0x68] sm:$0xff]  }
  0x14   :  { %3481 = vmatmul.mubr.msk.bf16.vlgmr.msra.gmra.mrb[0].mxu0 %vm274_vm1, %v3624_v3  ;;  %v3637_v16 = vld [vmem:[%s5942_s0 + $0x70] sm:$0xff]   ;;  %v3638_v17 = vld [vmem:[%s5942_s0 + $0x78] sm:$0xff]   ;;  %v3639_v18 = vld [vmem:[%s5942_s0 + $0x80] sm:$0xff]  }
  0x15   :  { %3484 = vmatprep.mubr.msk.bf16.mxu0 %vm274_vm1, %v3625_v4  ;;  %v3640_v19 = vld [vmem:[%s5942_s0 + $0x88] sm:$0xff]   ;;  %v3641_v20 = vld [vmem:[%s5942_s0 + $0x90] sm:$0xff]   ;;  %v3642_v21 = vld [vmem:[%s5942_s0 + $0x98] sm:$0xff]  }
  0x16   :  { %v3643_v22 = vld [vmem:[%s5942_s0 + $0xa0] sm:$0xff]   ;;  %v3644_v23 = vld [vmem:[%s5942_s0 + $0xa8] sm:$0xff]   ;;  %v3645_v24 = vld [vmem:[%s5942_s0 + $0xb0] sm:$0xff]   ;;  %v3861_v36 = vstv %s39_s20 }
  0x17   :  { %v3646_v25 = vld [vmem:[%s5942_s0 + $0xb8] sm:$0xff]   ;;  %v3647_v26 = vld [vmem:[%s5942_s0 + $0xc0] sm:$0xff]   ;;  %v3648_v27 = vld [vmem:[%s5942_s0 + $0xc8] sm:$0xff]   ;;  %v3863_v37 = vstv %s3307_s21 }
  0x18   :  { %v3649_v28 = vld [vmem:[%s5942_s0 + $0xd0] sm:$0xff]   ;;  %v3650_v29 = vld [vmem:[%s5942_s0 + $0xd8] sm:$0xff]   ;;  %v3651_v30 = vld [vmem:[%s5942_s0 + $0xe0] sm:$0xff]  }
  0x19   :  { %v3652_v31 = vld [vmem:[%s5942_s0 + $0xe8] sm:$0xff]   ;;  %v3653_v32 = vld [vmem:[%s5942_s0 + $0xf0] sm:$0xff]   ;;  %v3654_v33 = vld [vmem:[%s5942_s0 + $0xf8] sm:$0xff]  }
  0x1a   :  { %v3859_v34 = vld [vmem:[%s5944_s2] ss:$0 sm:$0xff] }
  0x1c   :  { %3485 = vmatmul.mubr.msk.bf16.gmra.mrb[4].mxu0 %vm274_vm1, %v3626_v5 }
  0x1d   :  { %3488 = vmatprep.mubr.msk.bf16.mxu0 %vm274_vm1, %v3627_v6 }
  0x24   :  { %3489 = vmatmul.mubr.msk.bf16.gmra.mrb[8].mxu0 %vm274_vm1, %v3628_v7 }
  0x25   :  { %3492 = vmatprep.mubr.msk.bf16.mxu0 %vm274_vm1, %v3629_v8 }
  0x2c   :  { %3493 = vmatmul.mubr.msk.bf16.gmra.mrb[12].mxu0 %vm274_vm1, %v3630_v9 }
  0x2d   :  { %3496 = vmatprep.mubr.msk.bf16.mxu0 %vm274_vm1, %v3631_v10 }
  0x34   :  { %3497 = vmatmul.mubr.msk.bf16.gmra.mrb[16].mxu0 %vm274_vm1, %v3632_v11 }
  0x35   :  { %3500 = vmatprep.mubr.msk.bf16.mxu0 %vm274_vm1, %v3633_v12 }
  0x3c   :  { %3501 = vmatmul.mubr.msk.bf16.gmra.mrb[20].mxu0 %vm274_vm1, %v3634_v13 }
  0x3d   :  { %3504 = vmatprep.mubr.msk.bf16.mxu0 %vm274_vm1, %v3635_v14 }
  0x44   :  { %3505 = vmatmul.mubr.msk.bf16.gmra.mrb[24].mxu0 %vm274_vm1, %v3636_v15 }
  0x45   :  { %3508 = vmatprep.mubr.msk.bf16.mxu0 %vm274_vm1, %v3637_v16 }
  0x4c   :  { %3509 = vmatmul.mubr.msk.bf16.gmra.mrb[28].mxu0 %vm274_vm1, %v3638_v17 }
  0x4d   :  { %3512 = vmatprep.mubr.msk.bf16.mxu0 %vm274_vm1, %v3639_v18 }
  0x54   :  { %3513 = vmatmul.mubr.msk.bf16.gmra.mrb[32].mxu0 %vm274_vm1, %v3640_v19 }
  0x55   :  { %3516 = vmatprep.mubr.msk.bf16.mxu0 %vm274_vm1, %v3641_v20 }
  0x5c   :  { %3517 = vmatmul.mubr.msk.bf16.gmra.mrb[36].mxu0 %vm274_vm1, %v3642_v21 }
  0x5d   :  { %3520 = vmatprep.mubr.msk.bf16.mxu0 %vm274_vm1, %v3643_v22 }
  0x64   :  { %3521 = vmatmul.mubr.msk.bf16.gmra.mrb[40].mxu0 %vm274_vm1, %v3644_v23 }
  0x65   :  { %3524 = vmatprep.mubr.msk.bf16.mxu0 %vm274_vm1, %v3645_v24 }
  0x6c   :  { %3525 = vmatmul.mubr.msk.bf16.gmra.mrb[44].mxu0 %vm274_vm1, %v3646_v25 }
  0x6d   :  { %3528 = vmatprep.mubr.msk.bf16.mxu0 %vm274_vm1, %v3647_v26 }
  0x74   :  { %3529 = vmatmul.mubr.msk.bf16.gmra.mrb[48].mxu0 %vm274_vm1, %v3648_v27 }
  0x75   :  { %3532 = vmatprep.mubr.msk.bf16.mxu0 %vm274_vm1, %v3649_v28 }
  0x7c   :  { %3533 = vmatmul.mubr.msk.bf16.gmra.mrb[52].mxu0 %vm274_vm1, %v3650_v29 }
  0x7d   :  { %3536 = vmatprep.mubr.msk.bf16.mxu0 %vm274_vm1, %v3651_v30 }
  0x84   :  { %3537 = vmatmul.mubr.msk.bf16.gmra.mrb[56].mxu0 %vm274_vm1, %v3652_v31 }
  0x85   :  { %3540 = vmatprep.mubr.msk.bf16.mxu0 %vm274_vm1, %v3653_v32 }
  0x8c   :  { %3541 = vmatmul.mubr.msk.bf16.gmra.mrb[60].mxu0 %vm274_vm1, %v3654_v33 }
  0xe7   :  { %v3482_v35 = vpop.f32.mrb[0].mxu0 }
  0xe8   :  { %v418_v38 = vadd.f32 %v3482_v35, %v3859_v34  ;;  %v409_v39 = vpop.f32.mrb[1].mxu0 }
  0xe9   :  { %v410_v40 = vadd.f32 %v3859_v34, %v409_v39  ;;  %v3483_v41 = vpop.f32.mrb[2].mxu0 }
  0xea   :  { %v731_v42 = vmul.f32 %v3861_v36, %v418_v38  ;;  %v421_v43 = vadd.f32 %v3483_v41, %v3859_v34  ;;  %v412_v44 = vpop.f32.mrb[3].mxu0  ;;  %vm666_vm2 = vcmp.ge.f32.partialorder %v418_v38, 0.0  ;;  %v860_v45 = vmul.f32 %v3863_v37, %v418_v38 }
  0xeb   :  { %v729_v46 = vmul.f32 %v3861_v36, %v410_v40  ;;  %v413_v47 = vadd.f32 %v3859_v34, %v412_v44  ;;  %vm664_vm3 = vcmp.ge.f32.partialorder %v410_v40, 0.0  ;;  %v858_v48 = vmul.f32 %v3863_v37, %v410_v40 }
  0xec   :  { %v732_v49 = vmul.f32 %v3861_v36, %v421_v43  ;;  %vm667_vm4 = vcmp.ge.f32.partialorder %v421_v43, 0.0  ;;  %v861_v50 = vmul.f32 %v3863_v37, %v421_v43  ;;  %v795_v52 = vsel %vm666_vm2, %v418_v38, %v731_v42 }
  0xed   :  { %v730_v51 = vmul.f32 %v3861_v36, %v413_v47  ;;  %vm665_vm5 = vcmp.ge.f32.partialorder %v413_v47, 0.0  ;;  %v859_v53 = vmul.f32 %v3863_v37, %v413_v47  ;;  %v924_v54 = vsel %vm666_vm2, %v418_v38, %v860_v45  ;;  %3172 = vst.msk [vmem:[%s5948_s6 + $0x10] sm:$0xff] %vm274_vm1, %v795_v52 }
  0xee   :  { %v925_v55 = vsel %vm667_vm4, %v421_v43, %v861_v50  ;;  %v796_v56 = vsel %vm667_vm4, %v421_v43, %v732_v49  ;;  %v793_v57 = vsel %vm664_vm3, %v410_v40, %v729_v46  ;;  %v922_v60 = vsel %vm664_vm3, %v410_v40, %v858_v48 }
  0xef   :  { %v3486_v58 = vpop.f32.mrb[4].mxu0  ;;  %v987_v59 = vpack.c.bf16 %v925_v55, %v924_v54  ;;  %3173 = vst.msk [vmem:[%s5948_s6 + $0x18] sm:$0xff] %vm274_vm1, %v796_v56  ;;  %v923_v61 = vsel %vm665_vm5, %v413_v47, %v859_v53  ;;  %v794_v62 = vsel %vm665_vm5, %v413_v47, %v730_v51  ;;  %3170 = vst.msk [vmem:[%s5948_s6] sm:$0xff] %vm274_vm1, %v793_v57 }
  0xf0   :  { %v434_v63 = vadd.f32 %v3486_v58, %v3859_v34  ;;  %v425_v0 = vpop.f32.mrb[5].mxu0  ;;  %v986_v1 = vpack.c.bf16 %v923_v61, %v922_v60  ;;  %3171 = vst.msk [vmem:[%s5948_s6 + $0x8] sm:$0xff] %vm274_vm1, %v794_v62 }
  0xf1   :  { %v426_v2 = vadd.f32 %v3859_v34, %v425_v0  ;;  %v3487_v3 = vpop.f32.mrb[6].mxu0  ;;  %v1026_v4 = vshrl.u32 %v987_v59, 16  ;;  %v1029_v8 = vshll.u32 %v987_v59, 16 }
  0xf2   :  { %v735_v5 = vmul.f32 %v3861_v36, %v434_v63  ;;  %v437_v6 = vadd.f32 %v3487_v3, %v3859_v34  ;;  %v428_v7 = vpop.f32.mrb[7].mxu0  ;;  %v1019_v9 = vshrl.u32 %v986_v1, 16  ;;  %v1022_v15 = vshll.u32 %v986_v1, 16 }
  0xf3   :  { %v733_v10 = vmul.f32 %v3861_v36, %v426_v2  ;;  %v429_v11 = vadd.f32 %v3859_v34, %v428_v7  ;;  %v1028_v12 = vrot.slane %v1026_v4, 7  ;;  %vm668_vm6 = vcmp.ge.f32.partialorder %v426_v2, 0.0 }
  0xf4   :  { %v736_v13 = vmul.f32 %v3861_v36, %v437_v6  ;;  %v1021_v14 = vrot.slane %v1019_v9, 7  ;;  %v862_v16 = vmul.f32 %v3863_v37, %v426_v2  ;;  %vm670_vm8 = vcmp.ge.f32.partialorder %v434_v63, 0.0 }
  0xf5   :  { %v734_v17 = vmul.f32 %v3861_v36, %v429_v11  ;;  %1248 = vrot.lane.b32.xlu0 %v1028_v12, %s3674_s8  ;;  %vm669_vm7 = vcmp.ge.f32.partialorder %v429_v11, 0.0  ;;  %v863_v18 = vmul.f32 %v3863_v37, %v429_v11  ;;  %v1031_v19 = vor.u32 %v1029_v8, %v1028_v12 }
  0xf6   :  { %1244 = vrot.lane.b32.xlu1 %v1021_v14, %s3674_s8  ;;  %v926_v20 = vsel %vm668_vm6, %v426_v2, %v862_v16  ;;  %v797_v21 = vsel %vm668_vm6, %v426_v2, %v733_v10  ;;  %vm671_vm9 = vcmp.ge.f32.partialorder %v437_v6, 0.0  ;;  %v864_v25 = vmul.f32 %v3863_v37, %v434_v63 }
  0xf7   :  { %v3490_v22 = vpop.f32.mrb[8].mxu0  ;;  %v927_v23 = vsel %vm669_vm7, %v429_v11, %v863_v18  ;;  %v798_v24 = vsel %vm669_vm7, %v429_v11, %v734_v17  ;;  %3174 = vst.msk [vmem:[%s5948_s6 + $0x20] sm:$0xff] %vm274_vm1, %v797_v21  ;;  %v865_v26 = vmul.f32 %v3863_v37, %v437_v6  ;;  %v799_v30 = vsel %vm670_vm8, %v434_v63, %v735_v5 }
  0xf8   :  { %v3914_v27 = vadd.f32 %v3490_v22, %v3859_v34  ;;  %v441_v28 = vpop.f32.mrb[9].mxu0  ;;  %v988_v29 = vpack.c.bf16 %v927_v23, %v926_v20  ;;  %3175 = vst.msk [vmem:[%s5948_s6 + $0x28] sm:$0xff] %vm274_vm1, %v798_v24  ;;  %v800_v31 = vsel %vm671_vm9, %v437_v6, %v736_v13  ;;  %v928_v35 = vsel %vm670_vm8, %v434_v63, %v864_v25 }
  0xf9   :  { %v442_v32 = vadd.f32 %v3859_v34, %v441_v28  ;;  %v3491_v33 = vpop.f32.mrb[10].mxu0  ;;  %1246 = vrot.lane.b32.xlu0 %v1031_v19, %s3674_s8  ;;  %v929_v38 = vsel %vm671_vm9, %v437_v6, %v865_v26  ;;  %3176 = vst.msk [vmem:[%s5948_s6 + $0x30] sm:$0xff] %vm274_vm1, %v799_v30  ;;  %3177 = vst.msk [vmem:[%s5948_s6 + $0x38] sm:$0xff] %vm274_vm1, %v800_v31  ;;  %v1024_v39 = vor.u32 %v1022_v15, %v1021_v14 }
  0xfa   :  { %v453_v40 = vadd.f32 %v3491_v33, %v3859_v34  ;;  %v444_v41 = vpop.f32.mrb[11].mxu0  ;;  %v1033_v42 = vshrl.u32 %v988_v29, 16  ;;  %v989_v43 = vpack.c.bf16 %v929_v38, %v928_v35  ;;  %v739_v44 = vmul.f32 %v3861_v36, %v3914_v27 }
  0xfb   :  { %v737_v45 = vmul.f32 %v3861_v36, %v442_v32  ;;  %v445_v46 = vadd.f32 %v3859_v34, %v444_v41  ;;  %vm672_vm10 = vcmp.ge.f32.partialorder %v442_v32, 0.0  ;;  %v1036_v50 = vshll.u32 %v988_v29, 16 }
  0xfc   :  { %v740_v47 = vmul.f32 %v3861_v36, %v453_v40  ;;  %v1035_v48 = vrot.slane %v1033_v42, 7  ;;  %v1040_v49 = vshrl.u32 %v989_v43, 16  ;;  %v866_v52 = vmul.f32 %v3863_v37, %v442_v32 }
  0xfd   :  { %v738_v51 = vmul.f32 %v3861_v36, %v445_v46  ;;  %1242 = vrot.lane.b32.xlu0 %v1024_v39, %s3674_s8  ;;  %vm673_vm11 = vcmp.ge.f32.partialorder %v445_v46, 0.0  ;;  %v867_v53 = vmul.f32 %v3863_v37, %v445_v46  ;;  %v1043_v55 = vshll.u32 %v989_v43, 16 }
  0xfe   :  { %1252 = vrot.lane.b32.xlu1 %v1035_v48, %s3674_s8  ;;  %v1042_v54 = vrot.slane %v1040_v49, 7  ;;  %v801_v56 = vsel %vm672_vm10, %v442_v32, %v737_v45  ;;  %vm674_vm12 = vcmp.ge.f32.partialorder %v3914_v27, 0.0  ;;  %v930_v58 = vsel %vm672_vm10, %v442_v32, %v866_v52 }
  0xff   :  { %v3494_v57 = vpop.f32.mrb[12].mxu0  ;;  %v931_v59 = vsel %vm673_vm11, %v445_v46, %v867_v53  ;;  %v802_v60 = vsel %vm673_vm11, %v445_v46, %v738_v51  ;;  %3178 = vst.msk [vmem:[%s5948_s6 + $0x40] sm:$0xff] %vm274_vm1, %v801_v56  ;;  %vm675_vm13 = vcmp.ge.f32.partialorder %v453_v40, 0.0  ;;  %v1038_v63 = vor.u32 %v1036_v50, %v1035_v48 }
 0x100   :  { %v3953_v61 = vadd.f32 %v3494_v57, %v3859_v34  ;;  %v457_v62 = vpop.f32.mrb[13].mxu0  ;;  %v990_v0 = vpack.c.bf16 %v931_v59, %v930_v58  ;;  %3179 = vst.msk [vmem:[%s5948_s6 + $0x48] sm:$0xff] %vm274_vm1, %v802_v60  ;;  %v868_v1 = vmul.f32 %v3863_v37, %v3914_v27  ;;  %v869_v4 = vmul.f32 %v3863_v37, %v453_v40 }
 0x101   :  { %v458_v2 = vadd.f32 %v3859_v34, %v457_v62  ;;  %v3495_v3 = vpop.f32.mrb[14].mxu0  ;;  %1256 = vrot.lane.b32.xlu0 %v1042_v54, %s3674_s8  ;;  %v803_v5 = vsel %vm674_vm12, %v3914_v27, %v739_v44  ;;  %v804_v6 = vsel %vm675_vm13, %v453_v40, %v740_v47  ;;  %v1045_v10 = vor.u32 %v1043_v55, %v1042_v54 }
 0x102   :  { %v743_v7 = vmul.f32 %v3861_v36, %v3953_v61  ;;  %v469_v8 = vadd.f32 %v3495_v3, %v3859_v34  ;;  %v460_v9 = vpop.f32.mrb[15].mxu0  ;;  %1250 = vrot.lane.b32.xlu1 %v1038_v63, %s3674_s8  ;;  %v1047_v11 = vshrl.u32 %v990_v0, 16  ;;  %3180 = vst.msk [vmem:[%s5948_s6 + $0x50] sm:$0xff] %vm274_vm1, %v803_v5  ;;  %3181 = vst.msk [vmem:[%s5948_s6 + $0x58] sm:$0xff] %vm274_vm1, %v804_v6  ;;  %v1050_v18 = vshll.u32 %v990_v0, 16 }
 0x103   :  { %v741_v12 = vmul.f32 %v3861_v36, %v458_v2  ;;  %v461_v13 = vadd.f32 %v3859_v34, %v460_v9  ;;  %v932_v14 = vsel %vm674_vm12, %v3914_v27, %v868_v1  ;;  %v933_v15 = vsel %vm675_vm13, %v453_v40, %v869_v4 }
 0x104   :  { %v1049_v16 = vrot.slane %v1047_v11, 7  ;;  %v991_v17 = vpack.c.bf16 %v933_v15, %v932_v14  ;;  %vm676_vm14 = vcmp.ge.f32.partialorder %v458_v2, 0.0  ;;  %v870_v20 = vmul.f32 %v3863_v37, %v458_v2 }
 0x105   :  { %v742_v19 = vmul.f32 %v3861_v36, %v461_v13  ;;  %1254 = vrot.lane.b32.xlu0 %v1045_v10, %s3674_s8  ;;  %vm677_vm15 = vcmp.ge.f32.partialorder %v461_v13, 0.0  ;;  %v871_v21 = vmul.f32 %v3863_v37, %v461_v13  ;;  %v744_v22 = vmul.f32 %v3861_v36, %v469_v8 }
 0x106   :  { %1260 = vrot.lane.b32.xlu1 %v1049_v16, %s3674_s8  ;;  %v1054_v23 = vshrl.u32 %v991_v17, 16  ;;  %v1052_v24 = vor.u32 %v1050_v18, %v1049_v16  ;;  %v805_v25 = vsel %vm676_vm14, %v458_v2, %v741_v12  ;;  %v934_v27 = vsel %vm676_vm14, %v458_v2, %v870_v20 }
 0x107   :  { %v3498_v26 = vpop.f32.mrb[16].mxu0  ;;  %v935_v28 = vsel %vm677_vm15, %v461_v13, %v871_v21  ;;  %v806_v29 = vsel %vm677_vm15, %v461_v13, %v742_v19  ;;  %3182 = vst.msk [vmem:[%s5948_s6 + $0x60] sm:$0xff] %vm274_vm1, %v805_v25  ;;  %vm678_vm2 = vcmp.ge.f32.partialorder %v3953_v61, 0.0  ;;  %vm679_vm3 = vcmp.ge.f32.partialorder %v469_v8, 0.0 }
 0x108   :  { %v3998_v30 = vadd.f32 %v3498_v26, %v3859_v34  ;;  %v473_v31 = vpop.f32.mrb[17].mxu0  ;;  %v1056_v32 = vrot.slane %v1054_v23, 7  ;;  %v992_v33 = vpack.c.bf16 %v935_v28, %v934_v27  ;;  %3183 = vst.msk [vmem:[%s5948_s6 + $0x68] sm:$0xff] %vm274_vm1, %v806_v29  ;;  %v872_v39 = vmul.f32 %v3863_v37, %v3953_v61 }
 0x109   :  { %v474_v35 = vadd.f32 %v3859_v34, %v473_v31  ;;  %v3499_v38 = vpop.f32.mrb[18].mxu0  ;;  %v873_v40 = vmul.f32 %v3863_v37, %v469_v8  ;;  %v807_v41 = vsel %vm678_vm2, %v3953_v61, %v743_v7  ;;  %v1057_v45 = vshll.u32 %v991_v17, 16 }
 0x10a   :  { %v747_v42 = vmul.f32 %v3861_v36, %v3998_v30  ;;  %v485_v43 = vadd.f32 %v3499_v38, %v3859_v34  ;;  %1264 = vrot.lane.b32.xlu0 %v1056_v32, %s3674_s8  ;;  %v476_v44 = vpop.f32.mrb[19].mxu0  ;;  %1258 = vrot.lane.b32.xlu1 %v1052_v24, %s3674_s8  ;;  %v1061_v46 = vshrl.u32 %v992_v33, 16  ;;  %3184 = vst.msk [vmem:[%s5948_s6 + $0x70] sm:$0xff] %vm274_vm1, %v807_v41  ;;  %v1064_v56 = vshll.u32 %v992_v33, 16 }
 0x10b   :  { %v745_v47 = vmul.f32 %v3861_v36, %v474_v35  ;;  %v477_v48 = vadd.f32 %v3859_v34, %v476_v44  ;;  %v936_v49 = vsel %vm678_vm2, %v3953_v61, %v872_v39  ;;  %v937_v50 = vsel %vm679_vm3, %v469_v8, %v873_v40 }
 0x10c   :  { %v1059_v51 = vor.u32 %v1057_v45, %v1056_v32  ;;  %v1063_v52 = vrot.slane %v1061_v46, 7  ;;  %v993_v53 = vpack.c.bf16 %v937_v50, %v936_v49  ;;  %v808_v54 = vsel %vm679_vm3, %v469_v8, %v744_v22 }
 0x10d   :  { %v746_v55 = vmul.f32 %v3861_v36, %v477_v48  ;;  %3185 = vst.msk [vmem:[%s5948_s6 + $0x78] sm:$0xff] %vm274_vm1, %v808_v54  ;;  %vm680_vm4 = vcmp.ge.f32.partialorder %v474_v35, 0.0  ;;  %vm681_vm5 = vcmp.ge.f32.partialorder %v477_v48, 0.0  ;;  %v748_v57 = vmul.f32 %v3861_v36, %v485_v43 }
 0x10e   :  { %1262 = vrot.lane.b32.xlu0 %v1059_v51, %s3674_s8  ;;  %1268 = vrot.lane.b32.xlu1 %v1063_v52, %s3674_s8  ;;  %v1068_v58 = vshrl.u32 %v993_v53, 16  ;;  %v874_v59 = vmul.f32 %v3863_v37, %v474_v35  ;;  %v875_v60 = vmul.f32 %v3863_v37, %v477_v48  ;;  %v1066_v62 = vor.u32 %v1064_v56, %v1063_v52 }
 0x10f   :  { %v3502_v61 = vpop.f32.mrb[20].mxu0  ;;  %v809_v63 = vsel %vm680_vm4, %v474_v35, %v745_v47  ;;  %v810_v0 = vsel %vm681_vm5, %v477_v48, %v746_v55  ;;  %vm682_vm6 = vcmp.ge.f32.partialorder %v3998_v30, 0.0  ;;  %vm683_vm7 = vcmp.ge.f32.partialorder %v485_v43, 0.0 }
 0x110   :  { %v4041_v1 = vadd.f32 %v3502_v61, %v3859_v34  ;;  %v489_v2 = vpop.f32.mrb[21].mxu0  ;;  %v1070_v3 = vrot.slane %v1068_v58, 7  ;;  %v938_v4 = vsel %vm680_vm4, %v474_v35, %v874_v59  ;;  %v939_v5 = vsel %vm681_vm5, %v477_v48, %v875_v60  ;;  %3186 = vst.msk [vmem:[%s5948_s6 + $0x80] sm:$0xff] %vm274_vm1, %v809_v63  ;;  %3187 = vst.msk [vmem:[%s5948_s6 + $0x88] sm:$0xff] %vm274_vm1, %v810_v0 }
 0x111   :  { %v490_v6 = vadd.f32 %v3859_v34, %v489_v2  ;;  %v3503_v7 = vpop.f32.mrb[22].mxu0  ;;  %v994_v8 = vpack.c.bf16 %v939_v5, %v938_v4  ;;  %v876_v9 = vmul.f32 %v3863_v37, %v3998_v30  ;;  %v1071_v13 = vshll.u32 %v993_v53, 16 }
 0x112   :  { %v751_v10 = vmul.f32 %v3861_v36, %v4041_v1  ;;  %v501_v11 = vadd.f32 %v3503_v7, %v3859_v34  ;;  %1272 = vrot.lane.b32.xlu0 %v1070_v3, %s3674_s8  ;;  %v492_v12 = vpop.f32.mrb[23].mxu0  ;;  %1266 = vrot.lane.b32.xlu1 %v1066_v62, %s3674_s8  ;;  %v877_v17 = vmul.f32 %v3863_v37, %v485_v43  ;;  %vm686_vm10 = vcmp.ge.f32.partialorder %v4041_v1, 0.0 }
 0x113   :  { %v749_v14 = vmul.f32 %v3861_v36, %v490_v6  ;;  %v493_v15 = vadd.f32 %v3859_v34, %v492_v12  ;;  %v1075_v16 = vshrl.u32 %v994_v8, 16  ;;  %v1073_v18 = vor.u32 %v1071_v13, %v1070_v3 }
 0x114   :  { %v940_v19 = vsel %vm682_vm6, %v3998_v30, %v876_v9  ;;  %v811_v20 = vsel %vm682_vm6, %v3998_v30, %v747_v42  ;;  %v812_v21 = vsel %vm683_vm7, %v485_v43, %v748_v57  ;;  %v941_v24 = vsel %vm683_vm7, %v485_v43, %v877_v17 }
 0x115   :  { %v750_v22 = vmul.f32 %v3861_v36, %v493_v15  ;;  %v1077_v23 = vrot.slane %v1075_v16, 7  ;;  %3188 = vst.msk [vmem:[%s5948_s6 + $0x90] sm:$0xff] %vm274_vm1, %v811_v20  ;;  %3189 = vst.msk [vmem:[%s5948_s6 + $0x98] sm:$0xff] %vm274_vm1, %v812_v21  ;;  %v1078_v25 = vshll.u32 %v994_v8, 16  ;;  %v995_v26 = vpack.c.bf16 %v941_v24, %v940_v19 }
 0x116   :  { %1270 = vrot.lane.b32.xlu0 %v1073_v18, %s3674_s8  ;;  %vm684_vm8 = vcmp.ge.f32.partialorder %v490_v6, 0.0  ;;  %vm685_vm9 = vcmp.ge.f32.partialorder %v493_v15, 0.0  ;;  %v878_v27 = vmul.f32 %v3863_v37, %v490_v6  ;;  %v879_v29 = vmul.f32 %v3863_v37, %v493_v15 }
 0x117   :  { %1276 = vrot.lane.b32.xlu1 %v1077_v23, %s3674_s8  ;;  %v3506_v28 = vpop.f32.mrb[24].mxu0  ;;  %v813_v30 = vsel %vm684_vm8, %v490_v6, %v749_v14  ;;  %v814_v31 = vsel %vm685_vm9, %v493_v15, %v750_v22  ;;  %v752_v32 = vmul.f32 %v3861_v36, %v501_v11  ;;  %v1082_v38 = vshrl.u32 %v995_v26, 16 }
 0x118   :  { %v4090_v33 = vadd.f32 %v3506_v28, %v3859_v34  ;;  %v505_v35 = vpop.f32.mrb[25].mxu0  ;;  %v1080_v39 = vor.u32 %v1078_v25, %v1077_v23  ;;  %3190 = vst.msk [vmem:[%s5948_s6 + $0xa0] sm:$0xff] %vm274_vm1, %v813_v30  ;;  %3191 = vst.msk [vmem:[%s5948_s6 + $0xa8] sm:$0xff] %vm274_vm1, %v814_v31  ;;  %v942_v42 = vsel %vm684_vm8, %v490_v6, %v878_v27  ;;  %v1085_v47 = vshll.u32 %v995_v26, 16 }
 0x119   :  { %v506_v40 = vadd.f32 %v3859_v34, %v505_v35  ;;  %v3507_v41 = vpop.f32.mrb[26].mxu0  ;;  %v943_v43 = vsel %vm685_vm9, %v493_v15, %v879_v29  ;;  %v880_v44 = vmul.f32 %v3863_v37, %v4041_v1  ;;  %v1084_v45 = vrot.slane %v1082_v38, 7 }
 0x11a   :  { %v508_v46 = vpop.f32.mrb[27].mxu0  ;;  %v996_v48 = vpack.c.bf16 %v943_v43, %v942_v42  ;;  %vm687_vm11 = vcmp.ge.f32.partialorder %v501_v11, 0.0  ;;  %v517_v50 = vadd.f32 %v3507_v41, %v3859_v34  ;;  %v881_v52 = vmul.f32 %v3863_v37, %v501_v11 }
 0x11b   :  { %v753_v49 = vmul.f32 %v3861_v36, %v506_v40  ;;  %v509_v51 = vadd.f32 %v3859_v34, %v508_v46  ;;  %1274 = vrot.lane.b32.xlu1 %v1080_v39, %s3674_s8  ;;  %1280 = vrot.lane.b32.xlu0 %v1084_v45, %s3674_s8  ;;  %v1087_v53 = vor.u32 %v1085_v47, %v1084_v45  ;;  %vm688_vm12 = vcmp.ge.f32.partialorder %v506_v40, 0.0 }
 0x11c   :  { %v1089_v54 = vshrl.u32 %v996_v48, 16  ;;  %v944_v55 = vsel %vm686_vm10, %v4041_v1, %v880_v44  ;;  %v815_v56 = vsel %vm686_vm10, %v4041_v1, %v751_v10  ;;  %v945_v58 = vsel %vm687_vm11, %v501_v11, %v881_v52 }
 0x11d   :  { %v754_v57 = vmul.f32 %v3861_v36, %v509_v51  ;;  %v816_v59 = vsel %vm687_vm11, %v501_v11, %v752_v32  ;;  %3192 = vst.msk [vmem:[%s5948_s6 + $0xb0] sm:$0xff] %vm274_vm1, %v815_v56  ;;  %v1092_v60 = vshll.u32 %v996_v48, 16  ;;  %v997_v62 = vpack.c.bf16 %v945_v58, %v944_v55 }
 0x11e   :  { %v1091_v61 = vrot.slane %v1089_v54, 7  ;;  %3193 = vst.msk [vmem:[%s5948_s6 + $0xb8] sm:$0xff] %vm274_vm1, %v816_v59  ;;  %vm689_vm13 = vcmp.ge.f32.partialorder %v509_v51, 0.0  ;;  %v882_v0 = vmul.f32 %v3863_v37, %v506_v40  ;;  %v883_v1 = vmul.f32 %v3863_v37, %v509_v51 }
 0x11f   :  { %v3510_v63 = vpop.f32.mrb[28].mxu0  ;;  %v817_v2 = vsel %vm688_vm12, %v506_v40, %v753_v49  ;;  %v818_v3 = vsel %vm689_vm13, %v509_v51, %v754_v57  ;;  %v755_v4 = vmul.f32 %v3861_v36, %v4090_v33  ;;  %v756_v5 = vmul.f32 %v3861_v36, %v517_v50  ;;  %1278 = vrot.lane.b32.xlu0 %v1087_v53, %s3674_s8 }
 0x120   :  { %1284 = vrot.lane.b32.xlu1 %v1091_v61, %s3674_s8  ;;  %v530_v6 = vadd.f32 %v3510_v63, %v3859_v34  ;;  %v521_v7 = vpop.f32.mrb[29].mxu0  ;;  %v1096_v8 = vshrl.u32 %v997_v62, 16  ;;  %3194 = vst.msk [vmem:[%s5948_s6 + $0xc0] sm:$0xff] %vm274_vm1, %v817_v2  ;;  %3195 = vst.msk [vmem:[%s5948_s6 + $0xc8] sm:$0xff] %vm274_vm1, %v818_v3  ;;  %v1094_v10 = vor.u32 %v1092_v60, %v1091_v61  ;;  %v1099_v11 = vshll.u32 %v997_v62, 16 }
 0x121   :  { %v3511_v9 = vpop.f32.mrb[30].mxu0  ;;  %v946_v12 = vsel %vm688_vm12, %v506_v40, %v882_v0  ;;  %v947_v13 = vsel %vm689_vm13, %v509_v51, %v883_v1  ;;  %vm690_vm14 = vcmp.ge.f32.partialorder %v4090_v33, 0.0  ;;  %v522_v19 = vadd.f32 %v3859_v34, %v521_v7 }
 0x122   :  { %v533_v14 = vadd.f32 %v3511_v9, %v3859_v34  ;;  %v1098_v15 = vrot.slane %v1096_v8, 7  ;;  %v524_v16 = vpop.f32.mrb[31].mxu0  ;;  %v998_v17 = vpack.c.bf16 %v947_v13, %v946_v12  ;;  %v759_v18 = vmul.f32 %v3861_v36, %v530_v6 }
 0x123   :  { %vm691_vm15 = vcmp.ge.f32.partialorder %v517_v50, 0.0  ;;  %v884_v20 = vmul.f32 %v3863_v37, %v4090_v33  ;;  %v525_v22 = vadd.f32 %v3859_v34, %v524_v16  ;;  %v885_v24 = vmul.f32 %v3863_v37, %v517_v50 }
 0x124   :  { %v760_v21 = vmul.f32 %v3861_v36, %v533_v14  ;;  %1288 = vrot.lane.b32.xlu0 %v1098_v15, %s3674_s8  ;;  %1282 = vrot.lane.b32.xlu1 %v1094_v10, %s3674_s8  ;;  %v1103_v23 = vshrl.u32 %v998_v17, 16  ;;  %v1101_v25 = vor.u32 %v1099_v11, %v1098_v15  ;;  %v819_v27 = vsel %vm690_vm14, %v4090_v33, %v755_v4 }
 0x125   :  { %v948_v26 = vsel %vm690_vm14, %v4090_v33, %v884_v20  ;;  %v820_v28 = vsel %vm691_vm15, %v517_v50, %v756_v5  ;;  %v949_v30 = vsel %vm691_vm15, %v517_v50, %v885_v24  ;;  %3196 = vst.msk [vmem:[%s5948_s6 + $0xd0] sm:$0xff] %vm274_vm1, %v819_v27  ;;  %v1106_v31 = vshll.u32 %v998_v17, 16 }
 0x126   :  { %v1105_v29 = vrot.slane %v1103_v23, 7  ;;  %3197 = vst.msk [vmem:[%s5948_s6 + $0xd8] sm:$0xff] %vm274_vm1, %v820_v28  ;;  %vm694_vm2 = vcmp.ge.f32.partialorder %v530_v6, 0.0  ;;  %v999_v35 = vpack.c.bf16 %v949_v30, %v948_v26  ;;  %vm695_vm3 = vcmp.ge.f32.partialorder %v533_v14, 0.0 }
 0x127   :  { %v3514_v32 = vpop.f32.mrb[32].mxu0  ;;  %v888_v33 = vmul.f32 %v3863_v37, %v530_v6  ;;  %v889_v38 = vmul.f32 %v3863_v37, %v533_v14  ;;  %v757_v39 = vmul.f32 %v3861_v36, %v522_v19  ;;  %v823_v41 = vsel %vm694_vm2, %v530_v6, %v759_v18 }
 0x128   :  { %1286 = vrot.lane.b32.xlu0 %v1101_v25, %s3674_s8  ;;  %1292 = vrot.lane.b32.xlu1 %v1105_v29, %s3674_s8  ;;  %v537_v40 = vpop.f32.mrb[33].mxu0  ;;  %v758_v42 = vmul.f32 %v3861_v36, %v525_v22  ;;  %v1110_v45 = vshrl.u32 %v999_v35, 16  ;;  %v1108_v46 = vor.u32 %v1106_v31, %v1105_v29  ;;  %3200 = vst.msk [vmem:[%s5948_s6 + $0xf0] sm:$0xff] %vm274_vm1, %v823_v41  ;;  %vm692_vm4 = vcmp.ge.f32.partialorder %v522_v19, 0.0 }
 0x129   :  { %v538_v43 = vadd.f32 %v3859_v34, %v537_v40  ;;  %v3515_v44 = vpop.f32.mrb[34].mxu0  ;;  %v952_v48 = vsel %vm694_vm2, %v530_v6, %v888_v33  ;;  %v953_v49 = vsel %vm695_vm3, %v533_v14, %v889_v38  ;;  %v824_v50 = vsel %vm695_vm3, %v533_v14, %v760_v21 }
 0x12a   :  { %v540_v47 = vpop.f32.mrb[35].mxu0  ;;  %v1112_v51 = vrot.slane %v1110_v45, 7  ;;  %v1113_v53 = vshll.u32 %v999_v35, 16  ;;  %v1001_v54 = vpack.c.bf16 %v953_v49, %v952_v48  ;;  %3201 = vst.msk [vmem:[%s5948_s6 + $0xf8] sm:$0xff] %vm274_vm1, %v824_v50  ;;  %vm693_vm5 = vcmp.ge.f32.partialorder %v525_v22, 0.0 }
 0x12b   :  { %v541_v52 = vadd.f32 %v3859_v34, %v540_v47  ;;  %v761_v55 = vmul.f32 %v3861_v36, %v538_v43  ;;  %v886_v56 = vmul.f32 %v3863_v37, %v522_v19  ;;  %v887_v57 = vmul.f32 %v3863_v37, %v525_v22 }
 0x12c   :  { %1290 = vrot.lane.b32.xlu1 %v1108_v46, %s3674_s8  ;;  %v546_v58 = vadd.f32 %v3514_v32, %v3859_v34  ;;  %v549_v59 = vadd.f32 %v3515_v44, %v3859_v34  ;;  %1296 = vrot.lane.b32.xlu0 %v1112_v51, %s3674_s8  ;;  %v1115_v60 = vor.u32 %v1113_v53, %v1112_v51  ;;  %v1124_v61 = vshrl.u32 %v1001_v54, 16 }
 0x12d   :  { %v950_v62 = vsel %vm692_vm4, %v522_v19, %v886_v56  ;;  %v951_v63 = vsel %vm693_vm5, %v525_v22, %v887_v57  ;;  %v821_v0 = vsel %vm692_vm4, %v522_v19, %v757_v39  ;;  %v822_v1 = vsel %vm693_vm5, %v525_v22, %v758_v42 }
 0x12e   :  { %v1126_v2 = vrot.slane %v1124_v61, 7  ;;  %v1000_v4 = vpack.c.bf16 %v951_v63, %v950_v62  ;;  %3198 = vst.msk [vmem:[%s5948_s6 + $0xe0] sm:$0xff] %vm274_vm1, %v821_v0  ;;  %3199 = vst.msk [vmem:[%s5948_s6 + $0xe8] sm:$0xff] %vm274_vm1, %v822_v1  ;;  %vm696_vm6 = vcmp.ge.f32.partialorder %v538_v43, 0.0  ;;  %vm697_vm7 = vcmp.ge.f32.partialorder %v541_v52, 0.0 }
 0x12f   :  { %v3518_v3 = vpop.f32.mrb[36].mxu0  ;;  %v762_v5 = vmul.f32 %v3861_v36, %v541_v52  ;;  %v890_v7 = vmul.f32 %v3863_v37, %v538_v43  ;;  %v891_v8 = vmul.f32 %v3863_v37, %v541_v52  ;;  %v825_v9 = vsel %vm696_vm6, %v538_v43, %v761_v55 }
 0x130   :  { %v553_v6 = vpop.f32.mrb[37].mxu0  ;;  %1294 = vrot.lane.b32.xlu0 %v1115_v60, %s3674_s8  ;;  %1304 = vrot.lane.b32.xlu1 %v1126_v2, %s3674_s8  ;;  %v562_v10 = vadd.f32 %v3518_v3, %v3859_v34  ;;  %v1127_v13 = vshll.u32 %v1001_v54, 16  ;;  %v1117_v14 = vshrl.u32 %v1000_v4, 16  ;;  %3202 = vst.msk [vmem:[%s5948_s6 + $0x100] sm:$0xff] %vm274_vm1, %v825_v9  ;;  %v763_v15 = vmul.f32 %v3861_v36, %v546_v58 }
 0x131   :  { %v4212_v11 = vadd.f32 %v3859_v34, %v553_v6  ;;  %v3519_v12 = vpop.f32.mrb[38].mxu0  ;;  %v955_v17 = vsel %vm697_vm7, %v541_v52, %v891_v8  ;;  %v764_v18 = vmul.f32 %v3861_v36, %v549_v59  ;;  %v954_v21 = vsel %vm696_vm6, %v538_v43, %v890_v7 }
 0x132   :  { %v556_v16 = vpop.f32.mrb[39].mxu0  ;;  %v1129_v19 = vor.u32 %v1127_v13, %v1126_v2  ;;  %v1119_v20 = vrot.slane %v1117_v14, 7  ;;  %v565_v22 = vadd.f32 %v3519_v12, %v3859_v34  ;;  %v1002_v23 = vpack.c.bf16 %v955_v17, %v954_v21 }
 0x133   :  { %v826_v24 = vsel %vm697_vm7, %v541_v52, %v762_v5  ;;  %vm698_vm8 = vcmp.ge.f32.partialorder %v546_v58, 0.0  ;;  %v767_v25 = vmul.f32 %v3861_v36, %v562_v10  ;;  %v4227_v26 = vmul.f32 %v3861_v36, %v4212_v11 }
 0x134   :  { %1302 = vrot.lane.b32.xlu0 %v1129_v19, %s3674_s8  ;;  %1300 = vrot.lane.b32.xlu1 %v1119_v20, %s3674_s8  ;;  %v1120_v27 = vshll.u32 %v1000_v4, 16  ;;  %3203 = vst.msk [vmem:[%s5948_s6 + $0x108] sm:$0xff] %vm274_vm1, %v826_v24  ;;  %vm699_vm9 = vcmp.ge.f32.partialorder %v549_v59, 0.0  ;;  %v1131_v28 = vshrl.u32 %v1002_v23, 16  ;;  %v892_v29 = vmul.f32 %v3863_v37, %v546_v58 }
 0x135   :  { %v893_v30 = vmul.f32 %v3863_v37, %v549_v59  ;;  %v827_v31 = vsel %vm698_vm8, %v546_v58, %v763_v15  ;;  %v557_v32 = vadd.f32 %v3859_v34, %v556_v16  ;;  %v828_v38 = vsel %vm699_vm9, %v549_v59, %v764_v18 }
 0x136   :  { %v1122_v35 = vor.u32 %v1120_v27, %v1119_v20  ;;  %3204 = vst.msk [vmem:[%s5948_s6 + $0x110] sm:$0xff] %vm274_vm1, %v827_v31  ;;  %vm702_vm10 = vcmp.ge.f32.partialorder %v562_v10, 0.0  ;;  %v1133_v39 = vrot.slane %v1131_v28, 7  ;;  %v956_v41 = vsel %vm698_vm8, %v546_v58, %v892_v29  ;;  %3205 = vst.msk [vmem:[%s5948_s6 + $0x118] sm:$0xff] %vm274_vm1, %v828_v38 }
 0x137   :  { %v3522_v33 = vpop.f32.mrb[40].mxu0  ;;  %v957_v42 = vsel %vm699_vm9, %v549_v59, %v893_v30  ;;  %vm703_vm11 = vcmp.ge.f32.partialorder %v565_v22, 0.0  ;;  %v896_v46 = vmul.f32 %v3863_v37, %v562_v10  ;;  %v897_v47 = vmul.f32 %v3863_v37, %v565_v22 }
 0x138   :  { %v569_v40 = vpop.f32.mrb[41].mxu0  ;;  %1298 = vrot.lane.b32.xlu1 %v1122_v35, %s3674_s8  ;;  %v1003_v45 = vpack.c.bf16 %v957_v42, %v956_v41  ;;  %v894_v48 = vmul.f32 %v3863_v37, %v4212_v11  ;;  %v768_v49 = vmul.f32 %v3861_v36, %v565_v22  ;;  %1308 = vrot.lane.b32.xlu0 %v1133_v39, %s3674_s8  ;;  %v1134_v51 = vshll.u32 %v1002_v23, 16 }
 0x139   :  { %v4250_v43 = vadd.f32 %v3859_v34, %v569_v40  ;;  %v3523_v44 = vpop.f32.mrb[42].mxu0  ;;  %v831_v52 = vsel %vm702_vm10, %v562_v10, %v767_v25  ;;  %v766_v53 = vmul.f32 %v3861_v36, %v557_v32  ;;  %v895_v54 = vmul.f32 %v3863_v37, %v557_v32 }
 0x13a   :  { %v572_v50 = vpop.f32.mrb[43].mxu0  ;;  %v4262_v55 = vadd.f32 %v3522_v33, %v3859_v34  ;;  %v1138_v56 = vshrl.u32 %v1003_v45, 16  ;;  %3208 = vst.msk [vmem:[%s5948_s6 + $0x130] sm:$0xff] %vm274_vm1, %v831_v52  ;;  %v1136_v58 = vor.u32 %v1134_v51, %v1133_v39  ;;  %v960_v59 = vsel %vm702_vm10, %v562_v10, %v896_v46 }
 0x13b   :  { %v573_v57 = vadd.f32 %v3859_v34, %v572_v50  ;;  %v961_v60 = vsel %vm703_vm11, %v565_v22, %v897_v47  ;;  %v769_v61 = vmul.f32 %v3861_v36, %v4250_v43  ;;  %v4274_v62 = vadd.f32 %v3523_v44, %v3859_v34  ;;  %v4369_v50 = vld [vmem:[%s5944_s2] ss:$0 sm:$0xff] }
 0x13c   :  { %v1140_v63 = vrot.slane %v1138_v56, 7  ;;  %v1005_v0 = vpack.c.bf16 %v961_v60, %v960_v59  ;;  %v898_v1 = vmul.f32 %v3863_v37, %v4250_v43  ;;  %1306 = vrot.lane.b32.xlu0 %v1136_v58, %s3674_s8  ;;  %v832_v2 = vsel %vm703_vm11, %v565_v22, %v768_v49 }
 0x13d   :  { %vm700_vm12 = vcmp.ge.f32.partialorder %v4212_v11, 0.0  ;;  %vm701_vm13 = vcmp.ge.f32.partialorder %v557_v32, 0.0  ;;  %v1141_v3 = vshll.u32 %v1003_v45, 16  ;;  %3209 = vst.msk [vmem:[%s5948_s6 + $0x138] sm:$0xff] %vm274_vm1, %v832_v2  ;;  %v899_v8 = vmul.f32 %v3863_v37, %v573_v57 }
 0x13e   :  { %1312 = vrot.lane.b32.xlu1 %v1140_v63, %s3674_s8  ;;  %v1152_v4 = vshrl.u32 %v1005_v0, 16  ;;  %v958_v6 = vsel %vm700_vm12, %v4212_v11, %v894_v48  ;;  %v959_v7 = vsel %vm701_vm13, %v557_v32, %v895_v54  ;;  %v829_v12 = vsel %vm700_vm12, %v4212_v11, %v4227_v26 }
 0x13f   :  { %v3526_v5 = vpop.f32.mrb[44].mxu0  ;;  %v1004_v10 = vpack.c.bf16 %v959_v7, %v958_v6  ;;  %v830_v13 = vsel %vm701_vm13, %v557_v32, %v766_v53  ;;  %v1143_v14 = vor.u32 %v1141_v3, %v1140_v63  ;;  %3206 = vst.msk [vmem:[%s5948_s6 + $0x120] sm:$0xff] %vm274_vm1, %v829_v12  ;;  %vm704_vm14 = vcmp.ge.f32.partialorder %v4250_v43, 0.0 }
 0x140   :  { %v585_v9 = vpop.f32.mrb[45].mxu0  ;;  %v1154_v15 = vrot.slane %v1152_v4, 7  ;;  %3207 = vst.msk [vmem:[%s5948_s6 + $0x128] sm:$0xff] %vm274_vm1, %v830_v13  ;;  %v771_v11 = vmul.f32 %v3861_v36, %v4262_v55  ;;  %v770_v18 = vmul.f32 %v3861_v36, %v573_v57  ;;  %vm705_vm15 = vcmp.ge.f32.partialorder %v573_v57, 0.0 }
 0x141   :  { %v4291_v16 = vadd.f32 %v3859_v34, %v585_v9  ;;  %v3527_v17 = vpop.f32.mrb[46].mxu0  ;;  %v1145_v20 = vshrl.u32 %v1004_v10, 16  ;;  %v772_v21 = vmul.f32 %v3861_v36, %v4274_v62  ;;  %v4310_v22 = vadd.f32 %v3526_v5, %v3859_v34 }
 0x142   :  { %v588_v19 = vpop.f32.mrb[47].mxu0  ;;  %1310 = vrot.lane.b32.xlu1 %v1143_v14, %s3674_s8  ;;  %1320 = vrot.lane.b32.xlu0 %v1154_v15, %s3674_s8  ;;  %v1148_v23 = vshll.u32 %v1004_v10, 16  ;;  %v1155_v24 = vshll.u32 %v1005_v0, 16  ;;  %v962_v27 = vsel %vm704_vm14, %v4250_v43, %v898_v1  ;;  %vm706_vm2 = vcmp.ge.f32.partialorder %v4262_v55, 0.0 }
 0x143   :  { %v589_v25 = vadd.f32 %v3859_v34, %v588_v19  ;;  %v1147_v26 = vrot.slane %v1145_v20, 7  ;;  %v773_v28 = vmul.f32 %v3861_v36, %v4291_v16  ;;  %v902_v29 = vmul.f32 %v3863_v37, %v4291_v16 }
 0x144   :  { %v963_v30 = vsel %vm705_vm15, %v573_v57, %v899_v8  ;;  %v833_v31 = vsel %vm704_vm14, %v4250_v43, %v769_v61  ;;  %v834_v35 = vsel %vm705_vm15, %v573_v57, %v770_v18  ;;  %vm707_vm3 = vcmp.ge.f32.partialorder %v4274_v62, 0.0 }
 0x145   :  { %v1150_v34 = vor.u32 %v1148_v23, %v1147_v26  ;;  %v1006_v32 = vpack.c.bf16 %v963_v30, %v962_v27  ;;  %3210 = vst.msk [vmem:[%s5948_s6 + $0x140] sm:$0xff] %vm274_vm1, %v833_v31  ;;  %3211 = vst.msk [vmem:[%s5948_s6 + $0x148] sm:$0xff] %vm274_vm1, %v834_v35  ;;  %v900_v38 = vmul.f32 %v3863_v37, %v4262_v55  ;;  %vm708_vm4 = vcmp.ge.f32.partialorder %v4291_v16, 0.0 }
 0x146   :  { %1316 = vrot.lane.b32.xlu0 %v1147_v26, %s3674_s8  ;;  %v901_v39 = vmul.f32 %v3863_v37, %v4274_v62  ;;  %v835_v40 = vsel %vm706_vm2, %v4262_v55, %v771_v11  ;;  %v836_v41 = vsel %vm707_vm3, %v4274_v62, %v772_v21  ;;  %v903_v42 = vmul.f32 %v3863_v37, %v589_v25 }
 0x147   :  { %v4332_v33 = vpop.f32.mrb[48].mxu0  ;;  %1314 = vrot.lane.b32.xlu1 %v1150_v34, %s3674_s8  ;;  %v1157_v43 = vor.u32 %v1155_v24, %v1154_v15  ;;  %v1159_v45 = vshrl.u32 %v1006_v32, 16  ;;  %3212 = vst.msk [vmem:[%s5948_s6 + $0x150] sm:$0xff] %vm274_vm1, %v835_v40  ;;  %3213 = vst.msk [vmem:[%s5948_s6 + $0x158] sm:$0xff] %vm274_vm1, %v836_v41  ;;  %v774_v46 = vmul.f32 %v3861_v36, %v589_v25  ;;  %vm709_vm5 = vcmp.ge.f32.partialorder %v589_v25, 0.0 }
 0x148   :  { %v601_v44 = vpop.f32.mrb[49].mxu0  ;;  %v964_v48 = vsel %vm706_vm2, %v4262_v55, %v900_v38  ;;  %v965_v49 = vsel %vm707_vm3, %v4274_v62, %v901_v39  ;;  %v1162_v53 = vshll.u32 %v1006_v32, 16  ;;  %v775_v57 = vmul.f32 %v3861_v36, %v4310_v22 }
 0x149   :  { %v3531_v47 = vpop.f32.mrb[50].mxu0  ;;  %v602_v51 = vadd.f32 %v4369_v50, %v601_v44  ;;  %v1161_v52 = vrot.slane %v1159_v45, 7  ;;  %v1007_v56 = vpack.c.bf16 %v965_v49, %v964_v48  ;;  %v597_v55 = vadd.f32 %v4369_v50, %v3527_v17 }
 0x14a   :  { %v604_v54 = vpop.f32.mrb[51].mxu0  ;;  %1318 = vrot.lane.b32.xlu0 %v1157_v43, %s3674_s8  ;;  %v966_v58 = vsel %vm708_vm4, %v4291_v16, %v902_v29  ;;  %v967_v62 = vsel %vm709_vm5, %v589_v25, %v903_v42  ;;  %v837_v1 = vsel %vm708_vm4, %v4291_v16, %v773_v28  ;;  %v838_v4 = vsel %vm709_vm5, %v589_v25, %v774_v46 }
 0x14b   :  { %v1164_v59 = vor.u32 %v1162_v53, %v1161_v52  ;;  %v605_v60 = vadd.f32 %v4369_v50, %v604_v54  ;;  %v1166_v61 = vshrl.u32 %v1007_v56, 16  ;;  %v776_v63 = vmul.f32 %v3861_v36, %v597_v55  ;;  %3214 = vst.msk [vmem:[%s5948_s6 + $0x160] sm:$0xff] %vm274_vm1, %v837_v1  ;;  %3215 = vst.msk [vmem:[%s5948_s6 + $0x168] sm:$0xff] %vm274_vm1, %v838_v4 }
 0x14c   :  { %v1008_v0 = vpack.c.bf16 %v967_v62, %v966_v58  ;;  %v777_v2 = vmul.f32 %v3861_v36, %v602_v51  ;;  %vm710_vm6 = vcmp.ge.f32.partialorder %v4310_v22, 0.0  ;;  %vm711_vm7 = vcmp.ge.f32.partialorder %v597_v55, 0.0 }
 0x14d   :  { %1322 = vrot.lane.b32.xlu1 %v1164_v59, %s3674_s8  ;;  %v1168_v3 = vrot.slane %v1166_v61, 7  ;;  %v904_v8 = vmul.f32 %v3863_v37, %v4310_v22  ;;  %v906_v9 = vmul.f32 %v3863_v37, %v602_v51  ;;  %v907_v10 = vmul.f32 %v3863_v37, %v605_v60 }
 0x14e   :  { %v1173_v6 = vshrl.u32 %v1008_v0, 16  ;;  %v1176_v7 = vshll.u32 %v1008_v0, 16  ;;  %v905_v13 = vmul.f32 %v3863_v37, %v597_v55  ;;  %v839_v14 = vsel %vm710_vm6, %v4310_v22, %v775_v57 }
 0x14f   :  { %v4393_v5 = vpop.f32.mrb[52].mxu0  ;;  %1328 = vrot.lane.b32.xlu0 %v1168_v3, %s3674_s8  ;;  %v968_v11 = vsel %vm710_vm6, %v4310_v22, %v904_v8  ;;  %v840_v18 = vsel %vm711_vm7, %v597_v55, %v776_v63  ;;  %3216 = vst.msk [vmem:[%s5948_s6 + $0x170] sm:$0xff] %vm274_vm1, %v839_v14  ;;  %v778_v19 = vmul.f32 %v3861_v36, %v605_v60  ;;  %v1169_v21 = vshll.u32 %v1007_v56, 16 }
 0x150   :  { %v617_v12 = vpop.f32.mrb[53].mxu0  ;;  %v4409_v16 = vrot.slane %v1173_v6, 7  ;;  %v969_v23 = vsel %vm711_vm7, %v597_v55, %v905_v13  ;;  %3217 = vst.msk [vmem:[%s5948_s6 + $0x178] sm:$0xff] %vm274_vm1, %v840_v18  ;;  %vm712_vm8 = vcmp.ge.f32.partialorder %v602_v51, 0.0  ;;  %v610_v22 = vadd.f32 %v4369_v50, %v4332_v33 }
 0x151   :  { %v618_v15 = vadd.f32 %v4369_v50, %v617_v12  ;;  %v4411_v17 = vpop.f32.mrb[54].mxu0  ;;  %v4430_v24 = vadd.f32 %v4369_v50, %v3531_v47  ;;  %v4436_v28 = vpack.c.bf16 %v969_v23, %v968_v11  ;;  %vm713_vm9 = vcmp.ge.f32.partialorder %v605_v60, 0.0 }
 0x152   :  { %v620_v20 = vpop.f32.mrb[55].mxu0  ;;  %v1178_v25 = vor.u32 %v1176_v7, %v4409_v16  ;;  %v970_v29 = vsel %vm712_vm8, %v602_v51, %v906_v9  ;;  %v971_v34 = vsel %vm713_vm9, %v605_v60, %v907_v10  ;;  %v841_v32 = vsel %vm712_vm8, %v602_v51, %v777_v2 }
 0x153   :  { %v621_v26 = vadd.f32 %v4369_v50, %v620_v20  ;;  %1324 = vrot.lane.b32.xlu0 %v1161_v52, %s3674_s8  ;;  %v781_v27 = vmul.f32 %v3861_v36, %v618_v15  ;;  %v910_v30 = vmul.f32 %v3863_v37, %v618_v15  ;;  %v1171_v35 = vor.u32 %v1169_v21, %v1168_v3 }
 0x154   :  { %1330 = vrot.lane.b32.xlu1 %v1178_v25, %s3674_s8  ;;  %v1180_v33 = vshrl.u32 %v4436_v28, 16  ;;  %v1010_v38 = vpack.c.bf16 %v971_v34, %v970_v29  ;;  %v842_v39 = vsel %vm713_vm9, %v605_v60, %v778_v19  ;;  %3218 = vst.msk [vmem:[%s5948_s6 + $0x180] sm:$0xff] %vm274_vm1, %v841_v32  ;;  %v779_v40 = vmul.f32 %v3861_v36, %v610_v22 }
 0x155   :  { %v911_v31 = vmul.f32 %v3863_v37, %v621_v26  ;;  %3219 = vst.msk [vmem:[%s5948_s6 + $0x188] sm:$0xff] %vm274_vm1, %v842_v39  ;;  %vm716_vm10 = vcmp.ge.f32.partialorder %v618_v15, 0.0  ;;  %vm717_vm11 = vcmp.ge.f32.partialorder %v621_v26, 0.0  ;;  %v780_v42 = vmul.f32 %v3861_v36, %v4430_v24 }
 0x156   :  { %v782_v43 = vmul.f32 %v3861_v36, %v621_v26  ;;  %v1187_v45 = vshrl.u32 %v1010_v38, 16  ;;  %v1190_v46 = vshll.u32 %v1010_v38, 16  ;;  %v974_v49 = vsel %vm716_vm10, %v618_v15, %v910_v30 }
 0x157   :  { %v4447_v41 = vpop.f32.mrb[56].mxu0  ;;  %1326 = vrot.lane.b32.xlu0 %v1171_v35, %s3674_s8  ;;  %v975_v51 = vsel %vm717_vm11, %v621_v26, %v911_v31  ;;  %v845_v52 = vsel %vm716_vm10, %v618_v15, %v781_v27  ;;  %v1182_v53 = vrot.slane %v1180_v33, 7  ;;  %v1183_v57 = vshll.u32 %v4436_v28, 16 }
 0x158   :  { %v633_v44 = vpop.f32.mrb[57].mxu0  ;;  %v4461_v54 = vrot.slane %v1187_v45, 7  ;;  %3222 = vst.msk [vmem:[%s5948_s6 + $0x1a0] sm:$0xff] %vm274_vm1, %v845_v52  ;;  %vm714_vm12 = vcmp.ge.f32.partialorder %v610_v22, 0.0  ;;  %v1012_v59 = vpack.c.bf16 %v975_v51, %v974_v49  ;;  %vm715_vm13 = vcmp.ge.f32.partialorder %v4430_v24, 0.0 }
 0x159   :  { %v634_v47 = vadd.f32 %v4369_v50, %v633_v44  ;;  %v4458_v48 = vpop.f32.mrb[58].mxu0  ;;  %v846_v62 = vsel %vm717_vm11, %v621_v26, %v782_v43  ;;  %v908_v63 = vmul.f32 %v3863_v37, %v610_v22  ;;  %v909_v4 = vmul.f32 %v3863_v37, %v4430_v24 }
 0x15a   :  { %v636_v56 = vpop.f32.mrb[59].mxu0  ;;  %v1192_v61 = vor.u32 %v1190_v46, %v4461_v54  ;;  %v1201_v2 = vshrl.u32 %v1012_v59, 16  ;;  %v1204_v3 = vshll.u32 %v1012_v59, 16  ;;  %3223 = vst.msk [vmem:[%s5948_s6 + $0x1a8] sm:$0xff] %vm274_vm1, %v846_v62  ;;  %v843_v7 = vsel %vm714_vm12, %v610_v22, %v779_v40 }
 0x15b   :  { %v785_v55 = vmul.f32 %v3861_v36, %v634_v47  ;;  %v637_v58 = vadd.f32 %v4369_v50, %v636_v56  ;;  %1336 = vrot.lane.b32.xlu0 %v1182_v53, %s3674_s8  ;;  %v914_v60 = vmul.f32 %v3863_v37, %v634_v47  ;;  %v972_v6 = vsel %vm714_vm12, %v610_v22, %v908_v63 }
 0x15c   :  { %1338 = vrot.lane.b32.xlu1 %v1192_v61, %s3674_s8  ;;  %v844_v8 = vsel %vm715_vm13, %v4430_v24, %v780_v42  ;;  %v4490_v10 = vrot.slane %v1201_v2, 7  ;;  %3220 = vst.msk [vmem:[%s5948_s6 + $0x190] sm:$0xff] %vm274_vm1, %v843_v7  ;;  %vm720_vm14 = vcmp.ge.f32.partialorder %v634_v47, 0.0  ;;  %v626_v12 = vadd.f32 %v4369_v50, %v4393_v5 }
 0x15d   :  { %v786_v0 = vmul.f32 %v3861_v36, %v637_v58  ;;  %v915_v1 = vmul.f32 %v3863_v37, %v637_v58  ;;  %3221 = vst.msk [vmem:[%s5948_s6 + $0x198] sm:$0xff] %vm274_vm1, %v844_v8  ;;  %vm721_vm15 = vcmp.ge.f32.partialorder %v637_v58, 0.0  ;;  %v973_v14 = vsel %vm715_vm13, %v4430_v24, %v909_v4 }
 0x15e   :  { %v978_v15 = vsel %vm720_vm14, %v634_v47, %v914_v60  ;;  %v629_v18 = vadd.f32 %v4369_v50, %v4411_v17  ;;  %v1206_v19 = vor.u32 %v1204_v3, %v4490_v10  ;;  %v1011_v21 = vpack.c.bf16 %v973_v14, %v972_v6 }
 0x15f   :  { %v3542_v9 = vpop.f32.mrb[60].mxu0  ;;  %1332 = vrot.lane.b32.xlu0 %v4409_v16, %s3674_s8  ;;  %v979_v11 = vsel %vm721_vm15, %v637_v58, %v915_v1  ;;  %v783_v23 = vmul.f32 %v3861_v36, %v626_v12  ;;  %v1185_v16 = vor.u32 %v1183_v57, %v1182_v53  ;;  %v849_v25 = vsel %vm720_vm14, %v634_v47, %v785_v55 }
 0x160   :  { %v649_v13 = vpop.f32.mrb[61].mxu0  ;;  %v1014_v5 = vpack.c.bf16 %v979_v11, %v978_v15  ;;  %v850_v24 = vsel %vm721_vm15, %v637_v58, %v786_v0  ;;  %v784_v26 = vmul.f32 %v3861_v36, %v629_v18  ;;  %1346 = vrot.lane.b32.xlu1 %v1206_v19, %s3674_s8  ;;  %v1194_v27 = vshrl.u32 %v1011_v21, 16  ;;  %3226 = vst.msk [vmem:[%s5948_s6 + $0x1c0] sm:$0xff] %vm274_vm1, %v849_v25 }
 0x161   :  { %v3543_v20 = vpop.f32.mrb[62].mxu0  ;;  %3227 = vst.msk [vmem:[%s5948_s6 + $0x1c8] sm:$0xff] %vm274_vm1, %v850_v24  ;;  %v658_v17 = vadd.f32 %v4369_v50, %v3542_v9  ;;  %vm718_vm2 = vcmp.ge.f32.partialorder %v626_v12, 0.0  ;;  %v650_v30 = vadd.f32 %v4369_v50, %v649_v13  ;;  %vm719_vm3 = vcmp.ge.f32.partialorder %v629_v18, 0.0 }
 0x162   :  { %v652_v22 = vpop.f32.mrb[63].mxu0  ;;  %v1215_v28 = vshrl.u32 %v1014_v5, 16  ;;  %v1218_v29 = vshll.u32 %v1014_v5, 16  ;;  %v661_v31 = vadd.f32 %v4369_v50, %v3543_v20  ;;  %v1196_v34 = vrot.slane %v1194_v27, 7 }
 0x163   :  { %1334 = vrot.lane.b32.xlu0 %v1185_v16, %s3674_s8  ;;  %v912_v35 = vmul.f32 %v3863_v37, %v626_v12  ;;  %v913_v33 = vmul.f32 %v3863_v37, %v629_v18  ;;  %v847_v38 = vsel %vm718_vm2, %v626_v12, %v783_v23  ;;  %v791_v39 = vmul.f32 %v3861_v36, %v658_v17 }
 0x164   :  { %v4529_v32 = vrot.slane %v1215_v28, 7  ;;  %v792_v40 = vmul.f32 %v3861_v36, %v661_v31  ;;  %v653_v42 = vadd.f32 %v4369_v50, %v652_v22  ;;  %v848_v44 = vsel %vm719_vm3, %v629_v18, %v784_v26  ;;  %3224 = vst.msk [vmem:[%s5948_s6 + $0x1b0] sm:$0xff] %vm274_vm1, %v847_v38 }
 0x165   :  { %vm1434_vm4 = vcmask 1040384   ;;  %v976_v46 = vsel %vm718_vm2, %v626_v12, %v912_v35  ;;  %v977_v47 = vsel %vm719_vm3, %v629_v18, %v913_v33  ;;  %3225 = vst.msk [vmem:[%s5948_s6 + $0x1b8] sm:$0xff] %vm274_vm1, %v848_v44  ;;  %v1197_v49 = vshll.u32 %v1011_v21, 16 }
 0x166   :  { %v1220_v45 = vor.u32 %v1218_v29, %v4529_v32  ;;  %v4550_v51 = vpack.c.bf16 %v977_v47, %v976_v46  ;;  %vm726_vm5 = vcmp.ge.f32.partialorder %v658_v17, 0.0  ;;  %vm727_vm6 = vcmp.ge.f32.partialorder %v661_v31, 0.0 }
 0x167   :  { %v4537_v43 = vpop.permute.xlu0 %1248  ;;  %1344 = vrot.lane.b32.xlu0 %v1196_v34, %s3674_s8  ;;  %v789_v52 = vmul.f32 %v3861_v36, %v650_v30  ;;  %vm1435_vm7 = vsmask.f32 256  ;;  %v920_v53 = vmul.f32 %v3863_v37, %v658_v17  ;;  %v921_v56 = vmul.f32 %v3863_v37, %v661_v31 }
 0x168   :  { %1354 = vrot.lane.b32.xlu1 %v1220_v45, %s3674_s8  ;;  %v918_v57 = vmul.f32 %v3863_v37, %v650_v30  ;;  %v919_v55 = vmul.f32 %v3863_v37, %v653_v42  ;;  %v855_v59 = vsel %vm726_vm5, %v658_v17, %v791_v39  ;;  %v856_v60 = vsel %vm727_vm6, %v661_v31, %v792_v40  ;;  %v1245_v61 = vpop.permute.xlu1 %1244  ;;  %vm4572_vm8 = vmand %vm1434_vm4, %vm1435_vm7 }
 0x169   :  { %v984_v62 = vsel %vm726_vm5, %v658_v17, %v920_v53  ;;  %v985_v63 = vsel %vm727_vm6, %v661_v31, %v921_v56  ;;  %3232 = vst.msk [vmem:[%s5948_s6 + $0x1f0] sm:$0xff] %vm274_vm1, %v855_v59  ;;  %3233 = vst.msk [vmem:[%s5948_s6 + $0x1f8] sm:$0xff] %vm274_vm1, %v856_v60  ;;  %v1208_v1 = vshrl.u32 %v4550_v51, 16  ;;  %vm724_vm9 = vcmp.ge.f32.partialorder %v650_v30, 0.0 }
 0x16a   :  { %v4577_v2 = vpack.c.bf16 %v985_v63, %v984_v62  ;;  %vm725_vm10 = vcmp.ge.f32.partialorder %v653_v42, 0.0  ;;  %v790_v3 = vmul.f32 %v3861_v36, %v653_v42  ;;  %v982_v6 = vsel %vm724_vm9, %v650_v30, %v918_v57 }
 0x16b   :  { %v4558_v58 = vpop.permute.xlu0 %1246  ;;  %1340 = vrot.lane.b32.xlu0 %v4461_v54, %s3674_s8  ;;  %v1199_v54 = vor.u32 %v1197_v49, %v1196_v34  ;;  %v983_v7 = vsel %vm725_vm10, %v653_v42, %v919_v55  ;;  %v853_v8 = vsel %vm724_vm9, %v650_v30, %v789_v52  ;;  %v4583_v9 = vsel %vm4572_vm8, %v1245_v61, 0 }
 0x16c   :  { %v1236_v12 = vshrl.u32 %v4577_v2, 16  ;;  %v1016_v15 = vpack.c.bf16 %v983_v7, %v982_v6  ;;  %3230 = vst.msk [vmem:[%s5948_s6 + $0x1e0] sm:$0xff] %vm274_vm1, %v853_v8  ;;  %v642_v11 = vadd.f32 %v4369_v50, %v4447_v41  ;;  %v645_v19 = vadd.f32 %v4369_v50, %v4458_v48 }
 0x16d   :  { %v1210_v20 = vrot.slane %v1208_v1, 7  ;;  %v2016_v16 = vrot.slane %v4583_v9, 1  ;;  %v854_v25 = vsel %vm725_vm10, %v653_v42, %v790_v3  ;;  %vm2014_vm11 = vcmask 1046528  }
 0x16e   :  { %v4600_v21 = vrot.slane %v1236_v12, 7  ;;  %v1229_v5 = vshrl.u32 %v1016_v15, 16  ;;  %v787_v23 = vmul.f32 %v3861_v36, %v642_v11  ;;  %v788_v24 = vmul.f32 %v3861_v36, %v645_v19  ;;  %3231 = vst.msk [vmem:[%s5948_s6 + $0x1e8] sm:$0xff] %vm274_vm1, %v854_v25 }
 0x16f   :  { %v1243_v4 = vpop.permute.xlu0 %1242  ;;  %1342 = vrot.lane.b32.xlu0 %v1199_v54, %s3674_s8  ;;  %v1211_v48 = vshll.u32 %v4550_v51, 16  ;;  %v1232_v26 = vshll.u32 %v1016_v15, 16  ;;  %vm722_vm12 = vcmp.ge.f32.partialorder %v642_v11, 0.0  ;;  %vm723_vm13 = vcmp.ge.f32.partialorder %v645_v19, 0.0 }
 0x170   :  { %v4589_v13 = vsel %vm4572_vm8, 0, %v1243_v4  ;;  %v1253_v14 = vpop.permute.xlu1 %1252  ;;  %1368 = vrot.lane.b32.xlu1 %v4600_v21, %s3674_s8  ;;  %v4623_v17 = vrot.slane %v1229_v5, 7  ;;  %v916_v29 = vmul.f32 %v3863_v37, %v642_v11  ;;  %v917_v30 = vmul.f32 %v3863_v37, %v645_v19 }
 0x171   :  { %v2015_v18 = vrot.slane %v4589_v13, 1  ;;  %v851_v31 = vsel %vm722_vm12, %v642_v11, %v787_v23  ;;  %v852_v33 = vsel %vm723_vm13, %v645_v19, %v788_v24  ;;  %v1471_v37 = vsel %vm4572_vm8, %v1253_v14, 0 }
 0x172   :  { %3228 = vst.msk [vmem:[%s5948_s6 + $0x1d0] sm:$0xff] %vm274_vm1, %v851_v31  ;;  %v1213_v38 = vor.u32 %v1211_v48, %v1210_v20  ;;  %3229 = vst.msk [vmem:[%s5948_s6 + $0x1d8] sm:$0xff] %vm274_vm1, %v852_v33  ;;  %v1234_v42 = vor.u32 %v1232_v26, %v4623_v17  ;;  %v980_v44 = vsel %vm722_vm12, %v642_v11, %v916_v29  ;;  %v2022_v56 = vrot.slane %v1471_v37, 1  ;;  %s3676_s6 = smov 4  }
 0x173   :  { %v1257_v22 = vpop.permute.xlu0 %1256  ;;  %1352 = vrot.lane.b32.xlu0 %v1210_v20, %s3674_s8  ;;  %v2017_v50 = vsel %vm2014_vm11, %v2015_v18, %v2016_v16  ;;  %v981_v45 = vsel %vm723_vm13, %v645_v19, %v917_v30  ;;  %vm1501_vm14 = vsmask.f32 7424  ;;  %v1534_v1 = vshll.u32 %v1471_v37, 16 }
 0x174   :  { %v1251_v41 = vpop.permute.xlu1 %1250  ;;  %v4617_v36 = vsel %vm4572_vm8, %v1257_v22, 0  ;;  %2111 = vrot.lane.b32.xlu1 %v2017_v50, %s3675_s23  ;;  %v1015_v51 = vpack.c.bf16 %v981_v45, %v980_v44  ;;  %v4674_v18 = vsel %vm4572_vm8, 0, %v4558_v58  ;;  %v1470_v20 = vsel %vm4572_vm8, %v4537_v43, 0 }
 0x175   :  { %v4621_v27 = vsel %vm4572_vm8, 0, %v1251_v41  ;;  %v1536_v19 = vrot.slane %v1534_v1, 1  ;;  %v1239_v44 = vshll.u32 %v4577_v2, 16  ;;  %v1515_v2 = vshrl.u32 %v4674_v18, 16 }
 0x176   :  { %v1529_v40 = vshll.u32 %v4621_v27, 16  ;;  %v2021_v46 = vrot.slane %v4621_v27, 1  ;;  %v1222_v57 = vshrl.u32 %v1015_v51, 16  ;;  %v1527_v3 = vshrl.u32 %v4621_v27, 16 }
 0x177   :  { %v1255_v28 = vpop.permute.xlu0 %1254  ;;  %1348 = vrot.lane.b32.xlu0 %v4490_v10, %s3674_s8  ;;  %v1546_v10 = vshll.u32 %v4617_v36, 16  ;;  %v1225_v12 = vshll.u32 %v1015_v51, 16  ;;  %v1505_v51 = vshll.u32 %v4589_v13, 16  ;;  %vm2239_vm15 = vcmask 64512  }
 0x178   :  { %v4633_v34 = vsel %vm4572_vm8, 0, %v1255_v28  ;;  %v1261_v35 = vpop.permute.xlu1 %1260  ;;  %1362 = vrot.lane.b32.xlu1 %v1234_v42, %s3674_s8  ;;  %v1531_v60 = vrot.slane %v1529_v40, 1  ;;  %v1224_v61 = vrot.slane %v1222_v57, 7  ;;  %v2023_v62 = vsel %vm2014_vm11, %v2021_v46, %v2022_v56 }
 0x179   :  { %v1541_v39 = vshll.u32 %v4633_v34, 16  ;;  %v1539_v47 = vshrl.u32 %v4633_v34, 16  ;;  %v1548_v59 = vrot.slane %v1546_v10, 1  ;;  %v1473_v5 = vsel %vm4572_vm8, %v1261_v35, 0 }
 0x17a   :  { %v1532_v14 = vor.u32 %v1531_v60, %v1527_v3  ;;  %v1227_v25 = vor.u32 %v1225_v12, %v1224_v61  ;;  %v2028_v41 = vrot.slane %v1473_v5, 1  ;;  %v2019_v28 = vrot.slane %v1470_v20, 1 }
 0x17b   :  { %v1543_v49 = vrot.slane %v1541_v39, 1  ;;  %1350 = vrot.lane.b32.xlu0 %v1213_v38, %s3674_s8  ;;  %v1517_v35 = vshll.u32 %v4674_v18, 16  ;;  %v1558_v10 = vshll.u32 %v1473_v5, 16  ;;  %v1507_v3 = vrot.slane %v1505_v51, 1 }
 0x17c   :  { %v1265_v52 = vpop.permute.xlu0 %1264  ;;  %v1259_v53 = vpop.permute.xlu1 %1258  ;;  %2115 = vrot.lane.b32.xlu1 %v2023_v62, %s3675_s23  ;;  %v1537_v24 = vsel %vm1501_vm14, %v1532_v14, %v1536_v19  ;;  %v1510_v14 = vshll.u32 %v4583_v9, 16  ;;  %vm2463_vm2 = vcmask 97280   ;;  %vm2620_vm3 = vcmask 293888  }
 0x17d   :  { %v1544_v55 = vor.u32 %v1543_v49, %v1539_v47  ;;  %v4667_v7 = vsel %vm4572_vm8, 0, %v1259_v53  ;;  %v4685_v23 = vsel %vm4572_vm8, %v1265_v52, 0  ;;  %v1519_v49 = vrot.slane %v1517_v35, 1 }
 0x17e   :  { %v1553_v16 = vshll.u32 %v4667_v7, 16  ;;  %v2027_v58 = vrot.slane %v4667_v7, 1  ;;  %v1570_v50 = vshll.u32 %v4685_v23, 16  ;;  %v1551_v39 = vshrl.u32 %v4667_v7, 16 }
 0x17f   :  { %1360 = vrot.lane.b32.xlu0 %v1224_v61, %s3674_s8  ;;  %v1549_v6 = vsel %vm1501_vm14, %v1544_v55, %v1548_v59  ;;  %v1522_v53 = vshll.u32 %v1470_v20, 16  ;;  %v1560_v56 = vrot.slane %v1558_v10, 1  ;;  %v1241_v59 = vor.u32 %v1239_v44, %v4600_v21 }
 0x180   :  { %v1263_v63 = vpop.permute.xlu0 %1262  ;;  %v1269_v54 = vpop.permute.xlu1 %1268  ;;  %1892 = vrot.lane.b32.xlu1 %v1549_v6, %s3676_s6  ;;  %v1555_v29 = vrot.slane %v1553_v16, 1  ;;  %v2029_v30 = vsel %vm2014_vm11, %v2027_v58, %v2028_v41  ;;  %v1572_v38 = vrot.slane %v1570_v50, 1  ;;  %v2025_v10 = vrot.slane %v4617_v36, 1 }
 0x181   :  { %v4662_v4 = vsel %vm4572_vm8, 0, %v1263_v63  ;;  %v1475_v57 = vsel %vm4572_vm8, %v1269_v54, 0  ;;  %v1520_v54 = vor.u32 %v1519_v49, %v1515_v2  ;;  %v1524_v21 = vrot.slane %v1522_v53, 1 }
 0x182   :  { %v1565_v8 = vshll.u32 %v4662_v4, 16  ;;  %v1563_v48 = vshrl.u32 %v4662_v4, 16  ;;  %v1556_v47 = vor.u32 %v1555_v29, %v1551_v39  ;;  %v2034_v6 = vrot.slane %v1475_v57, 1 }
 0x183   :  { %1356 = vrot.lane.b32.xlu0 %v4529_v32, %s3674_s8  ;;  %v2018_v32 = vrot.slane %v4674_v18, 1  ;;  %v2030_v51 = vrot.slane %v4662_v4, 1 }
 0x184   :  { %v1273_v15 = vpop.permute.xlu0 %1272  ;;  %v1267_v11 = vpop.permute.xlu1 %1266  ;;  %v1567_v22 = vrot.slane %v1565_v8, 1  ;;  %1890 = vrot.lane.b32.xlu1 %v1537_v24, %s3676_s6  ;;  %v1582_v24 = vshll.u32 %v1475_v57, 16 }
 0x185   :  { %v2020_v33 = vsel %vm2014_vm11, %v2018_v32, %v2019_v28  ;;  %v4713_v52 = vsel %vm4572_vm8, 0, %v1267_v11  ;;  %v4723_v55 = vsel %vm4572_vm8, %v1273_v15, 0  ;;  %v1503_v15 = vshrl.u32 %v4589_v13, 16 }
 0x186   :  { %v1568_v31 = vor.u32 %v1567_v22, %v1563_v48  ;;  %v1577_v62 = vshll.u32 %v4713_v52, 16  ;;  %v2033_v63 = vrot.slane %v4713_v52, 1  ;;  %v1594_v8 = vshll.u32 %v4723_v55, 16 }
 0x187   :  { %1358 = vrot.lane.b32.xlu0 %v1227_v25, %s3674_s8  ;;  %v1525_v22 = vsel %vm1501_vm14, %v1520_v54, %v1524_v21  ;;  %v1508_v25 = vor.u32 %v1507_v3, %v1503_v15  ;;  %v1575_v32 = vshrl.u32 %v4713_v52, 16 }
 0x188   :  { %v1271_v43 = vpop.permute.xlu0 %1270  ;;  %2119 = vrot.lane.b32.xlu1 %v2029_v30, %s3675_s23  ;;  %v1573_v46 = vsel %vm1501_vm14, %v1568_v31, %v1572_v38  ;;  %v1579_v20 = vrot.slane %v1577_v62, 1  ;;  %v2035_v5 = vsel %vm2014_vm11, %v2033_v63, %v2034_v6  ;;  %v1596_v9 = vrot.slane %v1594_v8, 1 }
 0x189   :  { %v4695_v26 = vpop.permute.xlu1 %1276  ;;  %v4702_v37 = vsel %vm4572_vm8, 0, %v1271_v43  ;;  %v1512_v43 = vrot.slane %v1510_v14, 1  ;;  %v2024_v30 = vrot.slane %v4633_v34, 1  ;;  %v2037_v6 = vrot.slane %v4723_v55, 1 }
 0x18a   :  { %v1589_v45 = vshll.u32 %v4702_v37, 16  ;;  %v1587_v12 = vshrl.u32 %v4702_v37, 16  ;;  %v1580_v29 = vor.u32 %v1579_v20, %v1575_v32  ;;  %v1477_v38 = vsel %vm4572_vm8, %v4695_v26, 0 }
 0x18b   :  { %2113 = vrot.lane.b32.xlu0 %v2020_v33, %s3675_s23  ;;  %v1513_v35 = vsel %vm1501_vm14, %v1508_v25, %v1512_v43  ;;  %v1584_v33 = vrot.slane %v1582_v24, 1  ;;  %v2026_v36 = vsel %vm2014_vm11, %v2024_v30, %v2025_v10  ;;  %v2040_v26 = vrot.slane %v1477_v38, 1 }
 0x18c   :  { %1896 = vrot.lane.b32.xlu1 %v1573_v46, %s3676_s6  ;;  %v1591_v1 = vrot.slane %v1589_v45, 1  ;;  %v2036_v63 = vrot.slane %v4702_v37, 1  ;;  %v1606_v3 = vshll.u32 %v1477_v38, 16 }
 0x18d   :  { %v1275_v40 = vpop.permute.xlu1 %1274  ;;  %v1281_v42 = vpop.permute.xlu0 %1280  ;;  %v1585_v49 = vsel %vm1501_vm14, %v1580_v29, %v1584_v33 }
 0x18e   :  { %v1592_v16 = vor.u32 %v1591_v1, %v1587_v12  ;;  %v4755_v31 = vsel %vm4572_vm8, 0, %v1275_v40  ;;  %v1478_v39 = vsel %vm4572_vm8, %v1281_v42, 0 }
 0x18f   :  { %1364 = vrot.lane.b32.xlu0 %v4623_v17, %s3674_s8  ;;  %v1561_v17 = vsel %vm1501_vm14, %v1556_v47, %v1560_v56  ;;  %v1601_v40 = vshll.u32 %v4755_v31, 16  ;;  %v2039_v45 = vrot.slane %v4755_v31, 1  ;;  %v1618_v53 = vshll.u32 %v1478_v39, 16 }
 0x190   :  { %1894 = vrot.lane.b32.xlu1 %v1561_v17, %s3676_s6  ;;  %v1597_v28 = vsel %vm1501_vm14, %v1592_v16, %v1596_v9  ;;  %v2031_v56 = vrot.slane %v4685_v23, 1  ;;  %v1599_v23 = vshrl.u32 %v4755_v31, 16  ;;  %v2038_v16 = vsel %vm2014_vm11, %v2036_v63, %v2037_v6 }
 0x191   :  { %v1279_v60 = vpop.permute.xlu0 %1278  ;;  %v1603_v2 = vrot.slane %v1601_v40, 1  ;;  %v1620_v54 = vrot.slane %v1618_v53, 1 }
 0x192   :  { %v4726_v61 = vpop.permute.xlu1 %1284  ;;  %v4742_v58 = vsel %vm4572_vm8, 0, %v1279_v60  ;;  %v2041_v60 = vsel %vm2014_vm11, %v2039_v45, %v2040_v26  ;;  %v2032_v17 = vsel %vm2014_vm11, %v2030_v51, %v2031_v56 }
 0x193   :  { %1366 = vrot.lane.b32.xlu0 %v1241_v59, %s3674_s8  ;;  %v1613_v48 = vshll.u32 %v4742_v58, 16  ;;  %v1611_v42 = vshrl.u32 %v4742_v58, 16  ;;  %v1604_v20 = vor.u32 %v1603_v2, %v1599_v23  ;;  %v1479_v25 = vsel %vm4572_vm8, %v4726_v61, 0 }
 0x194   :  { %2123 = vrot.lane.b32.xlu1 %v2035_v5, %s3675_s23  ;;  %v2042_v5 = vrot.slane %v4742_v58, 1  ;;  %v1630_v38 = vshll.u32 %v1479_v25, 16 }
 0x195   :  { %v1615_v46 = vrot.slane %v1613_v48, 1 }
 0x196   :  { %v4737_v11 = vpop.permute.xlu0 %1288  ;;  %v1283_v19 = vpop.permute.xlu1 %1282 }
 0x197   :  { %1888 = vrot.lane.b32.xlu0 %v1525_v22, %s3676_s6  ;;  %v1616_v62 = vor.u32 %v1615_v46, %v1611_v42  ;;  %v4790_v8 = vsel %vm4572_vm8, 0, %v1283_v19  ;;  %v1608_v22 = vrot.slane %v1606_v3, 1  ;;  %v2043_v19 = vrot.slane %v1478_v39, 1 }
 0x198   :  { %1900 = vrot.lane.b32.xlu1 %v1597_v28, %s3676_s6  ;;  %v1480_v24 = vsel %vm4572_vm8, %v4737_v11, 0  ;;  %v1625_v9 = vshll.u32 %v4790_v8, 16  ;;  %v2045_v32 = vrot.slane %v4790_v8, 1  ;;  %v1632_v3 = vrot.slane %v1630_v38, 1 }
 0x199   :  { %v1621_v15 = vsel %vm1501_vm14, %v1616_v62, %v1620_v54  ;;  %v1609_v48 = vsel %vm1501_vm14, %v1604_v20, %v1608_v22  ;;  %v2044_v30 = vsel %vm2014_vm11, %v2042_v5, %v2043_v19  ;;  %v1642_v11 = vshll.u32 %v1480_v24, 16 }
 0x19a   :  { %v1287_v41 = vpop.permute.xlu0 %1286  ;;  %v4748_v50 = vpop.permute.xlu1 %1292  ;;  %v2049_v39 = vrot.slane %v1480_v24, 1  ;;  %v1627_v40 = vrot.slane %v1625_v9, 1 }
 0x19b   :  { %1886 = vrot.lane.b32.xlu0 %v1513_v35, %s3676_s6  ;;  %v4781_v1 = vsel %vm4572_vm8, 0, %v1287_v41  ;;  %v2046_v35 = vrot.slane %v1479_v25, 1  ;;  %v1644_v2 = vrot.slane %v1642_v11, 1 }
 0x19c   :  { %1898 = vrot.lane.b32.xlu1 %v1585_v49, %s3676_s6  ;;  %v1637_v12 = vshll.u32 %v4781_v1, 16  ;;  %v2048_v28 = vrot.slane %v4781_v1, 1  ;;  %v1635_v33 = vshrl.u32 %v4781_v1, 16 }
 0x19d   :  { %v2047_v49 = vsel %vm2014_vm11, %v2045_v32, %v2046_v35 }
 0x19e   :  { %v4766_v44 = vpop.permute.xlu1 %1290  ;;  %v1297_v47 = vpop.permute.xlu0 %1296  ;;  %v1639_v43 = vrot.slane %v1637_v12, 1  ;;  %v2050_v42 = vsel %vm2014_vm11, %v2048_v28, %v2049_v39 }
 0x19f   :  { %2117 = vrot.lane.b32.xlu0 %v2026_v36, %s3675_s23  ;;  %v1482_v45 = vsel %vm4572_vm8, %v1297_v47, 0  ;;  %v1623_v36 = vshrl.u32 %v4790_v8, 16  ;;  %v4844_v54 = vsel %vm4572_vm8, 0, %v4766_v44  ;;  %v1481_v44 = vsel %vm4572_vm8, %v4748_v50, 0 }
 0x1a0   :  { %2127 = vrot.lane.b32.xlu1 %v2041_v60, %s3675_s23  ;;  %v1640_v51 = vor.u32 %v1639_v43, %v1635_v33  ;;  %v1649_v19 = vshll.u32 %v4844_v54, 16  ;;  %v2051_v25 = vrot.slane %v4844_v54, 1  ;;  %v1666_v28 = vshll.u32 %v1482_v45, 16 }
 0x1a1   :  { %v1628_v62 = vor.u32 %v1627_v40, %v1623_v36  ;;  %v1647_v36 = vshrl.u32 %v4844_v54, 16 }
 0x1a2   :  { %v1295_v57 = vpop.permute.xlu0 %1294  ;;  %v1305_v59 = vpop.permute.xlu1 %1304  ;;  %v1651_v11 = vrot.slane %v1649_v19, 1 }
 0x1a3   :  { %2121 = vrot.lane.b32.xlu0 %v2032_v17, %s3675_s23  ;;  %v4822_v10 = vsel %vm4572_vm8, 0, %v1295_v57  ;;  %v4829_v46 = vsel %vm4572_vm8, %v1305_v59, 0  ;;  %v2055_v57 = vrot.slane %v1482_v45, 1  ;;  %v1645_v17 = vsel %vm1501_vm14, %v1640_v51, %v1644_v2 }
 0x1a4   :  { %1904 = vrot.lane.b32.xlu1 %v1621_v15, %s3676_s6  ;;  %v2054_v26 = vrot.slane %v4822_v10, 1  ;;  %v1690_v59 = vshll.u32 %v4829_v46, 16  ;;  %v1661_v63 = vshll.u32 %v4822_v10, 16  ;;  %v1633_v22 = vsel %vm1501_vm14, %v1628_v62, %v1632_v3 }
 0x1a5   :  { %v1654_v45 = vshll.u32 %v1481_v44, 16  ;;  %v1668_v51 = vrot.slane %v1666_v28, 1  ;;  %v2061_v19 = vrot.slane %v4829_v46, 1 }
 0x1a6   :  { %v1303_v21 = vpop.permute.xlu0 %1302  ;;  %v4793_v14 = vpop.permute.xlu1 %1300  ;;  %v2056_v23 = vsel %vm2014_vm11, %v2054_v26, %v2055_v57  ;;  %v1692_v5 = vrot.slane %v1690_v59, 1  ;;  %v1663_v24 = vrot.slane %v1661_v63, 1 }
 0x1a7   :  { %2125 = vrot.lane.b32.xlu0 %v2038_v16, %s3675_s23  ;;  %v4802_v55 = vsel %vm4572_vm8, 0, %v1303_v21  ;;  %v1656_v63 = vrot.slane %v1654_v45, 1 }
 0x1a8   :  { %v1685_v29 = vshll.u32 %v4802_v55, 16  ;;  %1902 = vrot.lane.b32.xlu1 %v1609_v48, %s3676_s6  ;;  %v1683_v60 = vshrl.u32 %v4802_v55, 16  ;;  %v2052_v48 = vrot.slane %v1481_v44, 1 }
 0x1aa   :  { %v4812_v41 = vpop.permute.xlu1 %1298  ;;  %v1309_v61 = vpop.permute.xlu0 %1308  ;;  %v1687_v53 = vrot.slane %v1685_v29, 1  ;;  %v1659_v29 = vshrl.u32 %v4822_v10, 16  ;;  %v2053_v38 = vsel %vm2014_vm11, %v2051_v25, %v2052_v48  ;;  %v1483_v25 = vsel %vm4572_vm8, %v4793_v14, 0 }
 0x1ab   :  { %2129 = vrot.lane.b32.xlu0 %v2044_v30, %s3675_s23  ;;  %v1485_v33 = vsel %vm4572_vm8, %v1309_v61, 0  ;;  %v4893_v57 = vsel %vm4572_vm8, 0, %v4812_v41  ;;  %v1678_v14 = vshll.u32 %v1483_v25, 16 }
 0x1ac   :  { %2131 = vrot.lane.b32.xlu1 %v2047_v49, %s3675_s23  ;;  %v1688_v6 = vor.u32 %v1687_v53, %v1683_v60  ;;  %v1664_v39 = vor.u32 %v1663_v24, %v1659_v29  ;;  %v1702_v53 = vshll.u32 %v1485_v33, 16  ;;  %v2057_v24 = vrot.slane %v4893_v57, 1 }
 0x1ad   :  { %v2058_v29 = vrot.slane %v1483_v25, 1 }
 0x1ae   :  { %v1307_v56 = vpop.permute.xlu0 %1306  ;;  %v1693_v50 = vsel %vm1501_vm14, %v1688_v6, %v1692_v5  ;;  %v1669_v2 = vsel %vm1501_vm14, %v1664_v39, %v1668_v51  ;;  %v1673_v6 = vshll.u32 %v4893_v57, 16 }
 0x1af   :  { %2133 = vrot.lane.b32.xlu0 %v2050_v42, %s3675_s23  ;;  %v4854_v21 = vsel %vm4572_vm8, 0, %v1307_v56  ;;  %v2064_v42 = vrot.slane %v1485_v33, 1  ;;  %v1671_v33 = vshrl.u32 %v4893_v57, 16 }
 0x1b0   :  { %v1313_v47 = vpop.permute.xlu1 %1312  ;;  %1908 = vrot.lane.b32.xlu1 %v1645_v17, %s3676_s6  ;;  %v1697_v43 = vshll.u32 %v4854_v21, 16  ;;  %v2063_v49 = vrot.slane %v4854_v21, 1  ;;  %v1695_v56 = vshrl.u32 %v4854_v21, 16  ;;  %v1704_v17 = vrot.slane %v1702_v53, 1 }
 0x1b1   :  { %v4850_v12 = vsel %vm4572_vm8, %v1313_v47, 0  ;;  %v1652_v47 = vor.u32 %v1651_v11, %v1647_v36 }
 0x1b2   :  { %v2067_v32 = vrot.slane %v4850_v12, 1  ;;  %v1699_v40 = vrot.slane %v1697_v43, 1  ;;  %v2065_v62 = vsel %vm2014_vm11, %v2063_v49, %v2064_v42  ;;  %v2059_v49 = vsel %vm2014_vm11, %v2057_v24, %v2058_v29 }
 0x1b3   :  { %2137 = vrot.lane.b32.xlu0 %v2056_v23, %s3675_s23  ;;  %v2060_v23 = vrot.slane %v4802_v55, 1 }
 0x1b4   :  { %v1311_v15 = vpop.permute.xlu1 %1310  ;;  %v1321_v20 = vpop.permute.xlu0 %1320  ;;  %1906 = vrot.lane.b32.xlu1 %v1633_v22, %s3676_s6  ;;  %v1700_v59 = vor.u32 %v1699_v40, %v1695_v56 }
 0x1b5   :  { %v4862_v16 = vsel %vm4572_vm8, 0, %v1311_v15  ;;  %v1488_v41 = vsel %vm4572_vm8, %v1321_v20, 0  ;;  %v1657_v15 = vsel %vm1501_vm14, %v1652_v47, %v1656_v63  ;;  %v2062_v28 = vsel %vm2014_vm11, %v2060_v23, %v2061_v19 }
 0x1b6   :  { %v2066_v9 = vrot.slane %v4862_v16, 1  ;;  %v1705_v22 = vsel %vm1501_vm14, %v1700_v59, %v1704_v17  ;;  %v1738_v20 = vshll.u32 %v1488_v41, 16  ;;  %v1709_v48 = vshll.u32 %v4862_v16, 16 }
 0x1b7   :  { %1916 = vrot.lane.b32.xlu0 %v1693_v50, %s3676_s6  ;;  %v1675_v50 = vrot.slane %v1673_v6, 1  ;;  %v1680_v47 = vrot.slane %v1678_v14, 1  ;;  %v1714_v59 = vshll.u32 %v4850_v12, 16 }
 0x1b8   :  { %v4874_v30 = vpop.permute.xlu0 %1316  ;;  %v2068_v35 = vsel %vm2014_vm11, %v2066_v9, %v2067_v32  ;;  %2135 = vrot.lane.b32.xlu1 %v2053_v38, %s3675_s23  ;;  %v2073_v9 = vrot.slane %v1488_v41, 1  ;;  %v1740_v39 = vrot.slane %v1738_v20, 1  ;;  %v1711_v45 = vrot.slane %v1709_v48, 1 }
 0x1b9   :  { %v1315_v46 = vpop.permute.xlu1 %1314  ;;  %v1487_v41 = vsel %vm4572_vm8, %v4874_v30, 0 }
 0x1ba   :  { %v4925_v51 = vsel %vm4572_vm8, 0, %v1315_v46  ;;  %v2070_v19 = vrot.slane %v1487_v41, 1  ;;  %v1726_v48 = vshll.u32 %v1487_v41, 16 }
 0x1bb   :  { %2145 = vrot.lane.b32.xlu0 %v2068_v35, %s3675_s23  ;;  %v1721_v6 = vshll.u32 %v4925_v51, 16 }
 0x1bc   :  { %v1319_v26 = vpop.permute.xlu0 %1318  ;;  %1912 = vrot.lane.b32.xlu1 %v1669_v2, %s3676_s6 }
 0x1bd   :  { %v4887_v61 = vsel %vm4572_vm8, 0, %v1319_v26  ;;  %v1676_v26 = vor.u32 %v1675_v50, %v1671_v33  ;;  %v1723_v20 = vrot.slane %v1721_v6, 1  ;;  %v1719_v50 = vshrl.u32 %v4925_v51, 16 }
 0x1be   :  { %v1733_v60 = vshll.u32 %v4887_v61, 16  ;;  %v2072_v5 = vrot.slane %v4887_v61, 1  ;;  %v1731_v32 = vshrl.u32 %v4887_v61, 16 }
 0x1bf   :  { %2143 = vrot.lane.b32.xlu0 %v2065_v62, %s3675_s23  ;;  %v1323_v25 = vpop.permute.xlu1 %1322 }
 0x1c0   :  { %v1735_v44 = vrot.slane %v1733_v60, 1  ;;  %1910 = vrot.lane.b32.xlu1 %v1657_v15, %s3676_s6  ;;  %v2074_v11 = vsel %vm2014_vm11, %v2072_v5, %v2073_v9  ;;  %v1707_v60 = vshrl.u32 %v4862_v16, 16  ;;  %v1681_v15 = vsel %vm1501_vm14, %v1676_v26, %v1680_v47 }
 0x1c1   :  { %v1329_v3 = vpop.permute.xlu0 %1328  ;;  %v1716_v5 = vrot.slane %v1714_v59, 1  ;;  %v2069_v9 = vrot.slane %v4925_v51, 1  ;;  %v4957_v29 = vsel %vm4572_vm8, 0, %v1323_v25  ;;  %v1728_v26 = vrot.slane %v1726_v48, 1 }
 0x1c2   :  { %v1736_v35 = vor.u32 %v1735_v44, %v1731_v32  ;;  %v1490_v38 = vsel %vm4572_vm8, %v1329_v3, 0  ;;  %v1712_v12 = vor.u32 %v1711_v45, %v1707_v60 }
 0x1c3   :  { %1918 = vrot.lane.b32.xlu0 %v1705_v22, %s3676_s6  ;;  %v2079_v53 = vrot.slane %v1490_v38, 1  ;;  %v1762_v62 = vshll.u32 %v1490_v38, 16  ;;  %v2071_v38 = vsel %vm2014_vm11, %v2069_v9, %v2070_v19 }
 0x1c4   :  { %2141 = vrot.lane.b32.xlu1 %v2062_v28, %s3675_s23  ;;  %v1741_v2 = vsel %vm1501_vm14, %v1736_v35, %v1740_v39  ;;  %v1717_v30 = vsel %vm1501_vm14, %v1712_v12, %v1716_v5 }
 0x1c5   :  { %v1325_v43 = vpop.permute.xlu0 %1324  ;;  %v1764_v22 = vrot.slane %v1762_v62, 1 }
 0x1c6   :  { %v1331_v46 = vpop.permute.xlu1 %1330  ;;  %v1489_v14 = vsel %vm4572_vm8, %v1325_v43, 0 }
 0x1c7   :  { %2149 = vrot.lane.b32.xlu0 %v2074_v11, %s3675_s23  ;;  %v1724_v11 = vor.u32 %v1723_v20, %v1719_v50  ;;  %v1750_v59 = vshll.u32 %v1489_v14, 16  ;;  %v2076_v60 = vrot.slane %v1489_v14, 1  ;;  %v4978_v6 = vsel %vm4572_vm8, 0, %v1331_v46 }
 0x1c8   :  { %2139 = vrot.lane.b32.xlu1 %v2059_v49, %s3675_s23  ;;  %v1769_v20 = vshll.u32 %v4978_v6, 16 }
 0x1c9   :  { %v1327_v40 = vpop.permute.xlu0 %1326  ;;  %v1729_v62 = vsel %vm1501_vm14, %v1724_v11, %v1728_v26  ;;  %v1752_v5 = vrot.slane %v1750_v59, 1 }
 0x1ca   :  { %v4929_v36 = vsel %vm4572_vm8, 0, %v1327_v40 }
 0x1cb   :  { %v1757_v42 = vshll.u32 %v4929_v36, 16  ;;  %v2078_v56 = vrot.slane %v4929_v36, 1  ;;  %1924 = vrot.lane.b32.xlu0 %v1741_v2, %s3676_s6  ;;  %v1755_v63 = vshrl.u32 %v4929_v36, 16 }
 0x1cc   :  { %1914 = vrot.lane.b32.xlu1 %v1681_v15, %s3676_s6 }
 0x1cd   :  { %v1759_v17 = vrot.slane %v1757_v42, 1  ;;  %v1337_v3 = vpop.permute.xlu0 %1336  ;;  %v2080_v23 = vsel %vm2014_vm11, %v2078_v56, %v2079_v53  ;;  %v1745_v53 = vshll.u32 %v4957_v29, 16 }
 0x1ce   :  { %v1492_v28 = vsel %vm4572_vm8, %v1337_v3, 0  ;;  %v1339_v42 = vpop.permute.xlu1 %1338 }
 0x1cf   :  { %v1760_v44 = vor.u32 %v1759_v17, %v1755_v63  ;;  %2153 = vrot.lane.b32.xlu0 %v2080_v23, %s3675_s23  ;;  %v1786_v39 = vshll.u32 %v1492_v28, 16  ;;  %v2085_v40 = vrot.slane %v1492_v28, 1  ;;  %v1747_v3 = vrot.slane %v1745_v53, 1 }
 0x1d0   :  { %1920 = vrot.lane.b32.xlu1 %v1717_v30, %s3676_s6  ;;  %v2075_v23 = vrot.slane %v4957_v29, 1 }
 0x1d1   :  { %v1333_v24 = vpop.permute.xlu0 %1332  ;;  %v1765_v32 = vsel %vm1501_vm14, %v1760_v44, %v1764_v22  ;;  %v1788_v63 = vrot.slane %v1786_v39, 1  ;;  %v1743_v44 = vshrl.u32 %v4957_v29, 16  ;;  %v2081_v39 = vrot.slane %v4978_v6, 1 }
 0x1d2   :  { %v1347_v41 = vpop.permute.xlu1 %1346  ;;  %v2077_v22 = vsel %vm2014_vm11, %v2075_v23, %v2076_v60  ;;  %v1491_v19 = vsel %vm4572_vm8, %v1333_v24, 0 }
 0x1d3   :  { %1928 = vrot.lane.b32.xlu0 %v1765_v32, %s3676_s6  ;;  %v1748_v25 = vor.u32 %v1747_v3, %v1743_v44  ;;  %v1774_v50 = vshll.u32 %v1491_v19, 16  ;;  %v2082_v48 = vrot.slane %v1491_v19, 1 }
 0x1d4   :  { %2147 = vrot.lane.b32.xlu1 %v2071_v38, %s3675_s23  ;;  %v1771_v38 = vrot.slane %v1769_v20, 1  ;;  %v5028_v20 = vsel %vm4572_vm8, 0, %v1347_v41 }
 0x1d5   :  { %v1335_v35 = vpop.permute.xlu0 %1334  ;;  %v1753_v46 = vsel %vm1501_vm14, %v1748_v25, %v1752_v5 }
 0x1d6   :  { %v4963_v33 = vsel %vm4572_vm8, 0, %v1335_v35 }
 0x1d7   :  { %v1781_v49 = vshll.u32 %v4963_v33, 16  ;;  %v2084_v45 = vrot.slane %v4963_v33, 1  ;;  %v1779_v43 = vshrl.u32 %v4963_v33, 16 }
 0x1d8   :  { %1922 = vrot.lane.b32.xlu1 %v1729_v62, %s3676_s6 }
 0x1d9   :  { %v1783_v56 = vrot.slane %v1781_v49, 1  ;;  %v1345_v2 = vpop.permute.xlu0 %1344  ;;  %v2086_v47 = vsel %vm2014_vm11, %v2084_v45, %v2085_v40  ;;  %v5003_v40 = vsel %vm4572_vm8, 0, %v1339_v42 }
 0x1da   :  { %2157 = vrot.lane.b32.xlu0 %v2086_v47, %s3675_s23  ;;  %v1494_v9 = vsel %vm4572_vm8, %v1345_v2, 0  ;;  %v4990_v32 = vpop.permute.xlu1 %1354  ;;  %v1776_v2 = vrot.slane %v1774_v50, 1  ;;  %v2083_v47 = vsel %vm2014_vm11, %v2081_v39, %v2082_v48  ;;  %v2087_v19 = vrot.slane %v5003_v40, 1 }
 0x1db   :  { %v1784_v17 = vor.u32 %v1783_v56, %v1779_v43  ;;  %v1810_v24 = vshll.u32 %v1494_v9, 16  ;;  %v2091_v35 = vrot.slane %v1494_v9, 1  ;;  %v1767_v56 = vshrl.u32 %v4978_v6, 16 }
 0x1dc   :  { %2151 = vrot.lane.b32.xlu1 %v2077_v22, %s3675_s23  ;;  %v1791_v25 = vshrl.u32 %v5003_v40, 16  ;;  %v1817_v39 = vshll.u32 %v5028_v20, 16 }
 0x1dd   :  { %v1341_v15 = vpop.permute.xlu0 %1340  ;;  %v1789_v12 = vsel %vm1501_vm14, %v1784_v17, %v1788_v63  ;;  %v1812_v59 = vrot.slane %v1810_v24, 1  ;;  %v1772_v62 = vor.u32 %v1771_v38, %v1767_v56  ;;  %v1793_v63 = vshll.u32 %v5003_v40, 16 }
 0x1de   :  { %1932 = vrot.lane.b32.xlu0 %v1789_v12, %s3676_s6  ;;  %v1493_v42 = vsel %vm4572_vm8, %v1341_v15, 0 }
 0x1df   :  { %v1798_v12 = vshll.u32 %v1493_v42, 16  ;;  %v2088_v44 = vrot.slane %v1493_v42, 1  ;;  %v1777_v5 = vsel %vm1501_vm14, %v1772_v62, %v1776_v2  ;;  %v1795_v22 = vrot.slane %v1793_v63, 1 }
 0x1e0   :  { %1926 = vrot.lane.b32.xlu1 %v1753_v46, %s3676_s6  ;;  %v1819_v62 = vrot.slane %v1817_v39, 1  ;;  %v2093_v63 = vrot.slane %v5028_v20, 1 }
 0x1e1   :  { %v1343_v30 = vpop.permute.xlu0 %1342  ;;  %v1800_v50 = vrot.slane %v1798_v12, 1  ;;  %v2089_v24 = vsel %vm2014_vm11, %v2087_v19, %v2088_v44  ;;  %v1796_v38 = vor.u32 %v1795_v22, %v1791_v25  ;;  %v1815_v44 = vshrl.u32 %v5028_v20, 16 }
 0x1e2   :  { %v4994_v28 = vsel %vm4572_vm8, 0, %v1343_v30  ;;  %v5006_v53 = vpop.permute.xlu1 %1368 }
 0x1e3   :  { %v1805_v11 = vshll.u32 %v4994_v28, 16  ;;  %v2090_v14 = vrot.slane %v4994_v28, 1  ;;  %v1803_v49 = vshrl.u32 %v4994_v28, 16 }
 0x1e4   :  { %2155 = vrot.lane.b32.xlu1 %v2083_v47, %s3675_s23 }
 0x1e5   :  { %v1807_v45 = vrot.slane %v1805_v11, 1  ;;  %v1353_v26 = vpop.permute.xlu0 %1352  ;;  %v2092_v43 = vsel %vm2014_vm11, %v2090_v14, %v2091_v35 }
 0x1e6   :  { %2161 = vrot.lane.b32.xlu0 %v2092_v43, %s3675_s23  ;;  %v5017_v23 = vpop.permute.xlu1 %2111  ;;  %v1496_v15 = vsel %vm4572_vm8, %v1353_v26, 0 }
 0x1e7   :  { %v1808_v60 = vor.u32 %v1807_v45, %v1803_v49  ;;  %v1834_v48 = vshll.u32 %v1496_v15, 16  ;;  %v2097_v35 = vrot.slane %v1496_v15, 1 }
 0x1e8   :  { %1930 = vrot.lane.b32.xlu1 %v1777_v5, %s3676_s6 }
 0x1e9   :  { %v1349_v17 = vpop.permute.xlu0 %1348  ;;  %v1813_v3 = vsel %vm1501_vm14, %v1808_v60, %v1812_v59  ;;  %v1801_v59 = vsel %vm1501_vm14, %v1796_v38, %v1800_v50  ;;  %v1836_v42 = vrot.slane %v1834_v48, 1 }
 0x1ea   :  { %1936 = vrot.lane.b32.xlu0 %v1813_v3, %s3676_s6  ;;  %v5030_v30 = vpop.permute.xlu1 %1362  ;;  %v1495_v11 = vsel %vm4572_vm8, %v1349_v17, 0  ;;  %v5054_v17 = vsel %vm4572_vm8, 0, %v4990_v32  ;;  %v1820_v32 = vor.u32 %v1819_v62, %v1815_v44 }
 0x1eb   :  { %v1822_v56 = vshll.u32 %v1495_v11, 16  ;;  %v2094_v2 = vrot.slane %v1495_v11, 1  ;;  %v1841_v19 = vshll.u32 %v5054_v17, 16 }
 0x1ec   :  { %2159 = vrot.lane.b32.xlu1 %v2089_v24, %s3675_s23 }
 0x1ed   :  { %v1351_v9 = vpop.permute.xlu0 %1350  ;;  %v1824_v5 = vrot.slane %v1822_v56, 1  ;;  %v2095_v22 = vsel %vm2014_vm11, %v2093_v63, %v2094_v2  ;;  %v1839_v56 = vshrl.u32 %v5054_v17, 16 }
 0x1ee   :  { %v5034_v46 = vsel %vm4572_vm8, 0, %v1351_v9  ;;  %v5045_v43 = vpop.permute.xlu1 %2115 }
 0x1ef   :  { %v1829_v14 = vshll.u32 %v5034_v46, 16  ;;  %v2096_v41 = vrot.slane %v5034_v46, 1  ;;  %v1827_v49 = vshrl.u32 %v5034_v46, 16  ;;  %v1825_v11 = vsel %vm1501_vm14, %v1820_v32, %v1824_v5  ;;  %v3655_v32 = vld [vmem:[%s5945_s3] sm:$0xff]  }
 0x1f0   :  { %1934 = vrot.lane.b32.xlu1 %v1801_v59, %s3676_s6  ;;  %3544 = vmatprep.subr.bf16.mxu1 %v3655_v32 }
 0x1f1   :  { %v1831_v45 = vrot.slane %v1829_v14, 1  ;;  %v2098_v26 = vsel %vm2014_vm11, %v2096_v41, %v2097_v35  ;;  %v1361_v47 = vpop.permute.xlu0 %1360  ;;  %v1843_v14 = vrot.slane %v1841_v19, 1  ;;  %v2099_v41 = vrot.slane %v5054_v17, 1  ;;  %3545 = vmatpush3.bf16.msra.mxu1 %v3655_v32 }
 0x1f2   :  { %2165 = vrot.lane.b32.xlu0 %v2098_v26, %s3675_s23  ;;  %v5057_v12 = vpop.permute.xlu1 %1892  ;;  %v1498_v9 = vsel %vm4572_vm8, %v1361_v47, 0 }
 0x1f3   :  { %v1832_v60 = vor.u32 %v1831_v45, %v1827_v49  ;;  %v1858_v39 = vshll.u32 %v1498_v9, 16  ;;  %v2103_v49 = vrot.slane %v1498_v9, 1 }
 0x1f4   :  { %2163 = vrot.lane.b32.xlu1 %v2095_v22, %s3675_s23 }
 0x1f5   :  { %v1837_v3 = vsel %vm1501_vm14, %v1832_v60, %v1836_v42  ;;  %v1357_v15 = vpop.permute.xlu0 %1356  ;;  %v1860_v44 = vrot.slane %v1858_v39, 1 }
 0x1f6   :  { %1940 = vrot.lane.b32.xlu0 %v1837_v3, %s3676_s6  ;;  %v1497_v25 = vsel %vm4572_vm8, %v1357_v15, 0  ;;  %v5068_v48 = vpop.permute.xlu1 %1890  ;;  %v1844_v3 = vor.u32 %v1843_v14, %v1839_v56  ;;  %v3657_v56 = vld [vmem:[%s5945_s3 + $0x10] ss:$0 sps:$4 sm:$0x33]  }
 0x1f7   :  { %v1846_v50 = vshll.u32 %v1497_v25, 16  ;;  %v2100_v24 = vrot.slane %v1497_v25, 1 }
 0x1f8   :  { %1938 = vrot.lane.b32.xlu1 %v1825_v11, %s3676_s6 }
 0x1f9   :  { %v1359_v35 = vpop.permute.xlu0 %1358  ;;  %v1848_v2 = vrot.slane %v1846_v50, 1  ;;  %v2101_v63 = vsel %vm2014_vm11, %v2099_v41, %v2100_v24  ;;  %v5099_v24 = vsel %vm4572_vm8, 0, %v5030_v30 }
 0x1fa   :  { %v5074_v38 = vsel %vm4572_vm8, 0, %v1359_v35  ;;  %v5080_v47 = vpop.permute.xlu1 %2119  ;;  %v3656_v35 = vld [vmem:[%s5945_s3 + $0x8] sm:$0xff]   ;;  %v1865_v41 = vshll.u32 %v5099_v24, 16  ;;  %s3308_s3 = sld [smem:[#allocation2 + $0x2]] }
 0x1fb   :  { %v1853_v45 = vshll.u32 %v5074_v38, 16  ;;  %v2102_v26 = vrot.slane %v5074_v38, 1  ;;  %v1851_v59 = vshrl.u32 %v5074_v38, 16  ;;  %v1849_v25 = vsel %vm1501_vm14, %v1844_v3, %v1848_v2  ;;  %3546 = vmatprep.subr.bf16.mxu1 %v3656_v35 }
 0x1fc   :  { %2167 = vrot.lane.b32.xlu1 %v2101_v63, %s3675_s23  ;;  %3547 = vmatpush3.bf16.msra.mxu1 %v3656_v35  ;;  %v1867_v2 = vrot.slane %v1865_v41, 1  ;;  %v1863_v63 = vshrl.u32 %v5099_v24, 16 }
 0x1fd   :  { %v1855_v42 = vrot.slane %v1853_v45, 1  ;;  %v2114_v60 = vpop.permute.xlu0 %2113  ;;  %v2104_v62 = vsel %vm2014_vm11, %v2102_v26, %v2103_v49  ;;  %3615 = vmatprep.subr.msk.bf16.mxu1 %vm371_vm0, %v3657_v56 }
 0x1fe   :  { %2169 = vrot.lane.b32.xlu0 %v2104_v62, %s3675_s23  ;;  %v1897_v15 = vpop.permute.xlu1 %1896 }
 0x1ff   :  { %v1856_v5 = vor.u32 %v1855_v42, %v1851_v59  ;;  %v2105_v59 = vrot.slane %v5099_v24, 1 }
 0x200   :  { %1942 = vrot.lane.b32.xlu1 %v1849_v25, %s3676_s6 }
 0x201   :  { %v1365_v22 = vpop.permute.xlu0 %1364  ;;  %v1861_v19 = vsel %vm1501_vm14, %v1856_v5, %v1860_v44 }
 0x202   :  { %1944 = vrot.lane.b32.xlu0 %v1861_v19, %s3676_s6  ;;  %v1895_v9 = vpop.permute.xlu1 %1894  ;;  %v1499_v11 = vsel %vm4572_vm8, %v1365_v22, 0  ;;  %v1868_v19 = vor.u32 %v1867_v2, %v1863_v63 }
 0x203   :  { %v1870_v30 = vshll.u32 %v1499_v11, 16  ;;  %v2106_v45 = vrot.slane %v1499_v11, 1 }
 0x205   :  { %v5094_v50 = vpop.permute.xlu0 %1366  ;;  %v1872_v3 = vrot.slane %v1870_v30, 1  ;;  %v2107_v44 = vsel %vm2014_vm11, %v2105_v59, %v2106_v45 }
 0x206   :  { %v5106_v14 = vpop.permute.xlu1 %2123 }
 0x207   :  { %v1873_v35 = vsel %vm1501_vm14, %v1868_v19, %v1872_v3 }
 0x209   :  { %v1889_v39 = vpop.permute.xlu0 %1888 }
 0x20a   :  { %v2178_v49 = vsel %vm274_vm1, %v4674_v18, %v1889_v39  ;;  %v1901_v18 = vpop.permute.xlu1 %1900 }
 0x20b   :  { %v5112_v26 = vsel %vm2239_vm15, %v2178_v49, %v2114_v60  ;;  %v2686_v60 = vsel %vm371_vm0, %v3657_v56, 0  ;;  %v2184_v49 = vsel %vm274_vm1, %v4667_v7, %v1895_v9  ;;  %vm2529_vm0 = vcmask 195584  }
 0x20c   :  { %2401 = vrot.lane.b32.xlu0 %v5112_v26, %s3677_s9  ;;  %2338 = vrot.lane.b32.xlu1 %v5112_v26, %s3678_s10  ;;  %v5169_v45 = vsel %vm2239_vm15, %v2184_v49, %v5080_v47 }
 0x20d   :  { %v1887_v42 = vpop.permute.xlu0 %1886  ;;  %3549 = vmatpush3.bf16.msra.mxu1 %v2686_v60 }
 0x20e   :  { %v2176_v62 = vsel %vm274_vm1, %v4589_v13, %v1887_v42  ;;  %v1899_v22 = vpop.permute.xlu1 %1898  ;;  %v2182_v13 = vsel %vm274_vm1, %v4633_v34, %v5057_v12 }
 0x20f   :  { %v5130_v5 = vsel %vm2239_vm15, %v2176_v62, %v5017_v23  ;;  %v2180_v23 = vsel %vm274_vm1, %v4621_v27, %v5068_v48  ;;  %v2186_v27 = vsel %vm274_vm1, %v4662_v4, %v1897_v15  ;;  %v2190_v15 = vsel %vm274_vm1, %v4702_v37, %v1901_v18 }
 0x210   :  { %2171 = vrot.lane.b32.xlu1 %v2107_v44, %s3675_s23  ;;  %2336 = vrot.lane.b32.xlu0 %v5130_v5, %s3678_s10  ;;  %v5150_v34 = vsel %vm2239_vm15, %v2180_v23, %v5045_v43  ;;  %v2188_v56 = vsel %vm274_vm1, %v4713_v52, %v1899_v22  ;;  %v5240_v23 = vsel %vm4572_vm8, 0, %v5094_v50  ;;  %v1500_v50 = vsel %vm4572_vm8, %v5006_v53, 0 }
 0x211   :  { %v2118_v25 = vpop.permute.xlu0 %2117  ;;  %v5188_v59 = vsel %vm2239_vm15, %v2188_v56, %v5106_v14 }
 0x212   :  { %v5139_v32 = vsel %vm2239_vm15, %v2182_v13, %v2118_v25  ;;  %v2128_v11 = vpop.permute.xlu1 %2127 }
 0x214   :  { %1946 = vrot.lane.b32.xlu1 %v1873_v35, %s3676_s6  ;;  %2405 = vrot.lane.b32.xlu0 %v5139_v32, %s3677_s9 }
 0x215   :  { %v2122_v41 = vpop.permute.xlu0 %2121 }
 0x216   :  { %v1905_v12 = vpop.permute.xlu1 %1904  ;;  %v5159_v48 = vsel %vm2239_vm15, %v2186_v27, %v2122_v41  ;;  %v1877_v41 = vshll.u32 %v5240_v23, 16 }
 0x217   :  { %v2194_v37 = vsel %vm274_vm1, %v4742_v58, %v1905_v12 }
 0x218   :  { %2340 = vrot.lane.b32.xlu0 %v5150_v34, %s3678_s10  ;;  %2342 = vrot.lane.b32.xlu1 %v5139_v32, %s3678_s10  ;;  %v1879_v49 = vrot.slane %v1877_v41, 1 }
 0x219   :  { %v2126_v39 = vpop.permute.xlu0 %2125 }
 0x21a   :  { %v1903_v43 = vpop.permute.xlu1 %1902  ;;  %v5178_v9 = vsel %vm2239_vm15, %v2190_v15, %v2126_v39  ;;  %v1875_v15 = vshrl.u32 %v5240_v23, 16 }
 0x21b   :  { %v2192_v60 = vsel %vm274_vm1, %v4755_v31, %v1903_v43 }
 0x21c   :  { %2403 = vrot.lane.b32.xlu1 %v5150_v34, %s3677_s9  ;;  %2409 = vrot.lane.b32.xlu0 %v5159_v48, %s3677_s9  ;;  %v5208_v62 = vsel %vm2239_vm15, %v2192_v60, %v2128_v11  ;;  %v1880_v53 = vor.u32 %v1879_v49, %v1875_v15 }
 0x21d   :  { %v2130_v30 = vpop.permute.xlu0 %2129 }
 0x21e   :  { %v2132_v4 = vpop.permute.xlu1 %2131  ;;  %v5197_v42 = vsel %vm2239_vm15, %v2194_v37, %v2130_v30 }
 0x220   :  { %2344 = vrot.lane.b32.xlu0 %v5169_v45, %s3678_s10  ;;  %2346 = vrot.lane.b32.xlu1 %v5159_v48, %s3678_s10 }
 0x221   :  { %v2134_v7 = vpop.permute.xlu0 %2133 }
 0x222   :  { %v1909_v47 = vpop.permute.xlu1 %1908 }
 0x223   :  { %v2198_v63 = vsel %vm274_vm1, %v4781_v1, %v1909_v47 }
 0x224   :  { %2407 = vrot.lane.b32.xlu1 %v5169_v45, %s3677_s9  ;;  %2413 = vrot.lane.b32.xlu0 %v5178_v9, %s3677_s9  ;;  %v5217_v3 = vsel %vm2239_vm15, %v2198_v63, %v2134_v7  ;;  %v1882_v7 = vshll.u32 %v1500_v50, 16  ;;  %v3679_v63 = vmov 0  }
 0x225   :  { %v2138_v2 = vpop.permute.xlu0 %2137 }
 0x226   :  { %v1907_v52 = vpop.permute.xlu1 %1906 }
 0x227   :  { %v2196_v44 = vsel %vm274_vm1, %v4790_v8, %v1907_v52 }
 0x228   :  { %2348 = vrot.lane.b32.xlu0 %v5188_v59, %s3678_s10  ;;  %2350 = vrot.lane.b32.xlu1 %v5178_v9, %s3678_s10  ;;  %v5226_v19 = vsel %vm2239_vm15, %v2196_v44, %v2132_v4 }
 0x229   :  { %v1917_v18 = vpop.permute.xlu0 %1916 }
 0x22a   :  { %v2136_v58 = vpop.permute.xlu1 %2135  ;;  %v2206_v27 = vsel %vm274_vm1, %v4802_v55, %v1917_v18  ;;  %v2108_v18 = vrot.slane %v5240_v23, 1 }
 0x22c   :  { %2411 = vrot.lane.b32.xlu1 %v5188_v59, %s3677_s9  ;;  %2417 = vrot.lane.b32.xlu0 %v5197_v42, %s3677_s9 }
 0x22d   :  { %v5205_v14 = vpop.permute.xlu0 %2145 }
 0x22e   :  { %v1913_v31 = vpop.permute.xlu1 %1912 }
 0x22f   :  { %v2202_v13 = vsel %vm274_vm1, %v4822_v10, %v1913_v31  ;;  %v2109_v31 = vrot.slane %v1500_v50, 1 }
 0x230   :  { %2352 = vrot.lane.b32.xlu0 %v5208_v62, %s3678_s10  ;;  %2354 = vrot.lane.b32.xlu1 %v5197_v42, %s3678_s10  ;;  %v5235_v35 = vsel %vm2239_vm15, %v2202_v13, %v2138_v2 }
 0x231   :  { %v2144_v22 = vpop.permute.xlu0 %2143 }
 0x232   :  { %v1911_v1 = vpop.permute.xlu1 %1910 }
 0x233   :  { %v2200_v11 = vsel %vm274_vm1, %v4844_v54, %v1911_v1  ;;  %v2110_v1 = vsel %vm2014_vm11, %v2108_v18, %v2109_v31 }
 0x234   :  { %2415 = vrot.lane.b32.xlu1 %v5208_v62, %s3677_s9  ;;  %2421 = vrot.lane.b32.xlu0 %v5217_v3, %s3677_s9  ;;  %v5250_v12 = vsel %vm2239_vm15, %v2200_v11, %v2136_v58 }
 0x235   :  { %v1919_v25 = vpop.permute.xlu0 %1918 }
 0x236   :  { %v2142_v8 = vpop.permute.xlu1 %2141  ;;  %v2208_v2 = vsel %vm274_vm1, %v4854_v21, %v1919_v25 }
 0x237   :  { %v2271_v43 = vsel %vm2239_vm15, %v2206_v27, %v2142_v8  ;;  %v5282_v60 = vsel %vm2239_vm15, %v2208_v2, %v2144_v22 }
 0x238   :  { %2356 = vrot.lane.b32.xlu0 %v5226_v19, %s3678_s10  ;;  %2358 = vrot.lane.b32.xlu1 %v5217_v3, %s3678_s10 }
 0x239   :  { %v2150_v39 = vpop.permute.xlu0 %2149 }
 0x23a   :  { %v2140_v10 = vpop.permute.xlu1 %2139 }
 0x23c   :  { %2419 = vrot.lane.b32.xlu1 %v5226_v19, %s3677_s9  ;;  %2425 = vrot.lane.b32.xlu0 %v5235_v35, %s3677_s9 }
 0x23d   :  { %v1925_v0 = vpop.permute.xlu0 %1924 }
 0x23e   :  { %v1915_v54 = vpop.permute.xlu1 %1914  ;;  %v2214_v11 = vsel %vm274_vm1, %v4887_v61, %v1925_v0 }
 0x23f   :  { %v2204_v30 = vsel %vm274_vm1, %v4893_v57, %v1915_v54  ;;  %v1884_v57 = vrot.slane %v1882_v7, 1 }
 0x240   :  { %2360 = vrot.lane.b32.xlu0 %v5250_v12, %s3678_s10  ;;  %2362 = vrot.lane.b32.xlu1 %v5235_v35, %s3678_s10  ;;  %v5269_v56 = vsel %vm2239_vm15, %v2204_v30, %v2140_v10 }
 0x241   :  { %v1885_v47 = vsel %vm1501_vm14, %v1880_v53, %v1884_v57  ;;  %v2154_v37 = vpop.permute.xlu0 %2153 }
 0x242   :  { %v1921_v4 = vpop.permute.xlu1 %1920 }
 0x243   :  { %v2210_v58 = vsel %vm274_vm1, %v4862_v16, %v1921_v4 }
 0x244   :  { %2423 = vrot.lane.b32.xlu1 %v5250_v12, %s3677_s9  ;;  %2429 = vrot.lane.b32.xlu0 %v2271_v43, %s3677_s9  ;;  %v5292_v13 = vsel %vm2239_vm15, %v2210_v58, %v5205_v14  ;;  %v5309_v14 = vsel %vm2239_vm15, %v2214_v11, %v2150_v39 }
 0x245   :  { %v1929_v44 = vpop.permute.xlu0 %1928 }
 0x246   :  { %v2148_v55 = vpop.permute.xlu1 %2147  ;;  %v2218_v50 = vsel %vm274_vm1, %v4929_v36, %v1929_v44 }
 0x247   :  { %v5327_v39 = vsel %vm2239_vm15, %v2218_v50, %v2154_v37 }
 0x248   :  { %2364 = vrot.lane.b32.xlu0 %v5269_v56, %s3678_s10  ;;  %2366 = vrot.lane.b32.xlu1 %v2271_v43, %s3678_s10 }
 0x24a   :  { %v1923_v52 = vpop.permute.xlu1 %1922 }
 0x24b   :  { %v2212_v22 = vsel %vm274_vm1, %v4925_v51, %v1923_v52 }
 0x24c   :  { %1948 = vrot.lane.b32.xlu0 %v1885_v47, %s3676_s6  ;;  %2427 = vrot.lane.b32.xlu1 %v5269_v56, %s3677_s9  ;;  %v2158_v8 = vpop.permute.xlu0 %2157  ;;  %v5300_v25 = vsel %vm2239_vm15, %v2212_v22, %v2148_v55 }
 0x24e   :  { %v2152_v21 = vpop.permute.xlu1 %2151 }
 0x250   :  { %2431 = vrot.lane.b32.xlu1 %v3679_v63, %s3677_s9  ;;  %2368 = vrot.lane.b32.xlu0 %v5282_v60, %s3678_s10  ;;  %v1933_v10 = vpop.permute.xlu0 %1932 }
 0x251   :  { %v2222_v4 = vsel %vm274_vm1, %v4963_v33, %v1933_v10 }
 0x252   :  { %v1927_v16 = vpop.permute.xlu1 %1926  ;;  %v5345_v15 = vsel %vm2239_vm15, %v2222_v4, %v2158_v8 }
 0x253   :  { %v2216_v41 = vsel %vm274_vm1, %v4957_v29, %v1927_v16 }
 0x254   :  { %2173 = vrot.lane.b32.xlu1 %v2110_v1, %s3675_s23  ;;  %2433 = vrot.lane.b32.xlu0 %v5292_v13, %s3677_s9  ;;  %v5318_v54 = vsel %vm2239_vm15, %v2216_v41, %v2152_v21 }
 0x256   :  { %v2156_v51 = vpop.permute.xlu1 %2155 }
 0x258   :  { %2370 = vrot.lane.b32.xlu1 %v5292_v13, %s3678_s10  ;;  %2372 = vrot.lane.b32.xlu0 %v5300_v25, %s3678_s10  ;;  %v2162_v27 = vpop.permute.xlu0 %2161 }
 0x25a   :  { %v1931_v61 = vpop.permute.xlu1 %1930 }
 0x25b   :  { %v2220_v49 = vsel %vm274_vm1, %v4978_v6, %v1931_v61 }
 0x25c   :  { %2435 = vrot.lane.b32.xlu1 %v5300_v25, %s3677_s9  ;;  %2437 = vrot.lane.b32.xlu0 %v5309_v14, %s3677_s9  ;;  %v1937_v43 = vpop.permute.xlu0 %1936  ;;  %v5336_v30 = vsel %vm2239_vm15, %v2220_v49, %v2156_v51 }
 0x25d   :  { %v2226_v55 = vsel %vm274_vm1, %v4994_v28, %v1937_v43 }
 0x25e   :  { %v2160_v29 = vpop.permute.xlu1 %2159  ;;  %v5363_v47 = vsel %vm2239_vm15, %v2226_v55, %v2162_v27 }
 0x260   :  { %2376 = vrot.lane.b32.xlu0 %v5318_v54, %s3678_s10  ;;  %2374 = vrot.lane.b32.xlu1 %v5309_v14, %s3678_s10 }
 0x262   :  { %v1935_v36 = vpop.permute.xlu1 %1934 }
 0x263   :  { %v2224_v0 = vsel %vm274_vm1, %v5003_v40, %v1935_v36 }
 0x264   :  { %2439 = vrot.lane.b32.xlu1 %v5318_v54, %s3677_s9  ;;  %2441 = vrot.lane.b32.xlu0 %v5327_v39, %s3677_s9  ;;  %v2166_v7 = vpop.permute.xlu0 %2165  ;;  %v5354_v53 = vsel %vm2239_vm15, %v2224_v0, %v2160_v29 }
 0x266   :  { %v2164_v6 = vpop.permute.xlu1 %2163 }
 0x268   :  { %2380 = vrot.lane.b32.xlu0 %v5336_v30, %s3678_s10  ;;  %2378 = vrot.lane.b32.xlu1 %v5327_v39, %s3678_s10  ;;  %v1941_v57 = vpop.permute.xlu0 %1940 }
 0x269   :  { %v2230_v52 = vsel %vm274_vm1, %v5034_v46, %v1941_v57 }
 0x26a   :  { %v1939_v33 = vpop.permute.xlu1 %1938  ;;  %v5381_v58 = vsel %vm2239_vm15, %v2230_v52, %v2166_v7 }
 0x26b   :  { %v2228_v2 = vsel %vm274_vm1, %v5028_v20, %v1939_v33 }
 0x26c   :  { %2443 = vrot.lane.b32.xlu1 %v5336_v30, %s3677_s9  ;;  %2445 = vrot.lane.b32.xlu0 %v5345_v15, %s3677_s9  ;;  %v5372_v28 = vsel %vm2239_vm15, %v2228_v2, %v2164_v6 }
 0x26e   :  { %v2168_v40 = vpop.permute.xlu1 %2167 }
 0x270   :  { %2384 = vrot.lane.b32.xlu0 %v5354_v53, %s3678_s10  ;;  %2382 = vrot.lane.b32.xlu1 %v5345_v15, %s3678_s10  ;;  %v2170_v37 = vpop.permute.xlu0 %2169 }
 0x272   :  { %v1943_v20 = vpop.permute.xlu1 %1942 }
 0x273   :  { %v2232_v63 = vsel %vm274_vm1, %v5054_v17, %v1943_v20 }
 0x274   :  { %2447 = vrot.lane.b32.xlu1 %v5354_v53, %s3677_s9  ;;  %2449 = vrot.lane.b32.xlu0 %v5363_v47, %s3677_s9  ;;  %v1945_v18 = vpop.permute.xlu0 %1944  ;;  %v5390_v31 = vsel %vm2239_vm15, %v2232_v63, %v2168_v40 }
 0x275   :  { %v2234_v44 = vsel %vm274_vm1, %v5074_v38, %v1945_v18 }
 0x276   :  { %v5400_v16 = vsel %vm2239_vm15, %v2234_v44, %v2170_v37 }
 0x278   :  { %2388 = vrot.lane.b32.xlu0 %v5372_v28, %s3678_s10  ;;  %2386 = vrot.lane.b32.xlu1 %v5363_v47, %s3678_s10 }
 0x27c   :  { %2451 = vrot.lane.b32.xlu1 %v5372_v28, %s3677_s9  ;;  %2453 = vrot.lane.b32.xlu0 %v5381_v58, %s3677_s9 }
 0x27e   :  { %v2339_v46 = vpop.permute.xlu1 %2338  ;;  %v2402_v21 = vpop.permute.xlu0 %2401 }
 0x280   :  { %2392 = vrot.lane.b32.xlu0 %v5390_v31, %s3678_s10  ;;  %2390 = vrot.lane.b32.xlu1 %v5381_v58, %s3678_s10 }
 0x282   :  { %v2172_v17 = vpop.permute.xlu1 %2171  ;;  %v2337_v1 = vpop.permute.xlu0 %2336 }
 0x283   :  { %v2466_v22 = vsel %vm2463_vm2, 0, %v2337_v1 }
 0x284   :  { %2455 = vrot.lane.b32.xlu1 %v5390_v31, %s3677_s9  ;;  %2457 = vrot.lane.b32.xlu0 %v5400_v16, %s3677_s9  ;;  %v2531_v38 = vsel %vm2529_vm0, %v2466_v22, %v2402_v21 }
 0x285   :  { %3550 = vmatprep.mubr.msk.bf16.mxu1 %vm2620_vm3, %v2531_v38 }
 0x286   :  { %v1947_v8 = vpop.permute.xlu1 %1946  ;;  %v2406_v11 = vpop.permute.xlu0 %2405 }
 0x287   :  { %v2236_v51 = vsel %vm274_vm1, %v5099_v24, %v1947_v8  ;;  %v2468_v24 = vsel %vm2463_vm2, %v5130_v5, %v2339_v46 }
 0x288   :  { %2394 = vrot.lane.b32.xlu1 %v5400_v16, %s3678_s10  ;;  %v5413_v10 = vsel %vm2239_vm15, %v2236_v51, %v2172_v17 }
 0x289   :  { %2396 = vrot.lane.b32.xlu0 %v5413_v10, %s3678_s10 }
 0x28a   :  { %v2343_v41 = vpop.permute.xlu1 %2342  ;;  %v2341_v61 = vpop.permute.xlu0 %2340 }
 0x28b   :  { %v2470_v50 = vsel %vm2463_vm2, %v5112_v26, %v2341_v61  ;;  %v2472_v26 = vsel %vm2463_vm2, %v5150_v34, %v2343_v41 }
 0x28c   :  { %2459 = vrot.lane.b32.xlu1 %v5413_v10, %s3677_s9  ;;  %v2535_v36 = vsel %vm2529_vm0, %v2470_v50, %v2406_v11 }
 0x28e   :  { %v2404_v27 = vpop.permute.xlu1 %2403  ;;  %v2410_v29 = vpop.permute.xlu0 %2409 }
 0x28f   :  { %v2533_v49 = vsel %vm2529_vm0, %v2468_v24, %v2404_v27 }
 0x290   :  { %3551 = vmatmul.mubr.msk.bf16.vlgmr.msra.gmra.mrb[0].mxu1 %vm2620_vm3, %v2533_v49 }
 0x291   :  { %3554 = vmatprep.mubr.msk.bf16.mxu1 %vm2620_vm3, %v2535_v36 }
 0x292   :  { %v2347_v43 = vpop.permute.xlu1 %2346  ;;  %v2345_v4 = vpop.permute.xlu0 %2344 }
 0x293   :  { %v2474_v6 = vsel %vm2463_vm2, %v5139_v32, %v2345_v4  ;;  %v2476_v32 = vsel %vm2463_vm2, %v5169_v45, %v2347_v43 }
 0x294   :  { %v2539_v33 = vsel %vm2529_vm0, %v2474_v6, %v2410_v29 }
 0x296   :  { %v2408_v7 = vpop.permute.xlu1 %2407  ;;  %v2414_v5 = vpop.permute.xlu0 %2413 }
 0x297   :  { %v2537_v0 = vsel %vm2529_vm0, %v2472_v26, %v2408_v7 }
 0x298   :  { %3555 = vmatmul.mubr.msk.bf16.gmra.mrb[4].mxu1 %vm2620_vm3, %v2537_v0 }
 0x299   :  { %3558 = vmatprep.mubr.msk.bf16.mxu1 %vm2620_vm3, %v2539_v33 }
 0x29a   :  { %v2351_v55 = vpop.permute.xlu1 %2350  ;;  %v2349_v57 = vpop.permute.xlu0 %2348 }
 0x29b   :  { %v2478_v40 = vsel %vm2463_vm2, %v5159_v48, %v2349_v57  ;;  %v2480_v48 = vsel %vm2463_vm2, %v5188_v59, %v2351_v55 }
 0x29c   :  { %v2543_v52 = vsel %vm2529_vm0, %v2478_v40, %v2414_v5 }
 0x29e   :  { %v2412_v2 = vpop.permute.xlu1 %2411  ;;  %v2418_v34 = vpop.permute.xlu0 %2417 }
 0x29f   :  { %v2541_v37 = vsel %vm2529_vm0, %v2476_v32, %v2412_v2 }
 0x2a0   :  { %3559 = vmatmul.mubr.msk.bf16.gmra.mrb[8].mxu1 %vm2620_vm3, %v2541_v37 }
 0x2a1   :  { %3562 = vmatprep.mubr.msk.bf16.mxu1 %vm2620_vm3, %v2543_v52 }
 0x2a2   :  { %v2355_v20 = vpop.permute.xlu1 %2354  ;;  %v2353_v18 = vpop.permute.xlu0 %2352 }
 0x2a3   :  { %v2482_v63 = vsel %vm2463_vm2, %v5178_v9, %v2353_v18  ;;  %v2484_v9 = vsel %vm2463_vm2, %v5208_v62, %v2355_v20 }
 0x2a4   :  { %v2547_v44 = vsel %vm2529_vm0, %v2482_v63, %v2418_v34 }
 0x2a6   :  { %v2416_v46 = vpop.permute.xlu1 %2415  ;;  %v2422_v45 = vpop.permute.xlu0 %2421 }
 0x2a7   :  { %v2545_v21 = vsel %vm2529_vm0, %v2480_v48, %v2416_v46 }
 0x2a8   :  { %3563 = vmatmul.mubr.msk.bf16.gmra.mrb[12].mxu1 %vm2620_vm3, %v2545_v21 }
 0x2a9   :  { %3566 = vmatprep.mubr.msk.bf16.mxu1 %vm2620_vm3, %v2547_v44 }
 0x2aa   :  { %v2359_v17 = vpop.permute.xlu1 %2358  ;;  %v2357_v1 = vpop.permute.xlu0 %2356 }
 0x2ab   :  { %v2486_v22 = vsel %vm2463_vm2, %v5197_v42, %v2357_v1  ;;  %v2488_v42 = vsel %vm2463_vm2, %v5226_v19, %v2359_v17 }
 0x2ac   :  { %v2551_v11 = vsel %vm2529_vm0, %v2486_v22, %v2422_v45 }
 0x2ae   :  { %v2420_v38 = vpop.permute.xlu1 %2419  ;;  %v2426_v59 = vpop.permute.xlu0 %2425 }
 0x2af   :  { %v2549_v8 = vsel %vm2529_vm0, %v2484_v9, %v2420_v38 }
 0x2b0   :  { %3567 = vmatmul.mubr.msk.bf16.gmra.mrb[16].mxu1 %vm2620_vm3, %v2549_v8 }
 0x2b1   :  { %3570 = vmatprep.mubr.msk.bf16.mxu1 %vm2620_vm3, %v2551_v11 }
 0x2b2   :  { %v2363_v51 = vpop.permute.xlu1 %2362  ;;  %v2361_v41 = vpop.permute.xlu0 %2360 }
 0x2b3   :  { %v2490_v61 = vsel %vm2463_vm2, %v5217_v3, %v2361_v41  ;;  %v2492_v3 = vsel %vm2463_vm2, %v5250_v12, %v2363_v51 }
 0x2b4   :  { %v2555_v27 = vsel %vm2529_vm0, %v2490_v61, %v2426_v59 }
 0x2b6   :  { %v2424_v50 = vpop.permute.xlu1 %2423  ;;  %v2430_v62 = vpop.permute.xlu0 %2429 }
 0x2b7   :  { %v2553_v24 = vsel %vm2529_vm0, %v2488_v42, %v2424_v50 }
 0x2b8   :  { %3571 = vmatmul.mubr.msk.bf16.gmra.mrb[20].mxu1 %vm2620_vm3, %v2553_v24 }
 0x2b9   :  { %3574 = vmatprep.mubr.msk.bf16.mxu1 %vm2620_vm3, %v2555_v27 }
 0x2ba   :  { %v2367_v29 = vpop.permute.xlu1 %2366  ;;  %v2365_v49 = vpop.permute.xlu0 %2364 }
 0x2bb   :  { %v2494_v36 = vsel %vm2463_vm2, %v5235_v35, %v2365_v49  ;;  %v2496_v5 = vsel %vm2463_vm2, %v5269_v56, %v2367_v29 }
 0x2bc   :  { %v2559_v6 = vsel %vm2529_vm0, %v2494_v36, %v2430_v62 }
 0x2be   :  { %v2428_v43 = vpop.permute.xlu1 %2427  ;;  %v1949_v19 = vpop.permute.xlu0 %1948 }
 0x2bf   :  { %v2557_v4 = vsel %vm2529_vm0, %v2492_v3, %v2428_v43  ;;  %v2238_v35 = vsel %vm274_vm1, %v5240_v23, %v1949_v19 }
 0x2c0   :  { %3575 = vmatmul.mubr.msk.bf16.gmra.mrb[24].mxu1 %vm2620_vm3, %v2557_v4 }
 0x2c1   :  { %3578 = vmatprep.mubr.msk.bf16.mxu1 %vm2620_vm3, %v2559_v6 }
 0x2c2   :  { %v5475_v26 = vpop.permute.xlu1 %2431  ;;  %v2369_v7 = vpop.permute.xlu0 %2368 }
 0x2c3   :  { %v2498_v12 = vsel %vm2463_vm2, 0, %v2369_v7  ;;  %v2561_v55 = vsel %vm2529_vm0, %v2496_v5, %v5475_v26 }
 0x2c6   :  { %v2174_v0 = vpop.permute.xlu1 %2173  ;;  %v2434_v33 = vpop.permute.xlu0 %2433 }
 0x2c7   :  { %v2303_v57 = vsel %vm2239_vm15, %v2238_v35, %v2174_v0  ;;  %v2563_v40 = vsel %vm2529_vm0, %v2498_v12, %v2434_v33 }
 0x2c8   :  { %3579 = vmatmul.mubr.msk.bf16.gmra.mrb[28].mxu1 %vm2620_vm3, %v2561_v55  ;;  %2461 = vrot.lane.b32.xlu0 %v2303_v57, %s3677_s9 }
 0x2c9   :  { %2398 = vrot.lane.b32.xlu1 %v2303_v57, %s3678_s10  ;;  %3582 = vmatprep.mubr.msk.bf16.mxu1 %vm2620_vm3, %v2563_v40  ;;  %v5554_v57 = vld [vmem:[%s5946_s4] ss:$0 sm:$0xff]  ;;  %v5556_v40 = vstv %s3308_s3 }
 0x2ca   :  { %v2371_v23 = vpop.permute.xlu1 %2370  ;;  %v2373_v56 = vpop.permute.xlu0 %2372 }
 0x2cb   :  { %v2500_v32 = vsel %vm2463_vm2, %v5282_v60, %v2371_v23  ;;  %v2502_v2 = vsel %vm2463_vm2, %v5292_v13, %v2373_v56 }
 0x2ce   :  { %v2436_v34 = vpop.permute.xlu1 %2435  ;;  %v2438_v37 = vpop.permute.xlu0 %2437 }
 0x2cf   :  { %v2565_v52 = vsel %vm2529_vm0, %v2500_v32, %v2436_v34  ;;  %v2567_v20 = vsel %vm2529_vm0, %v2502_v2, %v2438_v37 }
 0x2d0   :  { %3583 = vmatmul.mubr.msk.bf16.gmra.mrb[32].mxu1 %vm2620_vm3, %v2565_v52 }
 0x2d1   :  { %3586 = vmatprep.mubr.msk.bf16.mxu1 %vm2620_vm3, %v2567_v20 }
 0x2d2   :  { %v2375_v18 = vpop.permute.xlu1 %2374  ;;  %v2377_v63 = vpop.permute.xlu0 %2376 }
 0x2d3   :  { %v2504_v48 = vsel %vm2463_vm2, %v5300_v25, %v2375_v18  ;;  %v2506_v60 = vsel %vm2463_vm2, %v5309_v14, %v2377_v63 }
 0x2d6   :  { %v2440_v46 = vpop.permute.xlu1 %2439  ;;  %v2442_v13 = vpop.permute.xlu0 %2441 }
 0x2d7   :  { %v2569_v45 = vsel %vm2529_vm0, %v2504_v48, %v2440_v46  ;;  %v2571_v21 = vsel %vm2529_vm0, %v2506_v60, %v2442_v13 }
 0x2d8   :  { %3587 = vmatmul.mubr.msk.bf16.gmra.mrb[36].mxu1 %vm2620_vm3, %v2569_v45 }
 0x2d9   :  { %3590 = vmatprep.mubr.msk.bf16.mxu1 %vm2620_vm3, %v2571_v21 }
 0x2da   :  { %v2379_v44 = vpop.permute.xlu1 %2378  ;;  %v2381_v17 = vpop.permute.xlu0 %2380 }
 0x2db   :  { %v2508_v1 = vsel %vm2463_vm2, %v5318_v54, %v2379_v44  ;;  %v2510_v25 = vsel %vm2463_vm2, %v5327_v39, %v2381_v17 }
 0x2de   :  { %v2444_v22 = vpop.permute.xlu1 %2443  ;;  %v2446_v14 = vpop.permute.xlu0 %2445 }
 0x2df   :  { %v2573_v9 = vsel %vm2529_vm0, %v2508_v1, %v2444_v22  ;;  %v2575_v38 = vsel %vm2529_vm0, %v2510_v25, %v2446_v14 }
 0x2e0   :  { %3591 = vmatmul.mubr.msk.bf16.gmra.mrb[40].mxu1 %vm2620_vm3, %v2573_v9 }
 0x2e1   :  { %3594 = vmatprep.mubr.msk.bf16.mxu1 %vm2620_vm3, %v2575_v38 }
 0x2e2   :  { %v2383_v59 = vpop.permute.xlu1 %2382  ;;  %v2385_v8 = vpop.permute.xlu0 %2384 }
 0x2e3   :  { %v2512_v11 = vsel %vm2463_vm2, %v5336_v30, %v2383_v59  ;;  %v2514_v54 = vsel %vm2463_vm2, %v5345_v15, %v2385_v8 }
 0x2e6   :  { %v2448_v51 = vpop.permute.xlu1 %2447  ;;  %v2450_v39 = vpop.permute.xlu0 %2449 }
 0x2e7   :  { %v2577_v41 = vsel %vm2529_vm0, %v2512_v11, %v2448_v51  ;;  %v2579_v61 = vsel %vm2529_vm0, %v2514_v54, %v2450_v39 }
 0x2e8   :  { %3595 = vmatmul.mubr.msk.bf16.gmra.mrb[44].mxu1 %vm2620_vm3, %v2577_v41 }
 0x2e9   :  { %3598 = vmatprep.mubr.msk.bf16.mxu1 %vm2620_vm3, %v2579_v61 }
 0x2ea   :  { %v2387_v42 = vpop.permute.xlu1 %2386  ;;  %v2389_v50 = vpop.permute.xlu0 %2388 }
 0x2eb   :  { %v2516_v62 = vsel %vm2463_vm2, %v5354_v53, %v2387_v42  ;;  %v2518_v30 = vsel %vm2463_vm2, %v5363_v47, %v2389_v50 }
 0x2ee   :  { %v2452_v24 = vpop.permute.xlu1 %2451  ;;  %v2454_v15 = vpop.permute.xlu0 %2453 }
 0x2ef   :  { %v2581_v27 = vsel %vm2529_vm0, %v2516_v62, %v2452_v24  ;;  %v2583_v29 = vsel %vm2529_vm0, %v2518_v30, %v2454_v15 }
 0x2f0   :  { %3599 = vmatmul.mubr.msk.bf16.gmra.mrb[48].mxu1 %vm2620_vm3, %v2581_v27 }
 0x2f1   :  { %3602 = vmatprep.mubr.msk.bf16.mxu1 %vm2620_vm3, %v2583_v29 }
 0x2f2   :  { %v2391_v49 = vpop.permute.xlu1 %2390  ;;  %v2393_v36 = vpop.permute.xlu0 %2392 }
 0x2f3   :  { %v2520_v3 = vsel %vm2463_vm2, %v5372_v28, %v2391_v49  ;;  %v2522_v53 = vsel %vm2463_vm2, %v5381_v58, %v2393_v36 }
 0x2f6   :  { %v2456_v43 = vpop.permute.xlu1 %2455  ;;  %v2458_v47 = vpop.permute.xlu0 %2457 }
 0x2f7   :  { %v2585_v19 = vsel %vm2529_vm0, %v2520_v3, %v2456_v43  ;;  %v2587_v4 = vsel %vm2529_vm0, %v2522_v53, %v2458_v47 }
 0x2f8   :  { %3603 = vmatmul.mubr.msk.bf16.gmra.mrb[52].mxu1 %vm2620_vm3, %v2585_v19 }
 0x2f9   :  { %3606 = vmatprep.mubr.msk.bf16.mxu1 %vm2620_vm3, %v2587_v4 }
 0x2fa   :  { %v2395_v6 = vpop.permute.xlu1 %2394 }
 0x2fb   :  { %v2524_v7 = vsel %vm2463_vm2, %v5390_v31, %v2395_v6  ;;  %v2397_v58 = vpop.permute.xlu0 %2396 }
 0x2fc   :  { %v2526_v35 = vsel %vm2463_vm2, %v5400_v16, %v2397_v58 }
 0x2fe   :  { %v2460_v5 = vpop.permute.xlu1 %2459 }
 0x2ff   :  { %v2589_v28 = vsel %vm2529_vm0, %v2524_v7, %v2460_v5 }
 0x300   :  { %3607 = vmatmul.mubr.msk.bf16.gmra.mrb[56].mxu1 %vm2620_vm3, %v2589_v28 }
 0x33a   :  { %v2462_v12 = vpop.permute.xlu0 %2461 }
 0x33b   :  { %v2399_v0 = vpop.permute.xlu1 %2398  ;;  %v2591_v33 = vsel %vm2529_vm0, %v2526_v35, %v2462_v12 }
 0x33c   :  { %v2528_v55 = vsel %vm2463_vm2, %v5413_v10, %v2399_v0  ;;  %3610 = vmatprep.mubr.msk.bf16.mxu1 %vm2620_vm3, %v2591_v33 }
 0x33d   :  { %v2592_v31 = vsel %vm2529_vm0, %v2528_v55, %v5475_v26 }
 0x33e   :  { %3611 = vmatmul.mubr.msk.bf16.gmra.mrb[60].mxu1 %vm2620_vm3, %v2592_v31 }
 0x363   :  { %v3552_v16 = vpop.f32.mrb[0].mxu1 }
 0x364   :  { %v2731_v23 = vadd.f32 %v3552_v16, %v5554_v57  ;;  %v2722_v56 = vpop.f32.mrb[1].mxu1 }
 0x365   :  { %v2723_v10 = vadd.f32 %v5554_v57, %v2722_v56  ;;  %v3553_v32 = vpop.f32.mrb[2].mxu1 }
 0x366   :  { %vm2979_vm1 = vcmp.ge.f32.partialorder %v2731_v23, 0.0  ;;  %v3044_v26 = vmul.f32 %v5556_v40, %v2731_v23  ;;  %v2734_v2 = vadd.f32 %v3553_v32, %v5554_v57  ;;  %v2725_v34 = vpop.f32.mrb[3].mxu1 }
 0x367   :  { %vm2977_vm4 = vcmp.ge.f32.partialorder %v2723_v10, 0.0  ;;  %v3042_v37 = vmul.f32 %v5556_v40, %v2723_v10  ;;  %v2726_v52 = vadd.f32 %v5554_v57, %v2725_v34 }
 0x368   :  { %v3108_v20 = vsel %vm2979_vm1, %v2731_v23, %v3044_v26  ;;  %vm2980_vm5 = vcmp.ge.f32.partialorder %v2734_v2, 0.0  ;;  %v3045_v18 = vmul.f32 %v5556_v40, %v2734_v2 }
 0x369   :  { %3236 = vst.msk [vmem:[%s5949_s7 + $0x10] sm:$0xff] %vm2239_vm15, %v3108_v20  ;;  %v3106_v63 = vsel %vm2977_vm4, %v2723_v10, %v3042_v37  ;;  %vm2978_vm6 = vcmp.ge.f32.partialorder %v2726_v52, 0.0  ;;  %v3043_v48 = vmul.f32 %v5556_v40, %v2726_v52 }
 0x36a   :  { %3234 = vst.msk [vmem:[%s5949_s7] sm:$0xff] %vm2239_vm15, %v3106_v63  ;;  %v3109_v60 = vsel %vm2980_vm5, %v2734_v2, %v3045_v18 }
 0x36b   :  { %3237 = vst.msk [vmem:[%s5949_s7 + $0x18] sm:$0xff] %vm2239_vm15, %v3109_v60  ;;  %v3107_v46 = vsel %vm2978_vm6, %v2726_v52, %v3043_v48  ;;  %v3556_v13 = vpop.f32.mrb[4].mxu1 }
 0x36c   :  { %3235 = vst.msk [vmem:[%s5949_s7 + $0x8] sm:$0xff] %vm2239_vm15, %v3107_v46  ;;  %v2747_v45 = vadd.f32 %v3556_v13, %v5554_v57  ;;  %v2738_v21 = vpop.f32.mrb[5].mxu1 }
 0x36d   :  { %v2739_v44 = vadd.f32 %v5554_v57, %v2738_v21  ;;  %v3557_v17 = vpop.f32.mrb[6].mxu1 }
 0x36e   :  { %vm2983_vm7 = vcmp.ge.f32.partialorder %v2747_v45, 0.0  ;;  %v3048_v1 = vmul.f32 %v5556_v40, %v2747_v45  ;;  %v2750_v25 = vadd.f32 %v3557_v17, %v5554_v57  ;;  %v2741_v22 = vpop.f32.mrb[7].mxu1 }
 0x36f   :  { %vm2981_vm8 = vcmp.ge.f32.partialorder %v2739_v44, 0.0  ;;  %v3046_v14 = vmul.f32 %v5556_v40, %v2739_v44  ;;  %v2742_v9 = vadd.f32 %v5554_v57, %v2741_v22 }
 0x370   :  { %v3112_v38 = vsel %vm2983_vm7, %v2747_v45, %v3048_v1  ;;  %vm2984_vm9 = vcmp.ge.f32.partialorder %v2750_v25, 0.0  ;;  %v3049_v59 = vmul.f32 %v5556_v40, %v2750_v25 }
 0x371   :  { %3240 = vst.msk [vmem:[%s5949_s7 + $0x30] sm:$0xff] %vm2239_vm15, %v3112_v38  ;;  %v3110_v8 = vsel %vm2981_vm8, %v2739_v44, %v3046_v14  ;;  %vm2982_vm10 = vcmp.ge.f32.partialorder %v2742_v9, 0.0  ;;  %v3047_v11 = vmul.f32 %v5556_v40, %v2742_v9 }
 0x372   :  { %3238 = vst.msk [vmem:[%s5949_s7 + $0x20] sm:$0xff] %vm2239_vm15, %v3110_v8  ;;  %v3113_v54 = vsel %vm2984_vm9, %v2750_v25, %v3049_v59 }
 0x373   :  { %3241 = vst.msk [vmem:[%s5949_s7 + $0x38] sm:$0xff] %vm2239_vm15, %v3113_v54  ;;  %v3111_v51 = vsel %vm2982_vm10, %v2742_v9, %v3047_v11  ;;  %v3560_v39 = vpop.f32.mrb[8].mxu1 }
 0x374   :  { %3239 = vst.msk [vmem:[%s5949_s7 + $0x28] sm:$0xff] %vm2239_vm15, %v3111_v51  ;;  %v2763_v41 = vadd.f32 %v3560_v39, %v5554_v57  ;;  %v2754_v61 = vpop.f32.mrb[9].mxu1 }
 0x375   :  { %v2755_v42 = vadd.f32 %v5554_v57, %v2754_v61  ;;  %v3561_v50 = vpop.f32.mrb[10].mxu1 }
 0x376   :  { %vm2987_vm11 = vcmp.ge.f32.partialorder %v2763_v41, 0.0  ;;  %v3052_v62 = vmul.f32 %v5556_v40, %v2763_v41  ;;  %v2766_v30 = vadd.f32 %v3561_v50, %v5554_v57  ;;  %v2757_v24 = vpop.f32.mrb[11].mxu1 }
 0x377   :  { %vm2985_vm12 = vcmp.ge.f32.partialorder %v2755_v42, 0.0  ;;  %v3050_v15 = vmul.f32 %v5556_v40, %v2755_v42  ;;  %v2758_v27 = vadd.f32 %v5554_v57, %v2757_v24 }
 0x378   :  { %v3116_v29 = vsel %vm2987_vm11, %v2763_v41, %v3052_v62  ;;  %vm2988_vm13 = vcmp.ge.f32.partialorder %v2766_v30, 0.0  ;;  %v3053_v49 = vmul.f32 %v5556_v40, %v2766_v30 }
 0x379   :  { %3244 = vst.msk [vmem:[%s5949_s7 + $0x50] sm:$0xff] %vm2239_vm15, %v3116_v29  ;;  %v3114_v36 = vsel %vm2985_vm12, %v2755_v42, %v3050_v15  ;;  %vm2986_vm14 = vcmp.ge.f32.partialorder %v2758_v27, 0.0  ;;  %v3051_v3 = vmul.f32 %v5556_v40, %v2758_v27 }
 0x37a   :  { %3242 = vst.msk [vmem:[%s5949_s7 + $0x40] sm:$0xff] %vm2239_vm15, %v3114_v36  ;;  %v3117_v53 = vsel %vm2988_vm13, %v2766_v30, %v3053_v49 }
 0x37b   :  { %3245 = vst.msk [vmem:[%s5949_s7 + $0x58] sm:$0xff] %vm2239_vm15, %v3117_v53  ;;  %v3115_v43 = vsel %vm2986_vm14, %v2758_v27, %v3051_v3  ;;  %v3564_v47 = vpop.f32.mrb[12].mxu1 }
 0x37c   :  { %3243 = vst.msk [vmem:[%s5949_s7 + $0x48] sm:$0xff] %vm2239_vm15, %v3115_v43  ;;  %v2779_v19 = vadd.f32 %v3564_v47, %v5554_v57  ;;  %v2770_v4 = vpop.f32.mrb[13].mxu1 }
 0x37d   :  { %v2771_v6 = vadd.f32 %v5554_v57, %v2770_v4  ;;  %v3565_v7 = vpop.f32.mrb[14].mxu1 }
 0x37e   :  { %vm2991_vm0 = vcmp.ge.f32.partialorder %v2779_v19, 0.0  ;;  %v3056_v5 = vmul.f32 %v5556_v40, %v2779_v19  ;;  %v2782_v28 = vadd.f32 %v3565_v7, %v5554_v57  ;;  %v2773_v58 = vpop.f32.mrb[15].mxu1 }
 0x37f   :  { %vm2989_vm2 = vcmp.ge.f32.partialorder %v2771_v6, 0.0  ;;  %v3054_v35 = vmul.f32 %v5556_v40, %v2771_v6  ;;  %v2774_v12 = vadd.f32 %v5554_v57, %v2773_v58 }
 0x380   :  { %v3120_v0 = vsel %vm2991_vm0, %v2779_v19, %v3056_v5  ;;  %vm2992_vm3 = vcmp.ge.f32.partialorder %v2782_v28, 0.0  ;;  %v3057_v33 = vmul.f32 %v5556_v40, %v2782_v28 }
 0x381   :  { %3248 = vst.msk [vmem:[%s5949_s7 + $0x70] sm:$0xff] %vm2239_vm15, %v3120_v0  ;;  %v3118_v55 = vsel %vm2989_vm2, %v2771_v6, %v3054_v35  ;;  %vm2990_vm1 = vcmp.ge.f32.partialorder %v2774_v12, 0.0  ;;  %v3055_v31 = vmul.f32 %v5556_v40, %v2774_v12 }
 0x382   :  { %3246 = vst.msk [vmem:[%s5949_s7 + $0x60] sm:$0xff] %vm2239_vm15, %v3118_v55  ;;  %v3121_v16 = vsel %vm2992_vm3, %v2782_v28, %v3057_v33 }
 0x383   :  { %3249 = vst.msk [vmem:[%s5949_s7 + $0x78] sm:$0xff] %vm2239_vm15, %v3121_v16  ;;  %v3119_v23 = vsel %vm2990_vm1, %v2774_v12, %v3055_v31  ;;  %v3568_v56 = vpop.f32.mrb[16].mxu1 }
 0x384   :  { %3247 = vst.msk [vmem:[%s5949_s7 + $0x68] sm:$0xff] %vm2239_vm15, %v3119_v23  ;;  %v2795_v10 = vadd.f32 %v3568_v56, %v5554_v57  ;;  %v2786_v32 = vpop.f32.mrb[17].mxu1 }
 0x385   :  { %v2787_v26 = vadd.f32 %v5554_v57, %v2786_v32  ;;  %v3569_v2 = vpop.f32.mrb[18].mxu1 }
 0x386   :  { %vm2995_vm4 = vcmp.ge.f32.partialorder %v2795_v10, 0.0  ;;  %v3060_v34 = vmul.f32 %v5556_v40, %v2795_v10  ;;  %v2798_v37 = vadd.f32 %v3569_v2, %v5554_v57  ;;  %v2789_v52 = vpop.f32.mrb[19].mxu1 }
 0x387   :  { %vm2993_vm5 = vcmp.ge.f32.partialorder %v2787_v26, 0.0  ;;  %v3058_v20 = vmul.f32 %v5556_v40, %v2787_v26  ;;  %v2790_v18 = vadd.f32 %v5554_v57, %v2789_v52 }
 0x388   :  { %v3124_v63 = vsel %vm2995_vm4, %v2795_v10, %v3060_v34  ;;  %vm2996_vm6 = vcmp.ge.f32.partialorder %v2798_v37, 0.0  ;;  %v3061_v48 = vmul.f32 %v5556_v40, %v2798_v37 }
 0x389   :  { %3252 = vst.msk [vmem:[%s5949_s7 + $0x90] sm:$0xff] %vm2239_vm15, %v3124_v63  ;;  %v3122_v60 = vsel %vm2993_vm5, %v2787_v26, %v3058_v20  ;;  %vm2994_vm7 = vcmp.ge.f32.partialorder %v2790_v18, 0.0  ;;  %v3059_v46 = vmul.f32 %v5556_v40, %v2790_v18 }
 0x38a   :  { %3250 = vst.msk [vmem:[%s5949_s7 + $0x80] sm:$0xff] %vm2239_vm15, %v3122_v60  ;;  %v3125_v13 = vsel %vm2996_vm6, %v2798_v37, %v3061_v48 }
 0x38b   :  { %3253 = vst.msk [vmem:[%s5949_s7 + $0x98] sm:$0xff] %vm2239_vm15, %v3125_v13  ;;  %v3123_v45 = vsel %vm2994_vm7, %v2790_v18, %v3059_v46  ;;  %v3572_v21 = vpop.f32.mrb[20].mxu1 }
 0x38c   :  { %3251 = vst.msk [vmem:[%s5949_s7 + $0x88] sm:$0xff] %vm2239_vm15, %v3123_v45  ;;  %v2811_v44 = vadd.f32 %v3572_v21, %v5554_v57  ;;  %v2802_v17 = vpop.f32.mrb[21].mxu1 }
 0x38d   :  { %v2803_v1 = vadd.f32 %v5554_v57, %v2802_v17  ;;  %v3573_v25 = vpop.f32.mrb[22].mxu1 }
 0x38e   :  { %vm2999_vm8 = vcmp.ge.f32.partialorder %v2811_v44, 0.0  ;;  %v3064_v22 = vmul.f32 %v5556_v40, %v2811_v44  ;;  %v2814_v14 = vadd.f32 %v3573_v25, %v5554_v57  ;;  %v2805_v9 = vpop.f32.mrb[23].mxu1 }
 0x38f   :  { %vm2997_vm9 = vcmp.ge.f32.partialorder %v2803_v1, 0.0  ;;  %v3062_v38 = vmul.f32 %v5556_v40, %v2803_v1  ;;  %v2806_v59 = vadd.f32 %v5554_v57, %v2805_v9 }
 0x390   :  { %v3128_v8 = vsel %vm2999_vm8, %v2811_v44, %v3064_v22  ;;  %vm3000_vm10 = vcmp.ge.f32.partialorder %v2814_v14, 0.0  ;;  %v3065_v11 = vmul.f32 %v5556_v40, %v2814_v14 }
 0x391   :  { %3256 = vst.msk [vmem:[%s5949_s7 + $0xb0] sm:$0xff] %vm2239_vm15, %v3128_v8  ;;  %v3126_v54 = vsel %vm2997_vm9, %v2803_v1, %v3062_v38  ;;  %vm2998_vm11 = vcmp.ge.f32.partialorder %v2806_v59, 0.0  ;;  %v3063_v51 = vmul.f32 %v5556_v40, %v2806_v59 }
 0x392   :  { %3254 = vst.msk [vmem:[%s5949_s7 + $0xa0] sm:$0xff] %vm2239_vm15, %v3126_v54  ;;  %v3129_v39 = vsel %vm3000_vm10, %v2814_v14, %v3065_v11 }
 0x393   :  { %3257 = vst.msk [vmem:[%s5949_s7 + $0xb8] sm:$0xff] %vm2239_vm15, %v3129_v39  ;;  %v3127_v41 = vsel %vm2998_vm11, %v2806_v59, %v3063_v51  ;;  %v3576_v61 = vpop.f32.mrb[24].mxu1 }
 0x394   :  { %3255 = vst.msk [vmem:[%s5949_s7 + $0xa8] sm:$0xff] %vm2239_vm15, %v3127_v41  ;;  %v2827_v42 = vadd.f32 %v3576_v61, %v5554_v57  ;;  %v2818_v50 = vpop.f32.mrb[25].mxu1 }
 0x395   :  { %v2819_v62 = vadd.f32 %v5554_v57, %v2818_v50  ;;  %v3577_v30 = vpop.f32.mrb[26].mxu1 }
 0x396   :  { %vm3003_vm12 = vcmp.ge.f32.partialorder %v2827_v42, 0.0  ;;  %v3068_v24 = vmul.f32 %v5556_v40, %v2827_v42  ;;  %v2830_v15 = vadd.f32 %v3577_v30, %v5554_v57  ;;  %v2821_v27 = vpop.f32.mrb[27].mxu1 }
 0x397   :  { %vm3001_vm13 = vcmp.ge.f32.partialorder %v2819_v62, 0.0  ;;  %v3066_v29 = vmul.f32 %v5556_v40, %v2819_v62  ;;  %v2822_v49 = vadd.f32 %v5554_v57, %v2821_v27 }
 0x398   :  { %v3132_v36 = vsel %vm3003_vm12, %v2827_v42, %v3068_v24  ;;  %vm3004_vm14 = vcmp.ge.f32.partialorder %v2830_v15, 0.0  ;;  %v3069_v3 = vmul.f32 %v5556_v40, %v2830_v15 }
 0x399   :  { %3260 = vst.msk [vmem:[%s5949_s7 + $0xd0] sm:$0xff] %vm2239_vm15, %v3132_v36  ;;  %v3130_v53 = vsel %vm3001_vm13, %v2819_v62, %v3066_v29  ;;  %vm3002_vm0 = vcmp.ge.f32.partialorder %v2822_v49, 0.0  ;;  %v3067_v43 = vmul.f32 %v5556_v40, %v2822_v49 }
 0x39a   :  { %3258 = vst.msk [vmem:[%s5949_s7 + $0xc0] sm:$0xff] %vm2239_vm15, %v3130_v53  ;;  %v3133_v47 = vsel %vm3004_vm14, %v2830_v15, %v3069_v3 }
 0x39b   :  { %3261 = vst.msk [vmem:[%s5949_s7 + $0xd8] sm:$0xff] %vm2239_vm15, %v3133_v47  ;;  %v3131_v19 = vsel %vm3002_vm0, %v2822_v49, %v3067_v43  ;;  %v3580_v4 = vpop.f32.mrb[28].mxu1 }
 0x39c   :  { %3259 = vst.msk [vmem:[%s5949_s7 + $0xc8] sm:$0xff] %vm2239_vm15, %v3131_v19  ;;  %v2843_v6 = vadd.f32 %v3580_v4, %v5554_v57  ;;  %v2834_v7 = vpop.f32.mrb[29].mxu1 }
 0x39d   :  { %v2835_v5 = vadd.f32 %v5554_v57, %v2834_v7  ;;  %v3581_v28 = vpop.f32.mrb[30].mxu1 }
 0x39e   :  { %vm3007_vm2 = vcmp.ge.f32.partialorder %v2843_v6, 0.0  ;;  %v3072_v58 = vmul.f32 %v5556_v40, %v2843_v6  ;;  %v2846_v35 = vadd.f32 %v3581_v28, %v5554_v57  ;;  %v2837_v12 = vpop.f32.mrb[31].mxu1 }
 0x39f   :  { %vm3005_vm3 = vcmp.ge.f32.partialorder %v2835_v5, 0.0  ;;  %v3070_v0 = vmul.f32 %v5556_v40, %v2835_v5  ;;  %v2838_v33 = vadd.f32 %v5554_v57, %v2837_v12 }
 0x3a0   :  { %v3136_v55 = vsel %vm3007_vm2, %v2843_v6, %v3072_v58  ;;  %vm3008_vm1 = vcmp.ge.f32.partialorder %v2846_v35, 0.0  ;;  %v3073_v31 = vmul.f32 %v5556_v40, %v2846_v35 }
 0x3a1   :  { %3264 = vst.msk [vmem:[%s5949_s7 + $0xf0] sm:$0xff] %vm2239_vm15, %v3136_v55  ;;  %v3134_v16 = vsel %vm3005_vm3, %v2835_v5, %v3070_v0  ;;  %vm3006_vm4 = vcmp.ge.f32.partialorder %v2838_v33, 0.0  ;;  %v3071_v23 = vmul.f32 %v5556_v40, %v2838_v33 }
 0x3a2   :  { %3262 = vst.msk [vmem:[%s5949_s7 + $0xe0] sm:$0xff] %vm2239_vm15, %v3134_v16  ;;  %v3137_v56 = vsel %vm3008_vm1, %v2846_v35, %v3073_v31 }
 0x3a3   :  { %3265 = vst.msk [vmem:[%s5949_s7 + $0xf8] sm:$0xff] %vm2239_vm15, %v3137_v56  ;;  %v3135_v10 = vsel %vm3006_vm4, %v2838_v33, %v3071_v23  ;;  %v3584_v32 = vpop.f32.mrb[32].mxu1 }
 0x3a4   :  { %3263 = vst.msk [vmem:[%s5949_s7 + $0xe8] sm:$0xff] %vm2239_vm15, %v3135_v10  ;;  %v2859_v26 = vadd.f32 %v3584_v32, %v5554_v57  ;;  %v2850_v2 = vpop.f32.mrb[33].mxu1 }
 0x3a5   :  { %v2851_v34 = vadd.f32 %v5554_v57, %v2850_v2  ;;  %v3585_v37 = vpop.f32.mrb[34].mxu1 }
 0x3a6   :  { %vm3011_vm5 = vcmp.ge.f32.partialorder %v2859_v26, 0.0  ;;  %v3076_v52 = vmul.f32 %v5556_v40, %v2859_v26  ;;  %v2862_v20 = vadd.f32 %v3585_v37, %v5554_v57  ;;  %v2853_v18 = vpop.f32.mrb[35].mxu1 }
 0x3a7   :  { %vm3009_vm6 = vcmp.ge.f32.partialorder %v2851_v34, 0.0  ;;  %v3074_v63 = vmul.f32 %v5556_v40, %v2851_v34  ;;  %v2854_v48 = vadd.f32 %v5554_v57, %v2853_v18 }
 0x3a8   :  { %v3140_v60 = vsel %vm3011_vm5, %v2859_v26, %v3076_v52  ;;  %vm3012_vm7 = vcmp.ge.f32.partialorder %v2862_v20, 0.0  ;;  %v3077_v46 = vmul.f32 %v5556_v40, %v2862_v20 }
 0x3a9   :  { %3268 = vst.msk [vmem:[%s5949_s7 + $0x110] sm:$0xff] %vm2239_vm15, %v3140_v60  ;;  %v3138_v13 = vsel %vm3009_vm6, %v2851_v34, %v3074_v63  ;;  %vm3010_vm8 = vcmp.ge.f32.partialorder %v2854_v48, 0.0  ;;  %v3075_v45 = vmul.f32 %v5556_v40, %v2854_v48 }
 0x3aa   :  { %3266 = vst.msk [vmem:[%s5949_s7 + $0x100] sm:$0xff] %vm2239_vm15, %v3138_v13  ;;  %v3141_v21 = vsel %vm3012_vm7, %v2862_v20, %v3077_v46 }
 0x3ab   :  { %3269 = vst.msk [vmem:[%s5949_s7 + $0x118] sm:$0xff] %vm2239_vm15, %v3141_v21  ;;  %v3139_v44 = vsel %vm3010_vm8, %v2854_v48, %v3075_v45  ;;  %v3588_v17 = vpop.f32.mrb[36].mxu1 }
 0x3ac   :  { %3267 = vst.msk [vmem:[%s5949_s7 + $0x108] sm:$0xff] %vm2239_vm15, %v3139_v44  ;;  %v2875_v1 = vadd.f32 %v3588_v17, %v5554_v57  ;;  %v2866_v25 = vpop.f32.mrb[37].mxu1 }
 0x3ad   :  { %v2867_v22 = vadd.f32 %v5554_v57, %v2866_v25  ;;  %v3589_v14 = vpop.f32.mrb[38].mxu1 }
 0x3ae   :  { %vm3015_vm9 = vcmp.ge.f32.partialorder %v2875_v1, 0.0  ;;  %v3080_v9 = vmul.f32 %v5556_v40, %v2875_v1  ;;  %v2878_v38 = vadd.f32 %v3589_v14, %v5554_v57  ;;  %v2869_v59 = vpop.f32.mrb[39].mxu1 }
 0x3af   :  { %vm3013_vm10 = vcmp.ge.f32.partialorder %v2867_v22, 0.0  ;;  %v3078_v8 = vmul.f32 %v5556_v40, %v2867_v22  ;;  %v2870_v11 = vadd.f32 %v5554_v57, %v2869_v59 }
 0x3b0   :  { %v3144_v54 = vsel %vm3015_vm9, %v2875_v1, %v3080_v9  ;;  %vm3016_vm11 = vcmp.ge.f32.partialorder %v2878_v38, 0.0  ;;  %v3081_v51 = vmul.f32 %v5556_v40, %v2878_v38 }
 0x3b1   :  { %3272 = vst.msk [vmem:[%s5949_s7 + $0x130] sm:$0xff] %vm2239_vm15, %v3144_v54  ;;  %v3142_v39 = vsel %vm3013_vm10, %v2867_v22, %v3078_v8  ;;  %vm3014_vm12 = vcmp.ge.f32.partialorder %v2870_v11, 0.0  ;;  %v3079_v41 = vmul.f32 %v5556_v40, %v2870_v11 }
 0x3b2   :  { %3270 = vst.msk [vmem:[%s5949_s7 + $0x120] sm:$0xff] %vm2239_vm15, %v3142_v39  ;;  %v3145_v61 = vsel %vm3016_vm11, %v2878_v38, %v3081_v51 }
 0x3b3   :  { %3273 = vst.msk [vmem:[%s5949_s7 + $0x138] sm:$0xff] %vm2239_vm15, %v3145_v61  ;;  %v3143_v42 = vsel %vm3014_vm12, %v2870_v11, %v3079_v41  ;;  %v3592_v50 = vpop.f32.mrb[40].mxu1 }
 0x3b4   :  { %3271 = vst.msk [vmem:[%s5949_s7 + $0x128] sm:$0xff] %vm2239_vm15, %v3143_v42  ;;  %v2891_v62 = vadd.f32 %v3592_v50, %v5554_v57  ;;  %v2882_v30 = vpop.f32.mrb[41].mxu1 }
 0x3b5   :  { %v2883_v24 = vadd.f32 %v5554_v57, %v2882_v30  ;;  %v3593_v15 = vpop.f32.mrb[42].mxu1 }
 0x3b6   :  { %vm3019_vm13 = vcmp.ge.f32.partialorder %v2891_v62, 0.0  ;;  %v3084_v27 = vmul.f32 %v5556_v40, %v2891_v62  ;;  %v2894_v29 = vadd.f32 %v3593_v15, %v5554_v57  ;;  %v2885_v49 = vpop.f32.mrb[43].mxu1 }
 0x3b7   :  { %vm3017_vm14 = vcmp.ge.f32.partialorder %v2883_v24, 0.0  ;;  %v3082_v36 = vmul.f32 %v5556_v40, %v2883_v24  ;;  %v2886_v3 = vadd.f32 %v5554_v57, %v2885_v49 }
 0x3b8   :  { %v3148_v53 = vsel %vm3019_vm13, %v2891_v62, %v3084_v27  ;;  %vm3020_vm0 = vcmp.ge.f32.partialorder %v2894_v29, 0.0  ;;  %v3085_v43 = vmul.f32 %v5556_v40, %v2894_v29 }
 0x3b9   :  { %3276 = vst.msk [vmem:[%s5949_s7 + $0x150] sm:$0xff] %vm2239_vm15, %v3148_v53  ;;  %v3146_v47 = vsel %vm3017_vm14, %v2883_v24, %v3082_v36  ;;  %vm3018_vm2 = vcmp.ge.f32.partialorder %v2886_v3, 0.0  ;;  %v3083_v19 = vmul.f32 %v5556_v40, %v2886_v3 }
 0x3ba   :  { %3274 = vst.msk [vmem:[%s5949_s7 + $0x140] sm:$0xff] %vm2239_vm15, %v3146_v47  ;;  %v3149_v4 = vsel %vm3020_vm0, %v2894_v29, %v3085_v43 }
 0x3bb   :  { %3277 = vst.msk [vmem:[%s5949_s7 + $0x158] sm:$0xff] %vm2239_vm15, %v3149_v4  ;;  %v3147_v6 = vsel %vm3018_vm2, %v2886_v3, %v3083_v19  ;;  %v3596_v7 = vpop.f32.mrb[44].mxu1 }
 0x3bc   :  { %3275 = vst.msk [vmem:[%s5949_s7 + $0x148] sm:$0xff] %vm2239_vm15, %v3147_v6  ;;  %v2907_v5 = vadd.f32 %v3596_v7, %v5554_v57  ;;  %v2898_v28 = vpop.f32.mrb[45].mxu1 }
 0x3bd   :  { %v2899_v58 = vadd.f32 %v5554_v57, %v2898_v28  ;;  %v3597_v35 = vpop.f32.mrb[46].mxu1 }
 0x3be   :  { %vm3023_vm3 = vcmp.ge.f32.partialorder %v2907_v5, 0.0  ;;  %v3088_v12 = vmul.f32 %v5556_v40, %v2907_v5  ;;  %v2910_v0 = vadd.f32 %v3597_v35, %v5554_v57  ;;  %v2901_v33 = vpop.f32.mrb[47].mxu1 }
 0x3bf   :  { %vm3021_vm1 = vcmp.ge.f32.partialorder %v2899_v58, 0.0  ;;  %v3086_v55 = vmul.f32 %v5556_v40, %v2899_v58  ;;  %v2902_v31 = vadd.f32 %v5554_v57, %v2901_v33 }
 0x3c0   :  { %v3152_v16 = vsel %vm3023_vm3, %v2907_v5, %v3088_v12  ;;  %vm3024_vm4 = vcmp.ge.f32.partialorder %v2910_v0, 0.0  ;;  %v3089_v23 = vmul.f32 %v5556_v40, %v2910_v0 }
 0x3c1   :  { %3280 = vst.msk [vmem:[%s5949_s7 + $0x170] sm:$0xff] %vm2239_vm15, %v3152_v16  ;;  %v3150_v56 = vsel %vm3021_vm1, %v2899_v58, %v3086_v55  ;;  %vm3022_vm5 = vcmp.ge.f32.partialorder %v2902_v31, 0.0  ;;  %v3087_v10 = vmul.f32 %v5556_v40, %v2902_v31 }
 0x3c2   :  { %3278 = vst.msk [vmem:[%s5949_s7 + $0x160] sm:$0xff] %vm2239_vm15, %v3150_v56  ;;  %v3153_v32 = vsel %vm3024_vm4, %v2910_v0, %v3089_v23 }
 0x3c3   :  { %3281 = vst.msk [vmem:[%s5949_s7 + $0x178] sm:$0xff] %vm2239_vm15, %v3153_v32  ;;  %v3151_v26 = vsel %vm3022_vm5, %v2902_v31, %v3087_v10  ;;  %v3600_v2 = vpop.f32.mrb[48].mxu1 }
 0x3c4   :  { %3279 = vst.msk [vmem:[%s5949_s7 + $0x168] sm:$0xff] %vm2239_vm15, %v3151_v26  ;;  %v2923_v34 = vadd.f32 %v3600_v2, %v5554_v57  ;;  %v2914_v37 = vpop.f32.mrb[49].mxu1 }
 0x3c5   :  { %v2915_v52 = vadd.f32 %v5554_v57, %v2914_v37  ;;  %v3601_v20 = vpop.f32.mrb[50].mxu1 }
 0x3c6   :  { %vm3027_vm6 = vcmp.ge.f32.partialorder %v2923_v34, 0.0  ;;  %v3092_v18 = vmul.f32 %v5556_v40, %v2923_v34  ;;  %v2926_v63 = vadd.f32 %v3601_v20, %v5554_v57  ;;  %v2917_v48 = vpop.f32.mrb[51].mxu1 }
 0x3c7   :  { %vm3025_vm7 = vcmp.ge.f32.partialorder %v2915_v52, 0.0  ;;  %v3090_v60 = vmul.f32 %v5556_v40, %v2915_v52  ;;  %v2918_v46 = vadd.f32 %v5554_v57, %v2917_v48 }
 0x3c8   :  { %v3156_v13 = vsel %vm3027_vm6, %v2923_v34, %v3092_v18  ;;  %vm3028_vm8 = vcmp.ge.f32.partialorder %v2926_v63, 0.0  ;;  %v3093_v45 = vmul.f32 %v5556_v40, %v2926_v63 }
 0x3c9   :  { %3284 = vst.msk [vmem:[%s5949_s7 + $0x190] sm:$0xff] %vm2239_vm15, %v3156_v13  ;;  %v3154_v21 = vsel %vm3025_vm7, %v2915_v52, %v3090_v60  ;;  %vm3026_vm9 = vcmp.ge.f32.partialorder %v2918_v46, 0.0  ;;  %v3091_v44 = vmul.f32 %v5556_v40, %v2918_v46 }
 0x3ca   :  { %3282 = vst.msk [vmem:[%s5949_s7 + $0x180] sm:$0xff] %vm2239_vm15, %v3154_v21  ;;  %v3157_v17 = vsel %vm3028_vm8, %v2926_v63, %v3093_v45 }
 0x3cb   :  { %3285 = vst.msk [vmem:[%s5949_s7 + $0x198] sm:$0xff] %vm2239_vm15, %v3157_v17  ;;  %v3155_v1 = vsel %vm3026_vm9, %v2918_v46, %v3091_v44  ;;  %v3604_v25 = vpop.f32.mrb[52].mxu1 }
 0x3cc   :  { %3283 = vst.msk [vmem:[%s5949_s7 + $0x188] sm:$0xff] %vm2239_vm15, %v3155_v1  ;;  %v2939_v22 = vadd.f32 %v3604_v25, %v5554_v57  ;;  %v2930_v14 = vpop.f32.mrb[53].mxu1 }
 0x3cd   :  { %v2931_v9 = vadd.f32 %v5554_v57, %v2930_v14  ;;  %v3605_v38 = vpop.f32.mrb[54].mxu1 }
 0x3ce   :  { %vm3031_vm10 = vcmp.ge.f32.partialorder %v2939_v22, 0.0  ;;  %v3096_v59 = vmul.f32 %v5556_v40, %v2939_v22  ;;  %v2942_v8 = vadd.f32 %v3605_v38, %v5554_v57  ;;  %v2933_v11 = vpop.f32.mrb[55].mxu1 }
 0x3cf   :  { %vm3029_vm11 = vcmp.ge.f32.partialorder %v2931_v9, 0.0  ;;  %v3094_v54 = vmul.f32 %v5556_v40, %v2931_v9  ;;  %v2934_v51 = vadd.f32 %v5554_v57, %v2933_v11 }
 0x3d0   :  { %v3160_v39 = vsel %vm3031_vm10, %v2939_v22, %v3096_v59  ;;  %vm3032_vm12 = vcmp.ge.f32.partialorder %v2942_v8, 0.0  ;;  %v3097_v41 = vmul.f32 %v5556_v40, %v2942_v8 }
 0x3d1   :  { %3288 = vst.msk [vmem:[%s5949_s7 + $0x1b0] sm:$0xff] %vm2239_vm15, %v3160_v39  ;;  %v3158_v61 = vsel %vm3029_vm11, %v2931_v9, %v3094_v54  ;;  %vm3030_vm13 = vcmp.ge.f32.partialorder %v2934_v51, 0.0  ;;  %v3095_v42 = vmul.f32 %v5556_v40, %v2934_v51 }
 0x3d2   :  { %3286 = vst.msk [vmem:[%s5949_s7 + $0x1a0] sm:$0xff] %vm2239_vm15, %v3158_v61  ;;  %v3161_v50 = vsel %vm3032_vm12, %v2942_v8, %v3097_v41 }
 0x3d3   :  { %3289 = vst.msk [vmem:[%s5949_s7 + $0x1b8] sm:$0xff] %vm2239_vm15, %v3161_v50  ;;  %v3159_v62 = vsel %vm3030_vm13, %v2934_v51, %v3095_v42  ;;  %v3608_v30 = vpop.f32.mrb[56].mxu1 }
 0x3d4   :  { %3287 = vst.msk [vmem:[%s5949_s7 + $0x1a8] sm:$0xff] %vm2239_vm15, %v3159_v62  ;;  %v2955_v24 = vadd.f32 %v3608_v30, %v5554_v57  ;;  %v2946_v15 = vpop.f32.mrb[57].mxu1 }
 0x3d5   :  { %v2947_v27 = vadd.f32 %v5554_v57, %v2946_v15  ;;  %v3609_v29 = vpop.f32.mrb[58].mxu1 }
 0x3d6   :  { %vm3035_vm14 = vcmp.ge.f32.partialorder %v2955_v24, 0.0  ;;  %v3100_v49 = vmul.f32 %v5556_v40, %v2955_v24  ;;  %v2958_v36 = vadd.f32 %v3609_v29, %v5554_v57  ;;  %v2949_v3 = vpop.f32.mrb[59].mxu1 }
 0x3d7   :  { %vm3033_vm0 = vcmp.ge.f32.partialorder %v2947_v27, 0.0  ;;  %v3098_v53 = vmul.f32 %v5556_v40, %v2947_v27  ;;  %v2950_v43 = vadd.f32 %v5554_v57, %v2949_v3 }
 0x3d8   :  { %v3164_v47 = vsel %vm3035_vm14, %v2955_v24, %v3100_v49  ;;  %vm3036_vm2 = vcmp.ge.f32.partialorder %v2958_v36, 0.0  ;;  %v3101_v19 = vmul.f32 %v5556_v40, %v2958_v36 }
 0x3d9   :  { %3292 = vst.msk [vmem:[%s5949_s7 + $0x1d0] sm:$0xff] %vm2239_vm15, %v3164_v47  ;;  %v3162_v4 = vsel %vm3033_vm0, %v2947_v27, %v3098_v53  ;;  %vm3034_vm3 = vcmp.ge.f32.partialorder %v2950_v43, 0.0  ;;  %v3099_v6 = vmul.f32 %v5556_v40, %v2950_v43 }
 0x3da   :  { %3290 = vst.msk [vmem:[%s5949_s7 + $0x1c0] sm:$0xff] %vm2239_vm15, %v3162_v4  ;;  %v3165_v7 = vsel %vm3036_vm2, %v2958_v36, %v3101_v19 }
 0x3db   :  { %3293 = vst.msk [vmem:[%s5949_s7 + $0x1d8] sm:$0xff] %vm2239_vm15, %v3165_v7  ;;  %v3163_v5 = vsel %vm3034_vm3, %v2950_v43, %v3099_v6 }
 0x3dc   :  { %3291 = vst.msk [vmem:[%s5949_s7 + $0x1c8] sm:$0xff] %vm2239_vm15, %v3163_v5 }
 0x411   :  { %v3612_v28 = vpop.f32.mrb[60].mxu1 }
 0x412   :  { %v2971_v58 = vadd.f32 %v3612_v28, %v5554_v57  ;;  %v2962_v35 = vpop.f32.mrb[61].mxu1 }
 0x413   :  { %v2963_v12 = vadd.f32 %v5554_v57, %v2962_v35  ;;  %v3613_v0 = vpop.f32.mrb[62].mxu1 }
 0x414   :  { %vm3039_vm1 = vcmp.ge.f32.partialorder %v2971_v58, 0.0  ;;  %v3104_v33 = vmul.f32 %v5556_v40, %v2971_v58  ;;  %v2974_v55 = vadd.f32 %v3613_v0, %v5554_v57  ;;  %v2965_v31 = vpop.f32.mrb[63].mxu1 }
 0x415   :  { %vm3037_vm4 = vcmp.ge.f32.partialorder %v2963_v12, 0.0  ;;  %v3102_v16 = vmul.f32 %v5556_v40, %v2963_v12  ;;  %v2966_v23 = vadd.f32 %v5554_v57, %v2965_v31 }
 0x416   :  { %v3168_v56 = vsel %vm3039_vm1, %v2971_v58, %v3104_v33  ;;  %vm3040_vm5 = vcmp.ge.f32.partialorder %v2974_v55, 0.0  ;;  %v3105_v10 = vmul.f32 %v5556_v40, %v2974_v55 }
 0x417   :  { %3296 = vst.msk [vmem:[%s5949_s7 + $0x1f0] sm:$0xff] %vm2239_vm15, %v3168_v56  ;;  %v3166_v32 = vsel %vm3037_vm4, %v2963_v12, %v3102_v16  ;;  %vm3038_vm6 = vcmp.ge.f32.partialorder %v2966_v23, 0.0  ;;  %v3103_v26 = vmul.f32 %v5556_v40, %v2966_v23 }
 0x418   :  { %3294 = vst.msk [vmem:[%s5949_s7 + $0x1e0] sm:$0xff] %vm2239_vm15, %v3166_v32  ;;  %v3169_v2 = vsel %vm3040_vm5, %v2974_v55, %v3105_v10 }
 0x419   :  { %3297 = vst.msk [vmem:[%s5949_s7 + $0x1f8] sm:$0xff] %vm2239_vm15, %v3169_v2  ;;  %v3167_v57 = vsel %vm3038_vm6, %v2966_v23, %v3103_v26 }
 0x41a   :  { %3295 = vst.msk [vmem:[%s5949_s7 + $0x1e8] sm:$0xff] %vm2239_vm15, %v3167_v57 }
 0x41b   :  { %3306 = vsyncpa [#allocation3], 1 }

</bundles_post_ra>
